<compile_context>
chip_gen: v6e
topology: v6e:2x2x1
jax: 0.10.0
libtpu: 0.0.40
codegen_flags: <defaults>
</compile_context>

<pallas_src>
import functools

import jax
import jax.numpy as jnp
import numpy as np
from jax import lax
from jax.experimental import pallas as pl
from jax.experimental.pallas import tpu as pltpu


def _bottleneck_kernel(x_ref,
                       w1_ref, s1_ref, b1_ref,
                       w2_ref, s2_ref, b2_ref,
                       w3_ref, s3_ref, b3_ref,
                       o_ref, carry_ref, hp_ref, acc_ref,
                       *, n_segment, fold):
    H, W, cin = x_ref.shape
    width = w1_ref.shape[1]
    cout = w3_ref.shape[1]
    HW = H * W

    # Grid step t loads frame min(t, nt-1) and processes frame p = t - 1 (t >= 1).
    t = pl.program_id(0)
    s = lax.rem(t, 2)                      # carry ring slot for the frame loaded this step

    x_new = x_ref[...].astype(jnp.float32)  # frame t (single HBM load per frame)

    @pl.when(t == 0)
    def _():
        # Zero the 3x3-conv halo rows once; they are never written afterwards.
        hp_ref[pl.ds(0, 1)] = jnp.zeros((1, W, width), jnp.float32)
        hp_ref[pl.ds(H + 1, 1)] = jnp.zeros((1, W, width), jnp.float32)

    @pl.when(t > 0)
    def _():
        p = t - 1
        seg_pos = lax.rem(p, n_segment)
        nxt_valid = seg_pos < n_segment - 1     # last frame in segment -> shift-in zeros
        prv_valid = seg_pos > 0                 # first frame in segment -> shift-in zeros

        # ---- TSM temporal shift from the VMEM carry ring (no duplicate HBM loads) ----
        x_cur = carry_ref[1 - s].reshape(HW, cin)   # frame p (full, f32)
        x_prv = carry_ref[s].reshape(HW, cin)       # frame p-1 (uninitialised when gated)
        x_nxt = x_new.reshape(HW, cin)              # frame p+1 (clamped load when gated)

        cidx = lax.broadcasted_iota(jnp.int32, (HW, cin), 1)
        shifted = jnp.where(
            cidx < fold,
            jnp.where(nxt_valid, x_nxt, 0.0),
            jnp.where(cidx < 2 * fold,
                      jnp.where(prv_valid, x_prv, 0.0),   # where (not *gate): no NaN leak
                      x_cur))

        # ---- conv1 (1x1) + bn1 + relu ----
        h1 = jnp.dot(shifted.astype(jnp.bfloat16), w1_ref[...],
                     preferred_element_type=jnp.float32)
        h1 = jnp.maximum(h1 * s1_ref[...] + b1_ref[...], 0.0)       # (HW, width) f32

        # ---- conv2 (3x3, pad=1, stride=1) + bn2 + relu ----
        # Single H-padded scratch; row offsets slice the leading dim, column offsets use
        # an XLU roll along W plus a boundary mask (no 9 materialized patch copies).
        hp_ref[pl.ds(1, H)] = h1.reshape(H, W, width)
        col = lax.broadcasted_iota(jnp.int32, (H, W, width), 1)
        first = True
        for dy in range(3):                     # static Python unroll (LLO visibility)
            rows = hp_ref[pl.ds(dy, H)]         # (H, W, width) f32, cheap leading-dim slice
            for dx in (-1, 0, 1):
                if dx == 0:
                    tap = rows
                else:
                    rolled = pltpu.roll(rows, shift=(-dx) % W, axis=1)
                    if dx > 0:
                        tap = jnp.where(col < (W - dx), rolled, 0.0)
                    else:
                        tap = jnp.where(col >= (-dx), rolled, 0.0)
                contrib = jnp.dot(tap.reshape(HW, width).astype(jnp.bfloat16),
                                  w2_ref[dy, dx + 1],
                                  preferred_element_type=jnp.float32)
                if first:
                    acc_ref[...] = contrib      # first tap assigns (skip zero-init pass)
                    first = False
                else:
                    acc_ref[...] += contrib

        h2 = jnp.maximum(acc_ref[...] * s2_ref[...] + b2_ref[...], 0.0)

        # ---- conv3 (1x1) + bn3 + residual + relu (fused into the output write) ----
        h3 = jnp.dot(h2.astype(jnp.bfloat16), w3_ref[...],
                     preferred_element_type=jnp.float32)
        out = jnp.maximum(h3 * s3_ref[...] + b3_ref[...] + x_cur, 0.0)   # cin == cout
        o_ref[...] = out.reshape(H, W, cout).astype(o_ref.dtype)

    # Stash this step's frame into the ring (overwrites frame t-2, already consumed above).
    carry_ref[s] = x_new


def bottleneck_forward_nhwc(x, params, *, n_segment, fold_div):
    """x: (NT, H, W, Cin) float32 NHWC. Returns (NT, H, W, Cout) float32."""
    nt, H, W, cin = x.shape
    fold = cin // fold_div
    w1, s1, b1, w2, s2, b2, w3, s3, b3 = params
    width = w1.shape[1]
    cout = w3.shape[1]
    assert cin == cout, "identity residual requires inplanes == planes * expansion"

    # Feed the MXU in bf16; accumulation stays f32 inside the dots.
    w1b = w1.astype(jnp.bfloat16)
    w2b = w2.astype(jnp.bfloat16)
    w3b = w3.astype(jnp.bfloat16)

    kernel = functools.partial(_bottleneck_kernel, n_segment=n_segment, fold=fold)

    def resident_spec(shape):
        nd = len(shape)
        return pl.BlockSpec(shape, lambda t, _nd=nd: (0,) * _nd)   # stays resident

    return pl.pallas_call(
        kernel,
        out_shape=jax.ShapeDtypeStruct((nt, H, W, cout), jnp.float32),
        grid=(nt + 1,),                                            # one-step delayed pipe
        in_specs=[
            # frame min(t, nt-1): each frame enters VMEM exactly once
            pl.BlockSpec((pl.Squeezed(), H, W, cin),
                         lambda t: (jnp.minimum(t, nt - 1), 0, 0, 0)),
            resident_spec(w1b.shape), resident_spec(s1.shape), resident_spec(b1.shape),
            resident_spec(w2b.shape), resident_spec(s2.shape), resident_spec(b2.shape),
            resident_spec(w3b.shape), resident_spec(s3.shape), resident_spec(b3.shape),
        ],
        # frame p = t-1 is written at step t; block 0 is simply resident across steps 0/1.
        out_specs=pl.BlockSpec((pl.Squeezed(), H, W, cout),
                               lambda t: (jnp.maximum(t - 1, 0), 0, 0, 0)),
        scratch_shapes=[
            pltpu.VMEM((2, H, W, cin), jnp.float32),      # 2-frame carry ring (f32)
            pltpu.VMEM((H + 2, W, width), jnp.float32),   # H-padded h1
            pltpu.VMEM((H * W, width), jnp.float32),      # conv2 f32 accumulator
        ],
        compiler_params=pltpu.CompilerParams(
            dimension_semantics=("arbitrary",),           # sequential: carry across steps
            vmem_limit_bytes=48 * 1024 * 1024),
    )(x, w1b, s1, b1, w2b, s2, b2, w3b, s3, b3)


def bottleneck_forward(x_nchw, params, *, n_segment, fold_div):
    """x_nchw: (NT, Cin, H, W) float32 (PyTorch layout). Returns (NT, Cout, H, W)."""
    x = jnp.transpose(x_nchw, (0, 2, 3, 1))     # NHWC (hoist across blocks when chaining)
    out = bottleneck_forward_nhwc(x, params, n_segment=n_segment, fold_div=fold_div)
    return jnp.transpose(out, (0, 3, 1, 2))


# ---------------- pure-JAX reference (bf16-consistent, for correctness check) ----------------
def reference_forward(x_nchw, params, *, n_segment, fold_div):
    w1, s1, b1, w2, s2, b2, w3, s3, b3 = params
    bf = jnp.bfloat16
    x = jnp.transpose(x_nchw, (0, 2, 3, 1))
    nt, H, W, cin = x.shape
    nb = nt // n_segment
    fold = cin // fold_div

    x5 = x.reshape(nb, n_segment, H, W, cin)
    out5 = jnp.zeros_like(x5)
    out5 = out5.at[:, :-1, :, :, :fold].set(x5[:, 1:, :, :, :fold])
    out5 = out5.at[:, 1:, :, :, fold:2 * fold].set(x5[:, :-1, :, :, fold:2 * fold])
    out5 = out5.at[:, :, :, :, 2 * fold:].set(x5[:, :, :, :, 2 * fold:])
    shifted = out5.reshape(nt, H, W, cin)

    h1 = jnp.einsum('nhwc,cf->nhwf', shifted.astype(bf), w1.astype(bf),
                    preferred_element_type=jnp.float32)
    h1 = jnp.maximum(h1 * s1.reshape(-1) + b1.reshape(-1), 0.0)
    h2 = lax.conv_general_dilated(h1.astype(bf), w2.astype(bf),
                                  window_strides=(1, 1), padding=((1, 1), (1, 1)),
                                  dimension_numbers=('NHWC', 'HWIO', 'NHWC'),
                                  preferred_element_type=jnp.float32)
    h2 = jnp.maximum(h2 * s2.reshape(-1) + b2.reshape(-1), 0.0)
    h3 = jnp.einsum('nhwf,fo->nhwo', h2.astype(bf), w3.astype(bf),
                    preferred_element_type=jnp.float32)
    h3 = h3 * s3.reshape(-1) + b3.reshape(-1)
    out = jnp.maximum(h3 + x, 0.0)
    return jnp.transpose(out, (0, 3, 1, 2))


def make_params(key, inplanes, planes, base_width=64, groups=1, eps=1e-5):
    width = int(planes * (base_width / 64.0)) * groups
    cout = planes * 4                              # Bottleneck.expansion = 4
    ks = jax.random.split(key, 12)

    def bn_fold(kg, kb, km, kv, c):
        gamma = 1.0 + 0.1 * jax.random.normal(kg, (c,), jnp.float32)
        beta = 0.1 * jax.random.normal(kb, (c,), jnp.float32)
        mean = 0.1 * jax.random.normal(km, (c,), jnp.float32)
        var = jnp.abs(jax.random.normal(kv, (c,), jnp.float32)) + 0.5
        scale = gamma / jnp.sqrt(var + eps)
        bias = beta - mean * scale
        return scale.reshape(1, c), bias.reshape(1, c)

    w1 = 0.1 * jax.random.normal(ks[0], (inplanes, width), jnp.float32)
    w2 = 0.1 * jax.random.normal(ks[1], (3, 3, width, width), jnp.float32)   # HWIO
    w3 = 0.1 * jax.random.normal(ks[2], (width, cout), jnp.float32)
    s1, b1 = bn_fold(ks[3], ks[4], ks[5], ks[6], width)
    s2, b2 = bn_fold(ks[7], ks[8], ks[9], ks[10], width)
    s3, b3 = bn_fold(ks[11], ks[0], ks[1], ks[2], cout)
    return (w1, s1, b1, w2, s2, b2, w3, s3, b3)


if __name__ == "__main__":
    # Small config consistent with the module: inplanes = planes*4 so the identity
    # residual (downsample=None, stride=1) is valid.
    n_batch, n_segment = 2, 4
    nt = n_batch * n_segment                 # 8 frames total
    inplanes, planes = 32, 8                 # width = 8, cout = 32
    H = W = 16
    fold_div = 3

    key = jax.random.PRNGKey(0)
    kx, kp = jax.random.split(key)
    x = jax.random.normal(kx, (nt, inplanes, H, W), jnp.float32)   # NCHW like PyTorch
    params = make_params(kp, inplanes, planes)

    fwd = jax.jit(functools.partial(bottleneck_forward,
                                    n_segment=n_segment, fold_div=fold_div))
    out = jax.block_until_ready(fwd(x, params))

    ref = jax.block_until_ready(
        reference_forward(x, params, n_segment=n_segment, fold_div=fold_div))
    np.testing.assert_allclose(np.asarray(out), np.asarray(ref), rtol=5e-3, atol=5e-3)

    print("KERNEL_OK")
</pallas_src>

<mosaic_0001>
module attributes {stable_mosaic.version = 11 : i64} {
  func.func @_bottleneck_kernel(%arg0: i32, %arg1: memref<1x16x16x32xf32, #tpu.memory_space<vmem>>, %arg2: memref<32x8xbf16, #tpu.memory_space<vmem>>, %arg3: memref<1x8xf32, #tpu.memory_space<vmem>>, %arg4: memref<1x8xf32, #tpu.memory_space<vmem>>, %arg5: memref<3x3x8x8xbf16, #tpu.memory_space<vmem>>, %arg6: memref<1x8xf32, #tpu.memory_space<vmem>>, %arg7: memref<1x8xf32, #tpu.memory_space<vmem>>, %arg8: memref<8x32xbf16, #tpu.memory_space<vmem>>, %arg9: memref<1x32xf32, #tpu.memory_space<vmem>>, %arg10: memref<1x32xf32, #tpu.memory_space<vmem>>, %arg11: memref<1x16x16x32xf32, #tpu.memory_space<vmem>>, %arg12: memref<2x16x16x32xf32, #tpu.memory_space<vmem>>, %arg13: memref<18x16x8xf32, #tpu.memory_space<vmem>>, %arg14: memref<256x8xf32, #tpu.memory_space<vmem>>) attributes {dimension_semantics = [#tpu.dimension_semantics<arbitrary>], iteration_bounds = array<i64: 9>, scalar_prefetch = 0 : i64, scratch_operands = 3 : i64, tpu.core_type = #tpu.core_type<tc>, window_params = [{transform_indices = @transform_0, window_bounds = array<i64: 1, 16, 16, 32>}, {pipeline_mode = #tpu.pipeline_mode<synchronous>, transform_indices = @transform_1, window_bounds = array<i64: 32, 8>}, {pipeline_mode = #tpu.pipeline_mode<synchronous>, transform_indices = @transform_2, window_bounds = array<i64: 1, 8>}, {pipeline_mode = #tpu.pipeline_mode<synchronous>, transform_indices = @transform_3, window_bounds = array<i64: 1, 8>}, {pipeline_mode = #tpu.pipeline_mode<synchronous>, transform_indices = @transform_4, window_bounds = array<i64: 3, 3, 8, 8>}, {pipeline_mode = #tpu.pipeline_mode<synchronous>, transform_indices = @transform_5, window_bounds = array<i64: 1, 8>}, {pipeline_mode = #tpu.pipeline_mode<synchronous>, transform_indices = @transform_6, window_bounds = array<i64: 1, 8>}, {pipeline_mode = #tpu.pipeline_mode<synchronous>, transform_indices = @transform_7, window_bounds = array<i64: 8, 32>}, {pipeline_mode = #tpu.pipeline_mode<synchronous>, transform_indices = @transform_8, window_bounds = array<i64: 1, 32>}, {pipeline_mode = #tpu.pipeline_mode<synchronous>, transform_indices = @transform_9, window_bounds = array<i64: 1, 32>}, {transform_indices = @transform_10, window_bounds = array<i64: 1, 16, 16, 32>}]} {
    %c2_i32 = arith.constant 2 : i32
    %0 = arith.remsi %arg0, %c2_i32 : i32
    %c0 = arith.constant 0 : index
    %c0_0 = arith.constant 0 : index
    %c0_1 = arith.constant 0 : index
    %c0_2 = arith.constant 0 : index
    %1 = vector.load %arg1[%c0, %c0_0, %c0_1, %c0_2] : memref<1x16x16x32xf32, #tpu.memory_space<vmem>>, vector<1x16x16x32xf32>
    %2 = vector.shape_cast %1 : vector<1x16x16x32xf32> to vector<16x16x32xf32>
    %c0_i32 = arith.constant 0 : i32
    %3 = arith.cmpi eq, %arg0, %c0_i32 : i32
    %4 = arith.extui %3 : i1 to i32
    %c0_i32_3 = arith.constant 0 : i32
    %5 = arith.cmpi ne, %4, %c0_i32_3 : i32
    scf.if %5 {
      %cst = arith.constant 0.000000e+00 : f32
      %13 = vector.broadcast %cst : f32 to vector<1x16x8xf32>
      %c0_9 = arith.constant 0 : index
      %c0_10 = arith.constant 0 : index
      %c0_11 = arith.constant 0 : index
      %14 = vector.load %arg13[%c0_9, %c0_10, %c0_11] : memref<18x16x8xf32, #tpu.memory_space<vmem>>, vector<1x16x8xf32>
      tpu.vector_store %arg13[%c0_9, %c0_10, %c0_11], %13 {strides = array<i32>} : memref<18x16x8xf32, #tpu.memory_space<vmem>>, vector<1x16x8xf32>,
      %cst_12 = arith.constant 0.000000e+00 : f32
      %15 = vector.broadcast %cst_12 : f32 to vector<1x16x8xf32>
      %c17 = arith.constant 17 : index
      %c0_13 = arith.constant 0 : index
      %c0_14 = arith.constant 0 : index
      %16 = vector.load %arg13[%c17, %c0_13, %c0_14] : memref<18x16x8xf32, #tpu.memory_space<vmem>>, vector<1x16x8xf32>
      tpu.vector_store %arg13[%c17, %c0_13, %c0_14], %15 {strides = array<i32>} : memref<18x16x8xf32, #tpu.memory_space<vmem>>, vector<1x16x8xf32>,
    } else {
    }
    %c0_i32_4 = arith.constant 0 : i32
    %6 = arith.cmpi sgt, %arg0, %c0_i32_4 : i32
    %7 = arith.extui %6 : i1 to i32
    %c0_i32_5 = arith.constant 0 : i32
    %8 = arith.cmpi ne, %7, %c0_i32_5 : i32
    scf.if %8 {
      %c1_i32 = arith.constant 1 : i32
      %13 = arith.subi %arg0, %c1_i32 : i32
      %c4_i32 = arith.constant 4 : i32
      %14 = arith.remsi %13, %c4_i32 : i32
      %c3_i32 = arith.constant 3 : i32
      %15 = arith.cmpi slt, %14, %c3_i32 : i32
      %c0_i32_9 = arith.constant 0 : i32
      %16 = arith.cmpi sgt, %14, %c0_i32_9 : i32
      %c1_i32_10 = arith.constant 1 : i32
      %17 = arith.subi %c1_i32_10, %0 : i32
      %18 = arith.index_cast %17 : i32 to index
      %c0_11 = arith.constant 0 : index
      %c0_12 = arith.constant 0 : index
      %c0_13 = arith.constant 0 : index
      %19 = vector.load %arg12[%18, %c0_11, %c0_12, %c0_13] : memref<2x16x16x32xf32, #tpu.memory_space<vmem>>, vector<1x16x16x32xf32>
      %20 = vector.shape_cast %19 : vector<1x16x16x32xf32> to vector<16x16x32xf32>
      %21 = vector.shape_cast %20 : vector<16x16x32xf32> to vector<256x32xf32>
      %22 = arith.index_cast %0 : i32 to index
      %c0_14 = arith.constant 0 : index
      %c0_15 = arith.constant 0 : index
      %c0_16 = arith.constant 0 : index
      %23 = vector.load %arg12[%22, %c0_14, %c0_15, %c0_16] : memref<2x16x16x32xf32, #tpu.memory_space<vmem>>, vector<1x16x16x32xf32>
      %24 = vector.shape_cast %23 : vector<1x16x16x32xf32> to vector<16x16x32xf32>
      %25 = vector.shape_cast %24 : vector<16x16x32xf32> to vector<256x32xf32>
      %26 = vector.shape_cast %2 : vector<16x16x32xf32> to vector<256x32xf32>
      %27 = tpu.iota {dimensions = array<i32: 1>} : vector<256x32xi32>
      %c10_i32 = arith.constant 10 : i32
      %28 = vector.broadcast %c10_i32 : i32 to vector<256x32xi32>
      %29 = arith.cmpi slt, %27, %28 : vector<256x32xi32>
      %cst = arith.constant 0.000000e+00 : f32
      %30 = vector.broadcast %cst : f32 to vector<256x32xf32>
      %31 = arith.select %15, %26, %30 : vector<256x32xf32>
      %c20_i32 = arith.constant 20 : i32
      %32 = vector.broadcast %c20_i32 : i32 to vector<256x32xi32>
      %33 = arith.cmpi slt, %27, %32 : vector<256x32xi32>
      %cst_17 = arith.constant 0.000000e+00 : f32
      %34 = vector.broadcast %cst_17 : f32 to vector<256x32xf32>
      %35 = arith.select %16, %25, %34 : vector<256x32xf32>
      %36 = arith.select %33, %35, %21 : vector<256x32xi1>, vector<256x32xf32>
      %37 = arith.select %29, %31, %36 : vector<256x32xi1>, vector<256x32xf32>
      %38 = arith.truncf %37 : vector<256x32xf32> to vector<256x32xbf16>
      %c0_18 = arith.constant 0 : index
      %c0_19 = arith.constant 0 : index
      %39 = vector.load %arg2[%c0_18, %c0_19] : memref<32x8xbf16, #tpu.memory_space<vmem>>, vector<32x8xbf16>
      %cst_20 = arith.constant dense<0.000000e+00> : vector<256x8xf32>
      %40 = tpu.matmul %38, %39, %cst_20 {dimension_numbers = #tpu.dot_dimension_numbers<[1], [0], [0], [1], [0, 0, 1, 1], [], []>} : vector<256x32xbf16>, vector<32x8xbf16>, vector<256x8xf32> -> vector<256x8xf32>
      %c0_21 = arith.constant 0 : index
      %c0_22 = arith.constant 0 : index
      %41 = vector.load %arg3[%c0_21, %c0_22] : memref<1x8xf32, #tpu.memory_space<vmem>>, vector<1x8xf32>
      %42 = vector.broadcast %41 : vector<1x8xf32> to vector<256x8xf32>
      %43 = arith.mulf %40, %42 : vector<256x8xf32>
      %c0_23 = arith.constant 0 : index
      %c0_24 = arith.constant 0 : index
      %44 = vector.load %arg4[%c0_23, %c0_24] : memref<1x8xf32, #tpu.memory_space<vmem>>, vector<1x8xf32>
      %45 = vector.broadcast %44 : vector<1x8xf32> to vector<256x8xf32>
      %46 = arith.addf %43, %45 : vector<256x8xf32>
      %cst_25 = arith.constant 0.000000e+00 : f32
      %47 = vector.broadcast %cst_25 : f32 to vector<256x8xf32>
      %48 = arith.maximumf %46, %47 : vector<256x8xf32>
      %49 = vector.shape_cast %48 : vector<256x8xf32> to vector<16x16x8xf32>
      %c1 = arith.constant 1 : index
      %c0_26 = arith.constant 0 : index
      %c0_27 = arith.constant 0 : index
      %50 = vector.load %arg13[%c1, %c0_26, %c0_27] : memref<18x16x8xf32, #tpu.memory_space<vmem>>, vector<16x16x8xf32>
      tpu.vector_store %arg13[%c1, %c0_26, %c0_27], %49 {strides = array<i32>} : memref<18x16x8xf32, #tpu.memory_space<vmem>>, vector<16x16x8xf32>,
      %51 = tpu.iota {dimensions = array<i32: 1>} : vector<16x16x8xi32>
      %c0_28 = arith.constant 0 : index
      %c0_29 = arith.constant 0 : index
      %c0_30 = arith.constant 0 : index
      %52 = vector.load %arg13[%c0_28, %c0_29, %c0_30] : memref<18x16x8xf32, #tpu.memory_space<vmem>>, vector<16x16x8xf32>
      %c1_i32_31 = arith.constant 1 : i32
      %53 = tpu.dynamic_rotate %52 by %c1_i32_31 dim 1 : vector<16x16x8xf32>, i32 -> vector<16x16x8xf32>
      %c1_i32_32 = arith.constant 1 : i32
      %54 = vector.broadcast %c1_i32_32 : i32 to vector<16x16x8xi32>
      %55 = arith.cmpi sge, %51, %54 : vector<16x16x8xi32>
      %cst_33 = arith.constant 0.000000e+00 : f32
      %56 = vector.broadcast %cst_33 : f32 to vector<16x16x8xf32>
      %57 = arith.select %55, %53, %56 : vector<16x16x8xi1>, vector<16x16x8xf32>
      %58 = vector.shape_cast %57 : vector<16x16x8xf32> to vector<256x8xf32>
      %59 = arith.truncf %58 : vector<256x8xf32> to vector<256x8xbf16>
      %c0_34 = arith.constant 0 : index
      %c0_35 = arith.constant 0 : index
      %c0_36 = arith.constant 0 : index
      %c0_37 = arith.constant 0 : index
      %60 = vector.load %arg5[%c0_34, %c0_35, %c0_36, %c0_37] : memref<3x3x8x8xbf16, #tpu.memory_space<vmem>>, vector<1x1x8x8xbf16>
      %61 = vector.shape_cast %60 : vector<1x1x8x8xbf16> to vector<8x8xbf16>
      %cst_38 = arith.constant dense<0.000000e+00> : vector<256x8xf32>
      %62 = tpu.matmul %59, %61, %cst_38 {dimension_numbers = #tpu.dot_dimension_numbers<[1], [0], [0], [1], [0, 0, 1, 1], [], []>} : vector<256x8xbf16>, vector<8x8xbf16>, vector<256x8xf32> -> vector<256x8xf32>
      %c0_39 = arith.constant 0 : index
      %c0_40 = arith.constant 0 : index
      %63 = vector.load %arg14[%c0_39, %c0_40] : memref<256x8xf32, #tpu.memory_space<vmem>>, vector<256x8xf32>
      tpu.vector_store %arg14[%c0_39, %c0_40], %62 {strides = array<i32>} : memref<256x8xf32, #tpu.memory_space<vmem>>, vector<256x8xf32>,
      %64 = vector.shape_cast %52 : vector<16x16x8xf32> to vector<256x8xf32>
      %65 = arith.truncf %64 : vector<256x8xf32> to vector<256x8xbf16>
      %c0_41 = arith.constant 0 : index
      %c1_42 = arith.constant 1 : index
      %c0_43 = arith.constant 0 : index
      %c0_44 = arith.constant 0 : index
      %66 = vector.load %arg5[%c0_41, %c1_42, %c0_43, %c0_44] : memref<3x3x8x8xbf16, #tpu.memory_space<vmem>>, vector<1x1x8x8xbf16>
      %67 = vector.shape_cast %66 : vector<1x1x8x8xbf16> to vector<8x8xbf16>
      %cst_45 = arith.constant dense<0.000000e+00> : vector<256x8xf32>
      %68 = tpu.matmul %65, %67, %cst_45 {dimension_numbers = #tpu.dot_dimension_numbers<[1], [0], [0], [1], [0, 0, 1, 1], [], []>} : vector<256x8xbf16>, vector<8x8xbf16>, vector<256x8xf32> -> vector<256x8xf32>
      %c0_46 = arith.constant 0 : index
      %c0_47 = arith.constant 0 : index
      %69 = vector.load %arg14[%c0_46, %c0_47] : memref<256x8xf32, #tpu.memory_space<vmem>>, vector<256x8xf32>
      %70 = arith.addf %69, %68 : vector<256x8xf32>
      %c0_48 = arith.constant 0 : index
      %c0_49 = arith.constant 0 : index
      %71 = vector.load %arg14[%c0_48, %c0_49] : memref<256x8xf32, #tpu.memory_space<vmem>>, vector<256x8xf32>
      tpu.vector_store %arg14[%c0_48, %c0_49], %70 {strides = array<i32>} : memref<256x8xf32, #tpu.memory_space<vmem>>, vector<256x8xf32>,
      %c15_i32 = arith.constant 15 : i32
      %72 = tpu.dynamic_rotate %52 by %c15_i32 dim 1 : vector<16x16x8xf32>, i32 -> vector<16x16x8xf32>
      %c15_i32_50 = arith.constant 15 : i32
      %73 = vector.broadcast %c15_i32_50 : i32 to vector<16x16x8xi32>
      %74 = arith.cmpi slt, %51, %73 : vector<16x16x8xi32>
      %cst_51 = arith.constant 0.000000e+00 : f32
      %75 = vector.broadcast %cst_51 : f32 to vector<16x16x8xf32>
      %76 = arith.select %74, %72, %75 : vector<16x16x8xi1>, vector<16x16x8xf32>
      %77 = vector.shape_cast %76 : vector<16x16x8xf32> to vector<256x8xf32>
      %78 = arith.truncf %77 : vector<256x8xf32> to vector<256x8xbf16>
      %c0_52 = arith.constant 0 : index
      %c2 = arith.constant 2 : index
      %c0_53 = arith.constant 0 : index
      %c0_54 = arith.constant 0 : index
      %79 = vector.load %arg5[%c0_52, %c2, %c0_53, %c0_54] : memref<3x3x8x8xbf16, #tpu.memory_space<vmem>>, vector<1x1x8x8xbf16>
      %80 = vector.shape_cast %79 : vector<1x1x8x8xbf16> to vector<8x8xbf16>
      %cst_55 = arith.constant dense<0.000000e+00> : vector<256x8xf32>
      %81 = tpu.matmul %78, %80, %cst_55 {dimension_numbers = #tpu.dot_dimension_numbers<[1], [0], [0], [1], [0, 0, 1, 1], [], []>} : vector<256x8xbf16>, vector<8x8xbf16>, vector<256x8xf32> -> vector<256x8xf32>
      %c0_56 = arith.constant 0 : index
      %c0_57 = arith.constant 0 : index
      %82 = vector.load %arg14[%c0_56, %c0_57] : memref<256x8xf32, #tpu.memory_space<vmem>>, vector<256x8xf32>
      %83 = arith.addf %82, %81 : vector<256x8xf32>
      %c0_58 = arith.constant 0 : index
      %c0_59 = arith.constant 0 : index
      %84 = vector.load %arg14[%c0_58, %c0_59] : memref<256x8xf32, #tpu.memory_space<vmem>>, vector<256x8xf32>
      tpu.vector_store %arg14[%c0_58, %c0_59], %83 {strides = array<i32>} : memref<256x8xf32, #tpu.memory_space<vmem>>, vector<256x8xf32>,
      %c1_60 = arith.constant 1 : index
      %c0_61 = arith.constant 0 : index
      %c0_62 = arith.constant 0 : index
      %85 = vector.load %arg13[%c1_60, %c0_61, %c0_62] : memref<18x16x8xf32, #tpu.memory_space<vmem>>, vector<16x16x8xf32>
      %c1_i32_63 = arith.constant 1 : i32
      %86 = tpu.dynamic_rotate %85 by %c1_i32_63 dim 1 : vector<16x16x8xf32>, i32 -> vector<16x16x8xf32>
      %c1_i32_64 = arith.constant 1 : i32
      %87 = vector.broadcast %c1_i32_64 : i32 to vector<16x16x8xi32>
      %88 = arith.cmpi sge, %51, %87 : vector<16x16x8xi32>
      %cst_65 = arith.constant 0.000000e+00 : f32
      %89 = vector.broadcast %cst_65 : f32 to vector<16x16x8xf32>
      %90 = arith.select %88, %86, %89 : vector<16x16x8xi1>, vector<16x16x8xf32>
      %91 = vector.shape_cast %90 : vector<16x16x8xf32> to vector<256x8xf32>
      %92 = arith.truncf %91 : vector<256x8xf32> to vector<256x8xbf16>
      %c1_66 = arith.constant 1 : index
      %c0_67 = arith.constant 0 : index
      %c0_68 = arith.constant 0 : index
      %c0_69 = arith.constant 0 : index
      %93 = vector.load %arg5[%c1_66, %c0_67, %c0_68, %c0_69] : memref<3x3x8x8xbf16, #tpu.memory_space<vmem>>, vector<1x1x8x8xbf16>
      %94 = vector.shape_cast %93 : vector<1x1x8x8xbf16> to vector<8x8xbf16>
      %cst_70 = arith.constant dense<0.000000e+00> : vector<256x8xf32>
      %95 = tpu.matmul %92, %94, %cst_70 {dimension_numbers = #tpu.dot_dimension_numbers<[1], [0], [0], [1], [0, 0, 1, 1], [], []>} : vector<256x8xbf16>, vector<8x8xbf16>, vector<256x8xf32> -> vector<256x8xf32>
      %c0_71 = arith.constant 0 : index
      %c0_72 = arith.constant 0 : index
      %96 = vector.load %arg14[%c0_71, %c0_72] : memref<256x8xf32, #tpu.memory_space<vmem>>, vector<256x8xf32>
      %97 = arith.addf %96, %95 : vector<256x8xf32>
      %c0_73 = arith.constant 0 : index
      %c0_74 = arith.constant 0 : index
      %98 = vector.load %arg14[%c0_73, %c0_74] : memref<256x8xf32, #tpu.memory_space<vmem>>, vector<256x8xf32>
      tpu.vector_store %arg14[%c0_73, %c0_74], %97 {strides = array<i32>} : memref<256x8xf32, #tpu.memory_space<vmem>>, vector<256x8xf32>,
      %99 = vector.shape_cast %85 : vector<16x16x8xf32> to vector<256x8xf32>
      %100 = arith.truncf %99 : vector<256x8xf32> to vector<256x8xbf16>
      %c1_75 = arith.constant 1 : index
      %c1_76 = arith.constant 1 : index
      %c0_77 = arith.constant 0 : index
      %c0_78 = arith.constant 0 : index
      %101 = vector.load %arg5[%c1_75, %c1_76, %c0_77, %c0_78] : memref<3x3x8x8xbf16, #tpu.memory_space<vmem>>, vector<1x1x8x8xbf16>
      %102 = vector.shape_cast %101 : vector<1x1x8x8xbf16> to vector<8x8xbf16>
      %cst_79 = arith.constant dense<0.000000e+00> : vector<256x8xf32>
      %103 = tpu.matmul %100, %102, %cst_79 {dimension_numbers = #tpu.dot_dimension_numbers<[1], [0], [0], [1], [0, 0, 1, 1], [], []>} : vector<256x8xbf16>, vector<8x8xbf16>, vector<256x8xf32> -> vector<256x8xf32>
      %c0_80 = arith.constant 0 : index
      %c0_81 = arith.constant 0 : index
      %104 = vector.load %arg14[%c0_80, %c0_81] : memref<256x8xf32, #tpu.memory_space<vmem>>, vector<256x8xf32>
      %105 = arith.addf %104, %103 : vector<256x8xf32>
      %c0_82 = arith.constant 0 : index
      %c0_83 = arith.constant 0 : index
      %106 = vector.load %arg14[%c0_82, %c0_83] : memref<256x8xf32, #tpu.memory_space<vmem>>, vector<256x8xf32>
      tpu.vector_store %arg14[%c0_82, %c0_83], %105 {strides = array<i32>} : memref<256x8xf32, #tpu.memory_space<vmem>>, vector<256x8xf32>,
      %c15_i32_84 = arith.constant 15 : i32
      %107 = tpu.dynamic_rotate %85 by %c15_i32_84 dim 1 : vector<16x16x8xf32>, i32 -> vector<16x16x8xf32>
      %c15_i32_85 = arith.constant 15 : i32
      %108 = vector.broadcast %c15_i32_85 : i32 to vector<16x16x8xi32>
      %109 = arith.cmpi slt, %51, %108 : vector<16x16x8xi32>
      %cst_86 = arith.constant 0.000000e+00 : f32
      %110 = vector.broadcast %cst_86 : f32 to vector<16x16x8xf32>
      %111 = arith.select %109, %107, %110 : vector<16x16x8xi1>, vector<16x16x8xf32>
      %112 = vector.shape_cast %111 : vector<16x16x8xf32> to vector<256x8xf32>
      %113 = arith.truncf %112 : vector<256x8xf32> to vector<256x8xbf16>
      %c1_87 = arith.constant 1 : index
      %c2_88 = arith.constant 2 : index
      %c0_89 = arith.constant 0 : index
      %c0_90 = arith.constant 0 : index
      %114 = vector.load %arg5[%c1_87, %c2_88, %c0_89, %c0_90] : memref<3x3x8x8xbf16, #tpu.memory_space<vmem>>, vector<1x1x8x8xbf16>
      %115 = vector.shape_cast %114 : vector<1x1x8x8xbf16> to vector<8x8xbf16>
      %cst_91 = arith.constant dense<0.000000e+00> : vector<256x8xf32>
      %116 = tpu.matmul %113, %115, %cst_91 {dimension_numbers = #tpu.dot_dimension_numbers<[1], [0], [0], [1], [0, 0, 1, 1], [], []>} : vector<256x8xbf16>, vector<8x8xbf16>, vector<256x8xf32> -> vector<256x8xf32>
      %c0_92 = arith.constant 0 : index
      %c0_93 = arith.constant 0 : index
      %117 = vector.load %arg14[%c0_92, %c0_93] : memref<256x8xf32, #tpu.memory_space<vmem>>, vector<256x8xf32>
      %118 = arith.addf %117, %116 : vector<256x8xf32>
      %c0_94 = arith.constant 0 : index
      %c0_95 = arith.constant 0 : index
      %119 = vector.load %arg14[%c0_94, %c0_95] : memref<256x8xf32, #tpu.memory_space<vmem>>, vector<256x8xf32>
      tpu.vector_store %arg14[%c0_94, %c0_95], %118 {strides = array<i32>} : memref<256x8xf32, #tpu.memory_space<vmem>>, vector<256x8xf32>,
      %c2_96 = arith.constant 2 : index
      %c0_97 = arith.constant 0 : index
      %c0_98 = arith.constant 0 : index
      %120 = vector.load %arg13[%c2_96, %c0_97, %c0_98] : memref<18x16x8xf32, #tpu.memory_space<vmem>>, vector<16x16x8xf32>
      %c1_i32_99 = arith.constant 1 : i32
      %121 = tpu.dynamic_rotate %120 by %c1_i32_99 dim 1 : vector<16x16x8xf32>, i32 -> vector<16x16x8xf32>
      %c1_i32_100 = arith.constant 1 : i32
      %122 = vector.broadcast %c1_i32_100 : i32 to vector<16x16x8xi32>
      %123 = arith.cmpi sge, %51, %122 : vector<16x16x8xi32>
      %cst_101 = arith.constant 0.000000e+00 : f32
      %124 = vector.broadcast %cst_101 : f32 to vector<16x16x8xf32>
      %125 = arith.select %123, %121, %124 : vector<16x16x8xi1>, vector<16x16x8xf32>
      %126 = vector.shape_cast %125 : vector<16x16x8xf32> to vector<256x8xf32>
      %127 = arith.truncf %126 : vector<256x8xf32> to vector<256x8xbf16>
      %c2_102 = arith.constant 2 : index
      %c0_103 = arith.constant 0 : index
      %c0_104 = arith.constant 0 : index
      %c0_105 = arith.constant 0 : index
      %128 = vector.load %arg5[%c2_102, %c0_103, %c0_104, %c0_105] : memref<3x3x8x8xbf16, #tpu.memory_space<vmem>>, vector<1x1x8x8xbf16>
      %129 = vector.shape_cast %128 : vector<1x1x8x8xbf16> to vector<8x8xbf16>
      %cst_106 = arith.constant dense<0.000000e+00> : vector<256x8xf32>
      %130 = tpu.matmul %127, %129, %cst_106 {dimension_numbers = #tpu.dot_dimension_numbers<[1], [0], [0], [1], [0, 0, 1, 1], [], []>} : vector<256x8xbf16>, vector<8x8xbf16>, vector<256x8xf32> -> vector<256x8xf32>
      %c0_107 = arith.constant 0 : index
      %c0_108 = arith.constant 0 : index
      %131 = vector.load %arg14[%c0_107, %c0_108] : memref<256x8xf32, #tpu.memory_space<vmem>>, vector<256x8xf32>
      %132 = arith.addf %131, %130 : vector<256x8xf32>
      %c0_109 = arith.constant 0 : index
      %c0_110 = arith.constant 0 : index
      %133 = vector.load %arg14[%c0_109, %c0_110] : memref<256x8xf32, #tpu.memory_space<vmem>>, vector<256x8xf32>
      tpu.vector_store %arg14[%c0_109, %c0_110], %132 {strides = array<i32>} : memref<256x8xf32, #tpu.memory_space<vmem>>, vector<256x8xf32>,
      %134 = vector.shape_cast %120 : vector<16x16x8xf32> to vector<256x8xf32>
      %135 = arith.truncf %134 : vector<256x8xf32> to vector<256x8xbf16>
      %c2_111 = arith.constant 2 : index
      %c1_112 = arith.constant 1 : index
      %c0_113 = arith.constant 0 : index
      %c0_114 = arith.constant 0 : index
      %136 = vector.load %arg5[%c2_111, %c1_112, %c0_113, %c0_114] : memref<3x3x8x8xbf16, #tpu.memory_space<vmem>>, vector<1x1x8x8xbf16>
      %137 = vector.shape_cast %136 : vector<1x1x8x8xbf16> to vector<8x8xbf16>
      %cst_115 = arith.constant dense<0.000000e+00> : vector<256x8xf32>
      %138 = tpu.matmul %135, %137, %cst_115 {dimension_numbers = #tpu.dot_dimension_numbers<[1], [0], [0], [1], [0, 0, 1, 1], [], []>} : vector<256x8xbf16>, vector<8x8xbf16>, vector<256x8xf32> -> vector<256x8xf32>
      %c0_116 = arith.constant 0 : index
      %c0_117 = arith.constant 0 : index
      %139 = vector.load %arg14[%c0_116, %c0_117] : memref<256x8xf32, #tpu.memory_space<vmem>>, vector<256x8xf32>
      %140 = arith.addf %139, %138 : vector<256x8xf32>
      %c0_118 = arith.constant 0 : index
      %c0_119 = arith.constant 0 : index
      %141 = vector.load %arg14[%c0_118, %c0_119] : memref<256x8xf32, #tpu.memory_space<vmem>>, vector<256x8xf32>
      tpu.vector_store %arg14[%c0_118, %c0_119], %140 {strides = array<i32>} : memref<256x8xf32, #tpu.memory_space<vmem>>, vector<256x8xf32>,
      %c15_i32_120 = arith.constant 15 : i32
      %142 = tpu.dynamic_rotate %120 by %c15_i32_120 dim 1 : vector<16x16x8xf32>, i32 -> vector<16x16x8xf32>
      %c15_i32_121 = arith.constant 15 : i32
      %143 = vector.broadcast %c15_i32_121 : i32 to vector<16x16x8xi32>
      %144 = arith.cmpi slt, %51, %143 : vector<16x16x8xi32>
      %cst_122 = arith.constant 0.000000e+00 : f32
      %145 = vector.broadcast %cst_122 : f32 to vector<16x16x8xf32>
      %146 = arith.select %144, %142, %145 : vector<16x16x8xi1>, vector<16x16x8xf32>
      %147 = vector.shape_cast %146 : vector<16x16x8xf32> to vector<256x8xf32>
      %148 = arith.truncf %147 : vector<256x8xf32> to vector<256x8xbf16>
      %c2_123 = arith.constant 2 : index
      %c2_124 = arith.constant 2 : index
      %c0_125 = arith.constant 0 : index
      %c0_126 = arith.constant 0 : index
      %149 = vector.load %arg5[%c2_123, %c2_124, %c0_125, %c0_126] : memref<3x3x8x8xbf16, #tpu.memory_space<vmem>>, vector<1x1x8x8xbf16>
      %150 = vector.shape_cast %149 : vector<1x1x8x8xbf16> to vector<8x8xbf16>
      %cst_127 = arith.constant dense<0.000000e+00> : vector<256x8xf32>
      %151 = tpu.matmul %148, %150, %cst_127 {dimension_numbers = #tpu.dot_dimension_numbers<[1], [0], [0], [1], [0, 0, 1, 1], [], []>} : vector<256x8xbf16>, vector<8x8xbf16>, vector<256x8xf32> -> vector<256x8xf32>
      %c0_128 = arith.constant 0 : index
      %c0_129 = arith.constant 0 : index
      %152 = vector.load %arg14[%c0_128, %c0_129] : memref<256x8xf32, #tpu.memory_space<vmem>>, vector<256x8xf32>
      %153 = arith.addf %152, %151 : vector<256x8xf32>
      %c0_130 = arith.constant 0 : index
      %c0_131 = arith.constant 0 : index
      %154 = vector.load %arg14[%c0_130, %c0_131] : memref<256x8xf32, #tpu.memory_space<vmem>>, vector<256x8xf32>
      tpu.vector_store %arg14[%c0_130, %c0_131], %153 {strides = array<i32>} : memref<256x8xf32, #tpu.memory_space<vmem>>, vector<256x8xf32>,
      %c0_132 = arith.constant 0 : index
      %c0_133 = arith.constant 0 : index
      %155 = vector.load %arg14[%c0_132, %c0_133] : memref<256x8xf32, #tpu.memory_space<vmem>>, vector<256x8xf32>
      %c0_134 = arith.constant 0 : index
      %c0_135 = arith.constant 0 : index
      %156 = vector.load %arg6[%c0_134, %c0_135] : memref<1x8xf32, #tpu.memory_space<vmem>>, vector<1x8xf32>
      %157 = vector.broadcast %156 : vector<1x8xf32> to vector<256x8xf32>
      %158 = arith.mulf %155, %157 : vector<256x8xf32>
      %c0_136 = arith.constant 0 : index
      %c0_137 = arith.constant 0 : index
      %159 = vector.load %arg7[%c0_136, %c0_137] : memref<1x8xf32, #tpu.memory_space<vmem>>, vector<1x8xf32>
      %160 = vector.broadcast %159 : vector<1x8xf32> to vector<256x8xf32>
      %161 = arith.addf %158, %160 : vector<256x8xf32>
      %cst_138 = arith.constant 0.000000e+00 : f32
      %162 = vector.broadcast %cst_138 : f32 to vector<256x8xf32>
      %163 = arith.maximumf %161, %162 : vector<256x8xf32>
      %164 = arith.truncf %163 : vector<256x8xf32> to vector<256x8xbf16>
      %c0_139 = arith.constant 0 : index
      %c0_140 = arith.constant 0 : index
      %165 = vector.load %arg8[%c0_139, %c0_140] : memref<8x32xbf16, #tpu.memory_space<vmem>>, vector<8x32xbf16>
      %cst_141 = arith.constant dense<0.000000e+00> : vector<256x32xf32>
      %166 = tpu.matmul %164, %165, %cst_141 {dimension_numbers = #tpu.dot_dimension_numbers<[1], [0], [0], [1], [0, 0, 1, 1], [], []>} : vector<256x8xbf16>, vector<8x32xbf16>, vector<256x32xf32> -> vector<256x32xf32>
      %c0_142 = arith.constant 0 : index
      %c0_143 = arith.constant 0 : index
      %167 = vector.load %arg9[%c0_142, %c0_143] : memref<1x32xf32, #tpu.memory_space<vmem>>, vector<1x32xf32>
      %168 = vector.broadcast %167 : vector<1x32xf32> to vector<256x32xf32>
      %169 = arith.mulf %166, %168 : vector<256x32xf32>
      %c0_144 = arith.constant 0 : index
      %c0_145 = arith.constant 0 : index
      %170 = vector.load %arg10[%c0_144, %c0_145] : memref<1x32xf32, #tpu.memory_space<vmem>>, vector<1x32xf32>
      %171 = vector.broadcast %170 : vector<1x32xf32> to vector<256x32xf32>
      %172 = arith.addf %169, %171 : vector<256x32xf32>
      %173 = arith.addf %172, %21 : vector<256x32xf32>
      %cst_146 = arith.constant 0.000000e+00 : f32
      %174 = vector.broadcast %cst_146 : f32 to vector<256x32xf32>
      %175 = arith.maximumf %173, %174 : vector<256x32xf32>
      %176 = vector.shape_cast %175 : vector<256x32xf32> to vector<16x16x32xf32>
      %c0_147 = arith.constant 0 : index
      %c0_148 = arith.constant 0 : index
      %c0_149 = arith.constant 0 : index
      %c0_150 = arith.constant 0 : index
      %177 = vector.load %arg11[%c0_147, %c0_148, %c0_149, %c0_150] : memref<1x16x16x32xf32, #tpu.memory_space<vmem>>, vector<1x16x16x32xf32>
      %178 = vector.shape_cast %177 : vector<1x16x16x32xf32> to vector<16x16x32xf32>
      %179 = vector.shape_cast %176 : vector<16x16x32xf32> to vector<1x16x16x32xf32>
      tpu.vector_store %arg11[%c0_147, %c0_148, %c0_149, %c0_150], %179 {strides = array<i32>} : memref<1x16x16x32xf32, #tpu.memory_space<vmem>>, vector<1x16x16x32xf32>,
    } else {
    }
    %9 = arith.index_cast %0 : i32 to index
    %c0_6 = arith.constant 0 : index
    %c0_7 = arith.constant 0 : index
    %c0_8 = arith.constant 0 : index
    %10 = vector.load %arg12[%9, %c0_6, %c0_7, %c0_8] : memref<2x16x16x32xf32, #tpu.memory_space<vmem>>, vector<1x16x16x32xf32>
    %11 = vector.shape_cast %10 : vector<1x16x16x32xf32> to vector<16x16x32xf32>
    %12 = vector.shape_cast %2 : vector<16x16x32xf32> to vector<1x16x16x32xf32>
    tpu.vector_store %arg12[%9, %c0_6, %c0_7, %c0_8], %12 {strides = array<i32>} : memref<2x16x16x32xf32, #tpu.memory_space<vmem>>, vector<1x16x16x32xf32>,
    return
  }
  func.func @transform_0(%arg0: i32) -> (i32, i32, i32, i32) {
    %c7_i32 = arith.constant 7 : i32
    %0 = arith.minsi %arg0, %c7_i32 : i32
    %c0_i32 = arith.constant 0 : i32
    %c0_i32_0 = arith.constant 0 : i32
    %c0_i32_1 = arith.constant 0 : i32
    %c0_i32_2 = arith.constant 0 : i32
    return %0, %c0_i32, %c0_i32_0, %c0_i32_1 : i32, i32, i32, i32
  }
  func.func @transform_1(%arg0: i32) -> (i32, i32) {
    %c0_i32 = arith.constant 0 : i32
    %c0_i32_0 = arith.constant 0 : i32
    %c0_i32_1 = arith.constant 0 : i32
    return %c0_i32, %c0_i32_0 : i32, i32
  }
  func.func @transform_2(%arg0: i32) -> (i32, i32) {
    %c0_i32 = arith.constant 0 : i32
    %c0_i32_0 = arith.constant 0 : i32
    %c0_i32_1 = arith.constant 0 : i32
    return %c0_i32, %c0_i32_0 : i32, i32
  }
  func.func @transform_3(%arg0: i32) -> (i32, i32) {
    %c0_i32 = arith.constant 0 : i32
    %c0_i32_0 = arith.constant 0 : i32
    %c0_i32_1 = arith.constant 0 : i32
    return %c0_i32, %c0_i32_0 : i32, i32
  }
  func.func @transform_4(%arg0: i32) -> (i32, i32, i32, i32) {
    %c0_i32 = arith.constant 0 : i32
    %c0_i32_0 = arith.constant 0 : i32
    %c0_i32_1 = arith.constant 0 : i32
    %c0_i32_2 = arith.constant 0 : i32
    %c0_i32_3 = arith.constant 0 : i32
    return %c0_i32, %c0_i32_0, %c0_i32_1, %c0_i32_2 : i32, i32, i32, i32
  }
  func.func @transform_5(%arg0: i32) -> (i32, i32) {
    %c0_i32 = arith.constant 0 : i32
    %c0_i32_0 = arith.constant 0 : i32
    %c0_i32_1 = arith.constant 0 : i32
    return %c0_i32, %c0_i32_0 : i32, i32
  }
  func.func @transform_6(%arg0: i32) -> (i32, i32) {
    %c0_i32 = arith.constant 0 : i32
    %c0_i32_0 = arith.constant 0 : i32
    %c0_i32_1 = arith.constant 0 : i32
    return %c0_i32, %c0_i32_0 : i32, i32
  }
  func.func @transform_7(%arg0: i32) -> (i32, i32) {
    %c0_i32 = arith.constant 0 : i32
    %c0_i32_0 = arith.constant 0 : i32
    %c0_i32_1 = arith.constant 0 : i32
    return %c0_i32, %c0_i32_0 : i32, i32
  }
  func.func @transform_8(%arg0: i32) -> (i32, i32) {
    %c0_i32 = arith.constant 0 : i32
    %c0_i32_0 = arith.constant 0 : i32
    %c0_i32_1 = arith.constant 0 : i32
    return %c0_i32, %c0_i32_0 : i32, i32
  }
  func.func @transform_9(%arg0: i32) -> (i32, i32) {
    %c0_i32 = arith.constant 0 : i32
    %c0_i32_0 = arith.constant 0 : i32
    %c0_i32_1 = arith.constant 0 : i32
    return %c0_i32, %c0_i32_0 : i32, i32
  }
  func.func @transform_10(%arg0: i32) -> (i32, i32, i32, i32) {
    %c1_i32 = arith.constant 1 : i32
    %0 = arith.subi %arg0, %c1_i32 : i32
    %c0_i32 = arith.constant 0 : i32
    %1 = arith.maxsi %0, %c0_i32 : i32
    %c0_i32_0 = arith.constant 0 : i32
    %c0_i32_1 = arith.constant 0 : i32
    %c0_i32_2 = arith.constant 0 : i32
    %c0_i32_3 = arith.constant 0 : i32
    return %1, %c0_i32_0, %c0_i32_1, %c0_i32_2 : i32, i32, i32, i32
  }
}

</mosaic_0001>

<bundles_post_ra>
// kernel: bottleneck_forward.1
= control target key start
LH: loop header
LB: loop body
LE: loop exit
PB: predicated region body
PF: predicated region fallthrough
CT: control target
= control target key end

     0   :  { %s9310_s0 = inlined_call_operand.hbm [shape: f32[8,16,16,32], index: 0, kind: input, shape index: {}]   ;;  %s9311_s1 = inlined_call_operand.vmem [shape: bf16[32,8], index: 1, kind: input, shape index: {}]   ;;  %s9312_s2 = inlined_call_operand.vmem [shape: f32[1,8], index: 2, kind: input, shape index: {}]   ;;  %s9313_s3 = inlined_call_operand.vmem [shape: f32[1,8], index: 3, kind: input, shape index: {}]   ;;  %s9314_s4 = inlined_call_operand.vmem [shape: bf16[3,3,8,8], index: 4, kind: input, shape index: {}]   ;;  %s9315_s5 = inlined_call_operand.vmem [shape: f32[1,8], index: 5, kind: input, shape index: {}]   ;;  %s9316_s6 = inlined_call_operand.vmem [shape: f32[1,8], index: 6, kind: input, shape index: {}]   ;;  %s9317_s7 = inlined_call_operand.vmem [shape: bf16[8,32], index: 7, kind: input, shape index: {}]   ;;  %s9318_s8 = inlined_call_operand.vmem [shape: f32[1,32], index: 8, kind: input, shape index: {}]   ;;  %s9319_s9 = inlined_call_operand.vmem [shape: f32[1,32], index: 9, kind: input, shape index: {}]   ;;  %s9320_s10 = inlined_call_operand.hbm [shape: f32[8,16,16,32], index: 10, kind: output, shape index: {}]  }
   0x1   :  { %9380 = sst [smem:[#allocation61_spill]] %s9316_s6 }
   0x2   :  { %9381 = sst [smem:[#allocation62_spill]] %s9318_s8 }
   0x3   :  { %9382 = sst [smem:[#allocation63_spill]] %s9319_s9 }
   0x4   :  { %9383 = sst [smem:[#allocation64_spill]] %s9320_s10 }
   0x5   :  { %15 = vsyncpa [#allocation6], 0 }
   0x6   :  { %17 = vsyncpa [#allocation6 + $0x1], 0 }
   0x7   :  { %18 = vsyncpa [#allocation7], 0 }
   0x8   :  { %20 = vsyncpa [#allocation7 + $0x1], 0  ;;  %s6475_s13 = smov 0   ;;  %s6477_s14 = smov 0  }
   0x9   :  { %s6479_s15 = smov 0   ;;  %s6481_s16 = smov 0  }
   0xa   :  { %s6483_s17 = smov 0   ;;  %s6485_s18 = smov 0  }
   0xb   :  { %s6487_s19 = smov 0  }
   0xc LB: > { %s6509_s20 = sadd.s32 4294967295, %s6411_s19   ;;  %s5278_s21 = sadd.s32 4294967294, %s6411_s19   ;;  %s6411_s19 = sphi %s6487_s19, %s9509_s19   ;;  %s6407_s18 = sphi %s6485_s18, %s9516_s18   ;;  %s6403_s17 = sphi %s6483_s17, %s9515_s17   ;;  %s6399_s16 = sphi %s6481_s16, %s9514_s16   ;;  %s6395_s15 = sphi %s6479_s15, %s9513_s15   ;;  %s6391_s14 = sphi %s6477_s14, %s9512_s14   ;;  %s6387_s13 = sphi %s6475_s13, %s9511_s13  }
   0xd   : > { %s6513_s22 = sadd.s32 1, %s6411_s19   ;;  %p30_p0 = scmp.lt.s32.totalorder %s6411_s19, 7 }
   0xe   : > { %9384 = sst [smem:[#allocation11_spill]] %s6513_s22  ;;  %p32_p1 = scmp.lt.s32.totalorder %s6513_s22, 7 }
   0xf   : > { %s37_s23 = sadd.s32 1, %s6407_s18  ;;  %p44_p2 = scmp.ne.s32.totalorder %s6407_s18, %s6403_s17 }
  0x10   : > { %s6519_s24 = scalar_select %p30_p0, %s6411_s19, 7 }
  0x11   : > { %s33_s25 = scalar_select %p32_p1, %s6513_s22, 7 }
  0x12   : > { %p45_p3 = scmp.eq.s32.totalorder %s6411_s19, 0  ;;  %p50_p4 = scmp.ne.s32.totalorder %s6403_s17, %s6399_s16 }
  0x13   : > { %s34_s26 = ssub.s32 %s6519_s24, %s33_s25  ;;  %p51_p7 = scmp.eq.s32.totalorder %s6509_s20, 0 }
  0x14   : > { %p35_p5 = scmp.eq.s32.totalorder %s34_s26, 0  ;;  %p6527_p6 = por %p45_p3, %p44_p2 }
  0x15   : > { %p250_p8 = scmp.gt.s32.totalorder %s6509_s20, 0  ;;  %p6536_p9 = por %p51_p7, %p50_p4 }
  0x16   : > { %s6534_s28 = scalar_select %p35_p5, %s6407_s18, %s37_s23  }
  0x17   : > { %s9387_s29 = scalar_select %p6536_p9, 1, 0 }
  0x18   : > { %9386 = sst [smem:[#allocation12_spill]] %s6534_s28  ;;  %s5280_s30 = sadd.s32 4294967295, %s6513_s22 }
  0x19   : > { %s251_s11 = scalar_select %p250_p8, %s6509_s20, 0 }
  0x1a   : > { %p253_p10 = scmp.gt.s32.totalorder %s5280_s30, 0  ;;  %s258_s12 = sadd.s32 1, %s6395_s15 }
  0x1b   : > { %p268_p11 = scmp.ne.s32.totalorder %s6395_s15, %s6391_s14  ;;  %p269_p12 = scmp.eq.s32.totalorder %s6509_s20, 8 }
  0x1c   : > { %s9518_s30 = smov (!%p253_p10, %s5280_s30), 0  ;;  %p274_p0 = scmp.ne.s32.totalorder %s6391_s14, %s6387_s13 }
  0x1d   : > { %p6546_p13 = por %p269_p12, %p268_p11  ;;  %s255_s23 = ssub.s32 %s251_s11, %s9518_s30 }
  0x1e   : > { %p275_p1 = scmp.eq.s32.totalorder %s5278_s21, 8  ;;  %p256_p2 = scmp.eq.s32.totalorder %s255_s23, 0 }
  0x1f   : > { %s9388_s16 = scalar_select %p6546_p13, 1, 0 }
  0x20   : > { %p6552_p3 = por %p275_p1, %p274_p0  ;;  %p6086_p4 = scmp.lt.s32.totalorder %s6411_s19, 9 }
  0x21   : > { %s6558_s26 = scalar_select %p256_p2, %s6395_s15, %s258_s12  }
  0x22   : > { %s9389_s25 = scalar_select %p6552_p3, 1, 0 }
  0x23   : > { %s322_s28 = sand.u32 1, %s6407_s18   ;;  %s5495_s22 = sshll.u32 %s6519_s24, 12 }
  0x24   : > { %s5283_s10 = sshll.u32 %s322_s28, 8  ;;  %s6565_s6 = scalar_lea.hbm %s9310_s0, %s5495_s22 }
  0x25   : > { %s326_s21 = scalar_lea.vmem [#allocation5], %s5283_s10  ;;  %p6569_p5 = pnand %p6086_p4, %p6527_p6 }
  0x26   : > { %s335_s30 = sshll.u32 %s326_s21, 4  ;;  %s6575_s24 = scalar_lea.sflag [#allocation6], %s322_s28  ;;  %s6573_s30 = int_to_ptr.vmem [resolvable:$true] %s335_s30 }
  0x27   : > { %s6295_s12 = scalar_lea.hbm %s6565_s6, 4096  ;;  %p6297_p8 = pneg %p6569_p5 }
  0x28   : > { %p6296_p7 = scmp.ne.s32.totalorder %s6565_s6, %s6295_s12  ;;  %s6300_s10 = scalar_lea.hbm %s9310_s0, 32768 }
  0x29   : > { %p6301_p6 = scmp.lt.s32.totalorder %s6565_s6, %s9310_s0  ;;  %p6302_p12 = scmp.lt.s32.totalorder %s6300_s10, %s6295_s12 }
  0x2a   : > { %p6298_p10 = pnand %p6297_p8, %p6296_p7 }
  0x2b   : > { %p6303_p0 = por %p6302_p12, %p6301_p6 }
  0x2c   : > { %p6299_p11 = pneg %p6298_p10 }
  0x2e   : > { %p6304_p1 = pnand %p6303_p0, %p6299_p11 }
  0x30   : > { %6307 = shalt.err (!%p6304_p1)
}
  0x31   : > { %s6308_s28 = scalar_lea.vmem %s6573_s30, 4096  ;;  %s6413_s23 = smov [#allocation5]  }
  0x32   : > { %p6309_p2 = scmp.ne.s32.totalorder %s6573_s30, %s6308_s28  ;;  %s6313_s21 = sshll.u32 %s6413_s23, 4  ;;  %s6314_s21 = int_to_ptr.vmem [resolvable:$false] %s6313_s21 }
  0x33   : > { %s6315_s8 = scalar_lea.vmem %s6314_s21, 8192  ;;  %p6316_p10 = scmp.lt.s32.totalorder %s6573_s30, %s6314_s21 }
  0x34   : > { %p6311_p4 = pnand %p6309_p2, %p6297_p8  ;;  %p6317_p3 = scmp.lt.s32.totalorder %s6315_s8, %s6308_s28 }
  0x36   : > { %p6312_p7 = pneg %p6311_p4  ;;  %p6318_p13 = por %p6317_p3, %p6316_p10 }
  0x38   : > { %p6319_p9 = pnand %p6318_p13, %p6312_p7 }
  0x3a   : > { %6322 = shalt.err (!%p6319_p9)
}
  0x3b   : > { %s6414_s12 = smov 128   ;;  %s6415_s9 = smov 8  }
  0x3c   : > { %6081 = dma.hbm_to_vmem [thread:$0]  (!%p6569_p5), %s6565_s6, 4096, %s6573_s30, %s6575_s24, %s6414_s12, %s6414_s12, %s6415_s9  }
  0x3d   : > { %p5286_p8 = scmp.ge.s32.totalorder %s6411_s19, 1  ;;  %p343_p11 = scmp.lt.s32.totalorder %s6411_s19, 10 }
  0x3f   : > { %p344_p6 = pnand %p5286_p8, %p343_p11 }
  0x41   : > { %347 = sbr.rel (%p344_p6) target bundleno = 1120 (0x460), region = 60 }
  0x46   : > { %s349_s10 = sand.u32 1, %s6403_s17   ;;  %p9391_p9 = scmp.ne.s32.totalorder %s9387_s29, 0 }
  0x47   : > { %s5287_s22 = sshll.u32 %s349_s10, 8  ;;  %s350_s27 = scalar_lea.sflag [#allocation6], %s349_s10 }
  0x48   : > { %s6599_s28 = scalar_lea.vmem [#allocation5], %s5287_s22 }
  0x49   : > { %6378 = dma.done.wait (%p9391_p9), %s350_s27, 4096  }
  0x4a   : > { %6380 = vsyncadd (%p9391_p9), %s350_s27, 4294963200  ;;  %s387_s6 = sand.u32 1, %s6391_s14   ;;  %p396_p13 = scmp.lt.s32.totalorder %s6509_s20, 0  ;;  %v6616_v0 = vld [vmem:[%s6599_s28] sm:$0xff]  ;;  %v6619_v1 = vld [vmem:[%s6599_s28 + $0x8] sm:$0xff] }
  0x4b   : > { %s6609_s29 = sshll.u32 %s387_s6, 8  ;;  %s397_s30 = ssub.s32 0, %s6509_s20  ;;  %9392 = vst [vmem:[#allocation13_spill] sm:$0xff] %v6616_v0  ;;  %9393 = vst [vmem:[#allocation14_spill] sm:$0xff] %v6619_v1  ;;  %v6622_v2 = vld [vmem:[%s6599_s28 + $0x10] sm:$0xff]  ;;  %v6625_v3 = vld [vmem:[%s6599_s28 + $0x18] sm:$0xff] }
  0x4c   : > { %s5289_s11 = smin.u32 %s6509_s20, %s397_s30  ;;  %9394 = vst [vmem:[#allocation15_spill] sm:$0xff] %v6622_v2  ;;  %9395 = vst [vmem:[#allocation16_spill] sm:$0xff] %v6625_v3  ;;  %v6628_v4 = vld [vmem:[%s6599_s28 + $0x20] sm:$0xff]  ;;  %v6631_v5 = vld [vmem:[%s6599_s28 + $0x28] sm:$0xff]  ;;  %s6712_s21 = scalar_lea.vmem [#allocation8], %s6609_s29 }
  0x4d   : > { %s399_s24 = sand.u32 1, %s5289_s11   ;;  %9396 = vst [vmem:[#allocation17_spill] sm:$0xff] %v6628_v4  ;;  %9397 = vst [vmem:[#allocation18_spill] sm:$0xff] %v6631_v5  ;;  %v6634_v6 = vld [vmem:[%s6599_s28 + $0x30] sm:$0xff]  ;;  %v6637_v7 = vld [vmem:[%s6599_s28 + $0x38] sm:$0xff]  ;;  %p5290_p3 = scmp.ne.s32.totalorder %s6509_s20, 0 }
  0x4e   : > { %s400_s23 = ssub.s32 0, %s399_s24  ;;  %9398 = vst [vmem:[#allocation19_spill] sm:$0xff] %v6634_v6  ;;  %9399 = vst [vmem:[#allocation20_spill] sm:$0xff] %v6637_v7  ;;  %v6640_v8 = vld [vmem:[%s6599_s28 + $0x40] sm:$0xff]  ;;  %v6643_v9 = vld [vmem:[%s6599_s28 + $0x48] sm:$0xff] }
  0x4f   : > { %s9520_s23 = smov (!%p396_p13, %s400_s23), %s399_s24  ;;  %9400 = vst [vmem:[#allocation21_spill] sm:$0xff] %v6640_v8  ;;  %9401 = vst [vmem:[#allocation22_spill] sm:$0xff] %v6643_v9  ;;  %v6646_v10 = vld [vmem:[%s6599_s28 + $0x50] sm:$0xff]  ;;  %v6649_v11 = vld [vmem:[%s6599_s28 + $0x58] sm:$0xff] }
  0x50   : > { %9402 = vst [vmem:[#allocation23_spill] sm:$0xff] %v6646_v10  ;;  %9403 = vst [vmem:[#allocation24_spill] sm:$0xff] %v6649_v11  ;;  %v6652_v12 = vld [vmem:[%s6599_s28 + $0x60] sm:$0xff]  ;;  %v6655_v13 = vld [vmem:[%s6599_s28 + $0x68] sm:$0xff] }
  0x51   : > { %9404 = vst [vmem:[#allocation25_spill] sm:$0xff] %v6652_v12  ;;  %9405 = vst [vmem:[#allocation26_spill] sm:$0xff] %v6655_v13  ;;  %v6658_v14 = vld [vmem:[%s6599_s28 + $0x70] sm:$0xff]  ;;  %v6661_v15 = vld [vmem:[%s6599_s28 + $0x78] sm:$0xff] }
  0x52   : > { %9406 = vst [vmem:[#allocation27_spill] sm:$0xff] %v6658_v14  ;;  %9407 = vst [vmem:[#allocation28_spill] sm:$0xff] %v6661_v15  ;;  %v6664_v16 = vld [vmem:[%s6599_s28 + $0x80] sm:$0xff]  ;;  %v6667_v17 = vld [vmem:[%s6599_s28 + $0x88] sm:$0xff] }
  0x53   : > { %9408 = vst [vmem:[#allocation29_spill] sm:$0xff] %v6664_v16  ;;  %9409 = vst [vmem:[#allocation30_spill] sm:$0xff] %v6667_v17  ;;  %v6670_v18 = vld [vmem:[%s6599_s28 + $0x90] sm:$0xff]  ;;  %v6673_v19 = vld [vmem:[%s6599_s28 + $0x98] sm:$0xff] }
  0x54   : > { %9410 = vst [vmem:[#allocation31_spill] sm:$0xff] %v6670_v18  ;;  %9411 = vst [vmem:[#allocation32_spill] sm:$0xff] %v6673_v19  ;;  %v6676_v20 = vld [vmem:[%s6599_s28 + $0xa0] sm:$0xff]  ;;  %v6679_v21 = vld [vmem:[%s6599_s28 + $0xa8] sm:$0xff] }
  0x55   : > { %9412 = vst [vmem:[#allocation33_spill] sm:$0xff] %v6676_v20  ;;  %9413 = vst [vmem:[#allocation34_spill] sm:$0xff] %v6679_v21  ;;  %v6682_v22 = vld [vmem:[%s6599_s28 + $0xb0] sm:$0xff]  ;;  %v6685_v23 = vld [vmem:[%s6599_s28 + $0xb8] sm:$0xff] }
  0x56   : > { %9414 = vst [vmem:[#allocation35_spill] sm:$0xff] %v6682_v22  ;;  %9415 = vst [vmem:[#allocation36_spill] sm:$0xff] %v6685_v23  ;;  %v6688_v24 = vld [vmem:[%s6599_s28 + $0xc0] sm:$0xff]  ;;  %v6691_v25 = vld [vmem:[%s6599_s28 + $0xc8] sm:$0xff]  ;;  %437 = sbr.rel (%p5290_p3) target bundleno = 94 (0x5e), region = 68 }
  0x57   : > { %9416 = vst [vmem:[#allocation37_spill] sm:$0xff] %v6688_v24  ;;  %9417 = vst [vmem:[#allocation38_spill] sm:$0xff] %v6691_v25  ;;  %v6694_v26 = vld [vmem:[%s6599_s28 + $0xd0] sm:$0xff]  ;;  %v6697_v27 = vld [vmem:[%s6599_s28 + $0xd8] sm:$0xff] }
  0x58   : > { %9418 = vst [vmem:[#allocation39_spill] sm:$0xff] %v6694_v26  ;;  %9419 = vst [vmem:[#allocation40_spill] sm:$0xff] %v6697_v27  ;;  %v6700_v28 = vld [vmem:[%s6599_s28 + $0xe0] sm:$0xff]  ;;  %v6703_v29 = vld [vmem:[%s6599_s28 + $0xe8] sm:$0xff] }
  0x59   : > { %9420 = vst [vmem:[#allocation41_spill] sm:$0xff] %v6700_v28  ;;  %9421 = vst [vmem:[#allocation42_spill] sm:$0xff] %v6703_v29  ;;  %v6706_v30 = vld [vmem:[%s6599_s28 + $0xf0] sm:$0xff]  ;;  %v6709_v31 = vld [vmem:[%s6599_s28 + $0xf8] sm:$0xff] }
  0x5a   : > { %9422 = vst [vmem:[#allocation43_spill] sm:$0xff] %v6706_v30  ;;  %9423 = vst [vmem:[#allocation44_spill] sm:$0xff] %v6709_v31 }
  0x5b   : > { %vm438_vm0 = vcmask 64512   ;;  %v6416_v32 = vmov 0.0  }
  0x5c   : > { %439 = vst.msk [vmem:[#allocation3] sm:$0xff] %vm438_vm0, %v6416_v32  ;;  %440 = vst.msk [vmem:[#allocation3 + $0x8] sm:$0xff] %vm438_vm0, %v6416_v32 }
  0x5d   : > { %442 = vst.msk [vmem:[#allocation3 + $0x110] sm:$0xff] %vm438_vm0, %v6416_v32  ;;  %443 = vst.msk [vmem:[#allocation3 + $0x118] sm:$0xff] %vm438_vm0, %v6416_v32 }
  0x5e PF: > { %p5291_p5 = scmp.le.s32.totalorder %s6509_s20, 0 }
  0x60   : > { %447 = sbr.rel (%p5291_p5) target bundleno = 1089 (0x441), region = 72 }
  0x65   : > { %v6149_v33 = vld [vmem:[%s9311_s1 + $0x8] sm:$0xff]   ;;  %s5292_s9 = sadd.s32 4294967295, %s6509_s20  ;;  %v6150_v34 = vld [vmem:[%s9311_s1] sm:$0xff]   ;;  %s457_s11 = ssub.s32 1, %s9520_s23  ;;  %v526_v35 = vlaneseq  ;;  %vm696_vm4 = vcmask 261120   ;;  %vm1249_vm6 = vcmask 1043456  }
  0x66   : > { %5685 = vmatprep.subr.bf16.mxu0 %v6149_v33  ;;  %p449_p12 = scmp.lt.s32.totalorder %s5292_s9, 0  ;;  %s450_s27 = ssub.s32 0, %s5292_s9  ;;  %vm1017_vm8 = vcmask 64512  }
  0x67   : > { %5686 = vmatpush3.bf16.msra.mxu0 %v6149_v33  ;;  %s5293_s28 = smin.u32 %s5292_s9, %s450_s27  ;;  %s5294_s24 = sshll.u32 %s457_s11, 8  ;;  %v6726_v36 = vand.u32 127, %v526_v35  ;;  %v7077_v38 = vshrl.u32 %v526_v35, 7 }
  0x68   : > { %5687 = vmatprep.subr.bf16.mxu0 %v6150_v34  ;;  %s452_s29 = sand.u32 3, %s5293_s28   ;;  %s5295_s8 = sshll.u32 %s9520_s23, 8 }
  0x69   : > { %s453_s30 = ssub.s32 0, %s452_s29  ;;  %s6732_s9 = scalar_lea.vmem [#allocation2], %s5294_s24  ;;  %vm564_vm2 = vcmp.lt.s32.totalorder %v6726_v36, 20  ;;  %vm528_vm3 = vcmp.lt.s32.totalorder %v6726_v36, 10  ;;  %vm1117_vm5 = vcmp.lt.s32.totalorder %v7077_v38, 1  ;;  %vm1150_vm7 = vcmp.ge.s32.totalorder %v7077_v38, 1 }
  0x6a   : > { %s9522_s30 = smov (!%p449_p12, %s453_s30), %s452_s29  ;;  %v460_v39 = vld [vmem:[%s6732_s9] sm:$0xff]  ;;  %v461_v40 = vld [vmem:[%s6732_s9 + $0x8] sm:$0xff]  ;;  %s6746_s22 = scalar_lea.vmem [#allocation2], %s5295_s8  ;;  %v462_v44 = vld [vmem:[%s6732_s9 + $0x10] sm:$0xff]  ;;  %vm1804_vm9 = vcmp.lt.s32.totalorder %v7077_v38, 7 }
  0x6b   : > { %5688 = vmatpush3.bf16.msra.mxu0 %v6150_v34  ;;  %p455_p0 = scmp.lt.s32.totalorder %s9522_s30, 3  ;;  %p456_p1 = scmp.gt.s32.totalorder %s9522_s30, 0  ;;  %v463_v47 = vld [vmem:[%s6732_s9 + $0x18] sm:$0xff]  ;;  %v464_v59 = vld [vmem:[%s6732_s9 + $0x20] sm:$0xff]  ;;  %v465_v61 = vld [vmem:[%s6732_s9 + $0x28] sm:$0xff] }
  0x6c   : > { %v466_v34 = vld [vmem:[%s6732_s9 + $0x30] sm:$0xff]  ;;  %s9472_s28 = sld [smem:[#allocation62_spill]] }
  0x6d   : > { %s529_s12 = scalar_select %p455_p0, 1, 0 }
  0x6e   : > { %s6736_s10 = scalar_select %p456_p1, 255, 0 }
  0x6f   : > { %v530_v37 = vstv %s529_s12  ;;  %s9473_s11 = sld [smem:[#allocation63_spill]] }
  0x70   : > { %vm6728_vm1 = vcmp.eq.s32.totalorder %v530_v37, 1  ;;  %v6153_v43 = vld [vmem:[%s6746_s22] sm:%s6736_s10]  ;;  %v6156_v45 = vld [vmem:[%s6746_s22 + $0x8] sm:%s6736_s10] }
  0x71   : > { %v532_v41 = vsel %vm6728_vm1, %v6616_v0, 0.0  ;;  %v533_v42 = vsel %vm6728_vm1, %v6619_v1, 0.0  ;;  %v600_v46 = vsel %vm564_vm2, %v6153_v43, %v460_v39  ;;  %v534_v48 = vsel %vm6728_vm1, %v6622_v2, 0.0  ;;  %v6159_v52 = vld [vmem:[%s6746_s22 + $0x10] sm:%s6736_s10]  ;;  %v6162_v54 = vld [vmem:[%s6746_s22 + $0x18] sm:%s6736_s10] }
  0x72   : > { %v601_v49 = vsel %vm564_vm2, %v6156_v45, %v461_v40  ;;  %v632_v50 = vsel %vm528_vm3, %v532_v41, %v600_v46  ;;  %v535_v51 = vsel %vm6728_vm1, %v6625_v3, 0.0  ;;  %v602_v55 = vsel %vm564_vm2, %v6159_v52, %v462_v44  ;;  %v6165_v33 = vld [vmem:[%s6746_s22 + $0x20] sm:%s6736_s10]  ;;  %v6168_v37 = vld [vmem:[%s6746_s22 + $0x28] sm:%s6736_s10] }
  0x73   : > { %v633_v53 = vsel %vm528_vm3, %v533_v42, %v601_v49  ;;  %v603_v57 = vsel %vm564_vm2, %v6162_v54, %v463_v47  ;;  %v634_v58 = vsel %vm528_vm3, %v534_v48, %v602_v55  ;;  %v536_v62 = vsel %vm6728_vm1, %v6628_v4, 0.0  ;;  %v467_v40 = vld [vmem:[%s6732_s9 + $0x38] sm:$0xff]  ;;  %v6171_v45 = vld [vmem:[%s6746_s22 + $0x30] sm:%s6736_s10]  ;;  %v468_v52 = vld [vmem:[%s6732_s9 + $0x40] sm:$0xff] }
  0x74   : > { %v664_v56 = vpack.c.bf16 %v633_v53, %v632_v50  ;;  %v635_v60 = vsel %vm528_vm3, %v535_v51, %v603_v57  ;;  %v537_v32 = vsel %vm6728_vm1, %v6631_v5, 0.0  ;;  %v604_v39 = vsel %vm564_vm2, %v6165_v33, %v464_v59  ;;  %v6174_v47 = vld [vmem:[%s6746_s22 + $0x38] sm:%s6736_s10]  ;;  %v469_v54 = vld [vmem:[%s6732_s9 + $0x48] sm:$0xff]  ;;  %v470_v59 = vld [vmem:[%s6732_s9 + $0x50] sm:$0xff] }
  0x75   : > { %v665_v63 = vpack.c.bf16 %v635_v60, %v634_v58  ;;  %v538_v41 = vsel %vm6728_vm1, %v6634_v6, 0.0  ;;  %v605_v42 = vsel %vm564_vm2, %v6168_v37, %v465_v61  ;;  %v636_v43 = vsel %vm528_vm3, %v536_v62, %v604_v39  ;;  %v6177_v58 = vld [vmem:[%s6746_s22 + $0x40] sm:%s6736_s10]  ;;  %v6180_v60 = vld [vmem:[%s6746_s22 + $0x48] sm:%s6736_s10] }
  0x76   : > { %5689 = vmatprep.mubr.msk.bf16.mxu0 %vm696_vm4, %v664_v56  ;;  %v539_v44 = vsel %vm6728_vm1, %v6637_v7, 0.0  ;;  %v637_v46 = vsel %vm528_vm3, %v537_v32, %v605_v42  ;;  %v606_v48 = vsel %vm564_vm2, %v6171_v45, %v466_v34  ;;  %v607_v50 = vsel %vm564_vm2, %v6174_v47, %v467_v40  ;;  %v471_v62 = vld [vmem:[%s6732_s9 + $0x58] sm:$0xff]  ;;  %v6183_v37 = vld [vmem:[%s6746_s22 + $0x50] sm:%s6736_s10]  ;;  %v473_v47 = vld [vmem:[%s6732_s9 + $0x68] sm:$0xff] }
  0x77   : > { %5690 = vmatmul.mubr.msk.bf16.vlgmr.msra.gmra.mxu0 %vm696_vm4, %v665_v63  ;;  %v666_v49 = vpack.c.bf16 %v637_v46, %v636_v43  ;;  %v638_v51 = vsel %vm528_vm3, %v538_v41, %v606_v48  ;;  %v639_v53 = vsel %vm528_vm3, %v539_v44, %v607_v50  ;;  %v540_v55 = vsel %vm6728_vm1, %v6640_v8, 0.0  ;;  %v6186_v40 = vld [vmem:[%s6746_s22 + $0x58] sm:%s6736_s10]  ;;  %v472_v44 = vld [vmem:[%s6732_s9 + $0x60] sm:$0xff] }
  0x78   : > { %v667_v56 = vpack.c.bf16 %v639_v53, %v638_v51  ;;  %v541_v57 = vsel %vm6728_vm1, %v6643_v9, 0.0  ;;  %v608_v61 = vsel %vm564_vm2, %v6177_v58, %v468_v52  ;;  %v609_v63 = vsel %vm564_vm2, %v6180_v60, %v469_v54  ;;  %v6189_v50 = vld [vmem:[%s6746_s22 + $0x60] sm:%s6736_s10]  ;;  %v6192_v51 = vld [vmem:[%s6746_s22 + $0x68] sm:%s6736_s10] }
  0x79   : > { %5693 = vmatprep.mubr.msk.bf16.mxu0 %vm696_vm4, %v666_v49  ;;  %v640_v32 = vsel %vm528_vm3, %v540_v55, %v608_v61  ;;  %v542_v33 = vsel %vm6728_vm1, %v6646_v10, 0.0  ;;  %v543_v34 = vsel %vm6728_vm1, %v6649_v11, 0.0  ;;  %v641_v39 = vsel %vm528_vm3, %v541_v57, %v609_v63  ;;  %v474_v53 = vld [vmem:[%s6732_s9 + $0x70] sm:$0xff]  ;;  %v475_v54 = vld [vmem:[%s6732_s9 + $0x78] sm:$0xff] }
  0x7a   : > { %v610_v41 = vsel %vm564_vm2, %v6183_v37, %v470_v59  ;;  %v668_v42 = vpack.c.bf16 %v641_v39, %v640_v32  ;;  %v611_v43 = vsel %vm564_vm2, %v6186_v40, %v471_v62  ;;  %v544_v48 = vsel %vm6728_vm1, %v6652_v12, 0.0  ;;  %v6195_v58 = vld [vmem:[%s6746_s22 + $0x70] sm:%s6736_s10]  ;;  %v6198_v61 = vld [vmem:[%s6746_s22 + $0x78] sm:%s6736_s10] }
  0x7b   : > { %v642_v45 = vsel %vm528_vm3, %v542_v33, %v610_v41  ;;  %v643_v46 = vsel %vm528_vm3, %v543_v34, %v611_v43  ;;  %v545_v49 = vsel %vm6728_vm1, %v6655_v13, 0.0  ;;  %v612_v52 = vsel %vm564_vm2, %v6189_v50, %v472_v44  ;;  %v476_v34 = vld [vmem:[%s6732_s9 + $0x80] sm:$0xff]  ;;  %v477_v37 = vld [vmem:[%s6732_s9 + $0x88] sm:$0xff] }
  0x7c   : > { %v669_v55 = vpack.c.bf16 %v643_v46, %v642_v45  ;;  %v644_v57 = vsel %vm528_vm3, %v544_v48, %v612_v52  ;;  %v546_v60 = vsel %vm6728_vm1, %v6658_v14, 0.0  ;;  %v547_v63 = vsel %vm6728_vm1, %v6661_v15, 0.0  ;;  %v6201_v41 = vld [vmem:[%s6746_s22 + $0x80] sm:%s6736_s10]  ;;  %v6204_v44 = vld [vmem:[%s6746_s22 + $0x88] sm:%s6736_s10] }
  0x7d   : > { %v614_v32 = vsel %vm564_vm2, %v6195_v58, %v474_v53  ;;  %v615_v33 = vsel %vm564_vm2, %v6198_v61, %v475_v54  ;;  %v548_v39 = vsel %vm6728_vm1, %v6664_v16, 0.0  ;;  %v549_v40 = vsel %vm6728_vm1, %v6667_v17, 0.0  ;;  %v478_v48 = vld [vmem:[%s6732_s9 + $0x90] sm:$0xff]  ;;  %v6210_v52 = vld [vmem:[%s6746_s22 + $0x98] sm:%s6736_s10]  ;;  %v480_v54 = vld [vmem:[%s6732_s9 + $0xa0] sm:$0xff] }
  0x7e   : > { %v647_v43 = vsel %vm528_vm3, %v547_v63, %v615_v33  ;;  %v616_v45 = vsel %vm564_vm2, %v6201_v41, %v476_v34  ;;  %v617_v46 = vsel %vm564_vm2, %v6204_v44, %v477_v37  ;;  %v551_v58 = vsel %vm6728_vm1, %v6673_v19, 0.0  ;;  %v6213_v61 = vld [vmem:[%s6746_s22 + $0xa0] sm:%s6736_s10]  ;;  %v6219_v44 = vld [vmem:[%s6746_s22 + $0xb0] sm:%s6736_s10] }
  0x7f   : > { %5694 = vmatmul.mubr.msk.bf16.gmra.mxu0 %vm696_vm4, %v667_v56  ;;  %v613_v56 = vsel %vm564_vm2, %v6192_v51, %v473_v47  ;;  %v648_v47 = vsel %vm528_vm3, %v548_v39, %v616_v45  ;;  %v649_v50 = vsel %vm528_vm3, %v549_v40, %v617_v46  ;;  %v6207_v51 = vld [vmem:[%s6746_s22 + $0x90] sm:%s6736_s10]  ;;  %v553_v63 = vsel %vm6728_vm1, %v6679_v21, 0.0  ;;  %v6222_v45 = vld [vmem:[%s6746_s22 + $0xb8] sm:%s6736_s10] }
  0x80   : > { %5697 = vmatprep.mubr.msk.bf16.mxu0 %vm696_vm4, %v668_v42  ;;  %v645_v59 = vsel %vm528_vm3, %v545_v49, %v613_v56  ;;  %v646_v42 = vsel %vm528_vm3, %v546_v60, %v614_v32  ;;  %v479_v49 = vld [vmem:[%s6732_s9 + $0x98] sm:$0xff]  ;;  %v481_v56 = vld [vmem:[%s6732_s9 + $0xa8] sm:$0xff]  ;;  %v620_v33 = vsel %vm564_vm2, %v6213_v61, %v480_v54 }
  0x81   : > { %v670_v62 = vpack.c.bf16 %v645_v59, %v644_v57  ;;  %v671_v53 = vpack.c.bf16 %v647_v43, %v646_v42  ;;  %v550_v57 = vsel %vm6728_vm1, %v6670_v18, 0.0  ;;  %v618_v59 = vsel %vm564_vm2, %v6207_v51, %v478_v48  ;;  %v6216_v32 = vld [vmem:[%s6746_s22 + $0xa8] sm:%s6736_s10]  ;;  %v482_v42 = vld [vmem:[%s6732_s9 + $0xb0] sm:$0xff]  ;;  %v483_v43 = vld [vmem:[%s6732_s9 + $0xb8] sm:$0xff] }
  0x82   : > { %v619_v60 = vsel %vm564_vm2, %v6210_v52, %v479_v49  ;;  %v621_v34 = vsel %vm564_vm2, %v6216_v32, %v481_v56  ;;  %v650_v37 = vsel %vm528_vm3, %v550_v57, %v618_v59  ;;  %v485_v48 = vld [vmem:[%s6732_s9 + $0xc8] sm:$0xff]  ;;  %v6225_v49 = vld [vmem:[%s6746_s22 + $0xc0] sm:%s6736_s10]  ;;  %v554_v52 = vsel %vm6728_vm1, %v6682_v22, 0.0 }
  0x83   : > { %v651_v39 = vsel %vm528_vm3, %v551_v58, %v619_v60  ;;  %v653_v41 = vsel %vm528_vm3, %v553_v63, %v621_v34  ;;  %v6228_v51 = vld [vmem:[%s6746_s22 + $0xc8] sm:%s6736_s10]  ;;  %v622_v54 = vsel %vm564_vm2, %v6219_v44, %v482_v42  ;;  %v556_v56 = vsel %vm6728_vm1, %v6688_v24, 0.0  ;;  %v488_v34 = vld [vmem:[%s6732_s9 + $0xe0] sm:$0xff] }
  0x84   : > { %v673_v46 = vpack.c.bf16 %v651_v39, %v650_v37  ;;  %v557_v57 = vsel %vm6728_vm1, %v6691_v25, 0.0  ;;  %v625_v59 = vsel %vm564_vm2, %v6228_v51, %v485_v48  ;;  %v654_v60 = vsel %vm528_vm3, %v554_v52, %v622_v54  ;;  %v489_v37 = vld [vmem:[%s6732_s9 + $0xe8] sm:$0xff]  ;;  %v6231_v39 = vld [vmem:[%s6746_s22 + $0xd0] sm:%s6736_s10] }
  0x85   : > { %v657_v32 = vsel %vm528_vm3, %v557_v57, %v625_v59  ;;  %v6237_v42 = vld [vmem:[%s6746_s22 + $0xe0] sm:%s6736_s10]  ;;  %v490_v57 = vld [vmem:[%s6732_s9 + $0xf0] sm:$0xff] }
  0x86   : > { %v628_v51 = vsel %vm564_vm2, %v6237_v42, %v488_v34  ;;  %v6243_v59 = vld [vmem:[%s6746_s22 + $0xf0] sm:%s6736_s10]  ;;  %v7083_v42 = vld [vmem:[#allocation3] sm:$0xff] }
  0x87   : > { %5698 = vmatmul.mubr.msk.bf16.gmra.mxu0 %vm696_vm4, %v669_v55  ;;  %v672_v55 = vpack.c.bf16 %v649_v50, %v648_v47  ;;  %v484_v47 = vld [vmem:[%s6732_s9 + $0xc0] sm:$0xff]  ;;  %v1085_v35 = vrot.slane %v7083_v42, 7 }
  0x88   : > { %5701 = vmatprep.mubr.msk.bf16.mxu0 %vm696_vm4, %v670_v62  ;;  %v552_v62 = vsel %vm6728_vm1, %v6676_v20, 0.0  ;;  %v624_v58 = vsel %vm564_vm2, %v6225_v49, %v484_v47  ;;  %v560_v49 = vsel %vm6728_vm1, %v6700_v28, 0.0 }
  0x89   : > { %v652_v40 = vsel %vm528_vm3, %v552_v62, %v620_v33  ;;  %v486_v62 = vld [vmem:[%s6732_s9 + $0xd0] sm:$0xff]  ;;  %v656_v63 = vsel %vm528_vm3, %v556_v56, %v624_v58  ;;  %v487_v33 = vld [vmem:[%s6732_s9 + $0xd8] sm:$0xff] }
  0x8a   : > { %v674_v50 = vpack.c.bf16 %v653_v41, %v652_v40  ;;  %v6234_v40 = vld [vmem:[%s6746_s22 + $0xd8] sm:%s6736_s10]  ;;  %v676_v44 = vpack.c.bf16 %v657_v32, %v656_v63  ;;  %v626_v47 = vsel %vm564_vm2, %v6231_v39, %v486_v62  ;;  %v562_v63 = vsel %vm6728_vm1, %v6706_v30, 0.0 }
  0x8b   : > { %v627_v48 = vsel %vm564_vm2, %v6234_v40, %v487_v33  ;;  %v491_v58 = vld [vmem:[%s6732_s9 + $0xf8] sm:$0xff]  ;;  %v563_v32 = vsel %vm6728_vm1, %v6709_v31, 0.0  ;;  %v630_v33 = vsel %vm564_vm2, %v6243_v59, %v490_v57 }
  0x8f   : > { %5702 = vmatmul.mubr.msk.bf16.gmra.mxu0 %vm696_vm4, %v671_v53  ;;  %v555_v53 = vsel %vm6728_vm1, %v6685_v23, 0.0 }
  0x90   : > { %5705 = vmatprep.mubr.msk.bf16.mxu0 %vm696_vm4, %v672_v55  ;;  %v623_v55 = vsel %vm564_vm2, %v6222_v45, %v483_v43  ;;  %v6240_v43 = vld [vmem:[%s6746_s22 + $0xe8] sm:%s6736_s10]  ;;  %v558_v45 = vsel %vm6728_vm1, %v6694_v26, 0.0 }
  0x91   : > { %v655_v61 = vsel %vm528_vm3, %v555_v53, %v623_v55  ;;  %v629_v52 = vsel %vm564_vm2, %v6240_v43, %v489_v37  ;;  %v658_v53 = vsel %vm528_vm3, %v558_v45, %v626_v47  ;;  %v660_v55 = vsel %vm528_vm3, %v560_v49, %v628_v51  ;;  %v7085_v43 = vld [vmem:[#allocation3 + $0x8] sm:$0xff]  ;;  %v7117_v51 = vld [vmem:[%s9312_s2] ss:$0 sm:$0xff] }
  0x92   : > { %v675_v41 = vpack.c.bf16 %v655_v61, %v654_v60  ;;  %v6246_v60 = vld [vmem:[%s6746_s22 + $0xf8] sm:%s6736_s10]  ;;  %v662_v37 = vsel %vm528_vm3, %v562_v63, %v630_v33  ;;  %v7103_v49 = vld [vmem:[%s9314_s4 + $0x8] sm:$0xf]  ;;  %s9471_s10 = sld [smem:[#allocation61_spill]] }
  0x93   : > { %v631_v34 = vsel %vm564_vm2, %v6246_v60, %v491_v58 }
  0x94   : > { %v663_v39 = vsel %vm528_vm3, %v563_v32, %v631_v34 }
  0x95   : > { %v679_v40 = vpack.c.bf16 %v663_v39, %v662_v37 }
  0x97   : > { %5706 = vmatmul.mubr.msk.bf16.gmra.mxu0 %vm696_vm4, %v673_v46  ;;  %v559_v46 = vsel %vm6728_vm1, %v6697_v27, 0.0 }
  0x98   : > { %5709 = vmatprep.mubr.msk.bf16.mxu0 %vm696_vm4, %v674_v50  ;;  %v561_v50 = vsel %vm6728_vm1, %v6703_v29, 0.0  ;;  %v659_v54 = vsel %vm528_vm3, %v559_v46, %v627_v48 }
  0x99   : > { %v661_v56 = vsel %vm528_vm3, %v561_v50, %v629_v52  ;;  %v677_v61 = vpack.c.bf16 %v659_v54, %v658_v53  ;;  %v7110_v50 = vld [vmem:[%s9314_s4 + $0x4] sm:$0xf]  ;;  %v7122_v53 = vld [vmem:[%s9313_s3] ss:$0 sm:$0xff] }
  0x9a   : > { %v678_v62 = vpack.c.bf16 %v661_v56, %v660_v55 }
  0x9f   : > { %5710 = vmatmul.mubr.msk.bf16.gmra.mxu0 %vm696_vm4, %v675_v41  ;;  %v1200_v41 = vld [vmem:[%s9314_s4] sm:$0xf] }
  0xa0   : > { %5713 = vmatprep.mubr.msk.bf16.mxu0 %vm696_vm4, %v676_v44  ;;  %6063 = vmatprep.subr.msk.bf16.mxu0 %vm1249_vm6, %v1200_v41  ;;  %v1251_v36 = vsel %vm1249_vm6, %v1200_v41, 0  ;;  %v1101_v44 = vrot.slane %v7085_v43, 7 }
  0xa1   : > { %6064 = vmatprep.subr.msk.bf16.mxu1 %vm1249_vm6, %v1200_v41  ;;  %5722 = vmatpush3.bf16.msra.mxu0 %v1251_v36 }
  0xa2   : > { %6062 = vmatpush3.bf16.msra.mxu1 %v1251_v36  ;;  %v1134_v45 = vsel %vm1117_vm5, %v1101_v44, %v1085_v35  ;;  %v1118_v46 = vsel %vm1117_vm5, %v1085_v35, %v1101_v44  ;;  %6066 = vmatprep.subr.msk.bf16.mxu0 %vm1249_vm6, %v7103_v49 }
  0xa3   : > { %v1152_v47 = vsel %vm1150_vm7, %v1134_v45, 0.0  ;;  %6065 = vmatprep.subr.msk.bf16.mxu1 %vm1249_vm6, %v7110_v50 }
  0xa4   : > { %v1184_v48 = vpack.c.bf16 %v1118_v46, %v1152_v47 }
  0xa7   : > { %5714 = vmatmul.mubr.msk.bf16.gmra.mxu0 %vm696_vm4, %v677_v61 }
  0xa8   : > { %5717 = vmatprep.mubr.msk.bf16.mxu0 %vm696_vm4, %v678_v62 }
  0xaf   : > { %5718 = vmatmul.mubr.msk.bf16.gmra.mxu0 %vm696_vm4, %v679_v40 }
  0xb0   : > { %5723 = vmatprep.mubr.msk.bf16.mxu0 %vm1017_vm8, %v1184_v48 }
 0x137   : > { %v5691_v52 = vpop.f32.mrf.mxu0 }
 0x138   : > { %v915_v54 = vmul.f32 %v5691_v52, %v7117_v51 }
 0x139   : > { %v779_v55 = vpop.f32.mrf.mxu0 }
 0x13a   : > { %v954_v56 = vadd.f32 %v7122_v53, %v915_v54  ;;  %v913_v57 = vmul.f32 %v7117_v51, %v779_v55  ;;  %v1772_v54 = vrot.slane %v7083_v42, 1  ;;  %v1788_v55 = vrot.slane %v7085_v43, 1 }
 0x13b   : > { %v5692_v58 = vpop.f32.mrf.mxu0 }
 0x13c   : > { %v986_v59 = vmax.f32 %v954_v56, 0.0  ;;  %v952_v60 = vadd.f32 %v7122_v53, %v913_v57  ;;  %v916_v61 = vmul.f32 %v5692_v58, %v7117_v51 }
 0x13d   : > { %v782_v62 = vpop.f32.mrf.mxu0 }
 0x13e   : > { %1020 = vst.msk [vmem:[#allocation3 + $0x20] sm:$0xff] %vm1017_vm8, %v986_v59  ;;  %v984_v63 = vmax.f32 %v952_v60, 0.0  ;;  %v955_v32 = vadd.f32 %v7122_v53, %v916_v61  ;;  %v914_v33 = vmul.f32 %v7117_v51, %v782_v62  ;;  %v7147_v59 = vadd.s32 8, %v7077_v38 }
 0x13f   : > { %v5695_v34 = vpop.f32.mrf.mxu0 }
 0x140   : > { %1018 = vst.msk [vmem:[#allocation3 + $0x10] sm:$0xff] %vm1017_vm8, %v984_v63  ;;  %v987_v37 = vmax.f32 %v955_v32, 0.0  ;;  %v953_v39 = vadd.f32 %v7122_v53, %v914_v33  ;;  %v919_v40 = vmul.f32 %v5695_v34, %v7117_v51  ;;  %vm1838_vm10 = vcmp.lt.s32.totalorder %v7147_v59, 15 }
 0x141   : > { %v795_v41 = vpop.f32.mrf.mxu0 }
 0x142   : > { %1021 = vst.msk [vmem:[#allocation3 + $0x28] sm:$0xff] %vm1017_vm8, %v987_v37  ;;  %v985_v36 = vmax.f32 %v953_v39, 0.0  ;;  %v958_v35 = vadd.f32 %v7122_v53, %v919_v40  ;;  %v917_v44 = vmul.f32 %v7117_v51, %v795_v41  ;;  %v1821_v39 = vsel %vm1804_vm9, %v1788_v55, %v1772_v54 }
 0x143   : > { %v5696_v45 = vpop.f32.mrf.mxu0 }
 0x144   : > { %1019 = vst.msk [vmem:[#allocation3 + $0x18] sm:$0xff] %vm1017_vm8, %v985_v36  ;;  %v990_v46 = vmax.f32 %v958_v35, 0.0  ;;  %v956_v47 = vadd.f32 %v7122_v53, %v917_v44  ;;  %v920_v48 = vmul.f32 %v5696_v45, %v7117_v51 }
 0x145   : > { %v798_v52 = vpop.f32.mrf.mxu0  ;;  %v7155_v33 = vld [vmem:[#allocation3 + $0x20] sm:$0xff] }
 0x146   : > { %1024 = vst.msk [vmem:[#allocation3 + $0x40] sm:$0xff] %vm1017_vm8, %v990_v46  ;;  %v988_v56 = vmax.f32 %v956_v47, 0.0  ;;  %v959_v57 = vadd.f32 %v7122_v53, %v920_v48  ;;  %v918_v58 = vmul.f32 %v7117_v51, %v798_v52  ;;  %v1087_v47 = vrot.slane %v7155_v33, 7 }
 0x147   : > { %v5699_v60 = vpop.f32.mrf.mxu0  ;;  %v7153_v32 = vld [vmem:[#allocation3 + $0x10] sm:$0xff] }
 0x148   : > { %1022 = vst.msk [vmem:[#allocation3 + $0x30] sm:$0xff] %vm1017_vm8, %v988_v56  ;;  %v991_v61 = vmax.f32 %v959_v57, 0.0  ;;  %v957_v62 = vadd.f32 %v7122_v53, %v918_v58  ;;  %v923_v63 = vmul.f32 %v5699_v60, %v7117_v51  ;;  %v1086_v46 = vrot.slane %v7153_v32, 7 }
 0x149   : > { %v811_v34 = vpop.f32.mrf.mxu0  ;;  %v7157_v37 = vld [vmem:[#allocation3 + $0x28] sm:$0xff] }
 0x14a   : > { %1025 = vst.msk [vmem:[#allocation3 + $0x48] sm:$0xff] %vm1017_vm8, %v991_v61  ;;  %v989_v40 = vmax.f32 %v957_v62, 0.0  ;;  %v962_v41 = vadd.f32 %v7122_v53, %v923_v63  ;;  %v921_v36 = vmul.f32 %v7117_v51, %v811_v34  ;;  %v1103_v35 = vrot.slane %v7157_v37, 7 }
 0x14b   : > { %v5700_v44 = vpop.f32.mrf.mxu0  ;;  %v7166_v45 = vld [vmem:[#allocation3 + $0x18] sm:$0xff]  ;;  %v7172_v48 = vpack.c.bf16 %v7157_v37, %v7155_v33  ;;  %v7184_v63 = vsel %vm1804_vm9, %v1772_v54, %v1788_v55  ;;  %v7188_v34 = vsel %vm1838_vm10, %v1821_v39, 0.0  ;;  %v1938_v55 = vsel %vm1249_vm6, %v7103_v49, 0 }
 0x14c   : > { %1023 = vst.msk [vmem:[#allocation3 + $0x38] sm:$0xff] %vm1017_vm8, %v989_v40  ;;  %v994_v52 = vmax.f32 %v962_v41, 0.0  ;;  %v960_v56 = vadd.f32 %v7122_v53, %v921_v36  ;;  %v924_v57 = vmul.f32 %v5700_v44, %v7117_v51  ;;  %v1102_v58 = vrot.slane %v7166_v45, 7 }
 0x14d   : > { %v814_v60 = vpop.f32.mrf.mxu0  ;;  %v1120_v61 = vsel %vm1117_vm5, %v1087_v47, %v1103_v35  ;;  %v1136_v62 = vsel %vm1117_vm5, %v1103_v35, %v1087_v47 }
 0x14e   : > { %1028 = vst.msk [vmem:[#allocation3 + $0x60] sm:$0xff] %vm1017_vm8, %v994_v52  ;;  %v992_v40 = vmax.f32 %v960_v56, 0.0  ;;  %v963_v41 = vadd.f32 %v7122_v53, %v924_v57  ;;  %v922_v36 = vmul.f32 %v7117_v51, %v814_v60  ;;  %v1119_v44 = vsel %vm1117_vm5, %v1086_v46, %v1102_v58  ;;  %v7208_v60 = vld [vmem:[#allocation3 + $0x40] sm:$0xff] }
 0x14f   : > { %v5703_v31 = vpop.f32.mrf.mxu0  ;;  %v1135_v35 = vsel %vm1117_vm5, %v1102_v58, %v1086_v46  ;;  %v1156_v54 = vsel %vm1150_vm7, %v1136_v62, 0.0  ;;  %v7206_v57 = vld [vmem:[#allocation3 + $0x30] sm:$0xff] }
 0x150   : > { %1026 = vst.msk [vmem:[#allocation3 + $0x50] sm:$0xff] %vm1017_vm8, %v992_v40  ;;  %v995_v39 = vmax.f32 %v963_v41, 0.0  ;;  %v961_v47 = vadd.f32 %v7122_v53, %v922_v36  ;;  %v927_v52 = vmul.f32 %v5703_v31, %v7117_v51  ;;  %v1154_v56 = vsel %vm1150_vm7, %v1135_v35, 0.0  ;;  %v5383_v46 = vld [vmem:[%s9314_s4 + $0x10] sm:$0xf] }
 0x151   : > { %v827_v58 = vpop.f32.mrf.mxu0  ;;  %v7213_v49 = vpack.c.bf16 %v1119_v44, %v1154_v56  ;;  %v7215_v62 = vpack.c.bf16 %v1120_v61, %v1156_v54  ;;  %v7217_v40 = vld [vmem:[#allocation3 + $0x48] sm:$0xff]  ;;  %v7223_v41 = vsel %vm1249_vm6, %v7110_v50, 0  ;;  %v1088_v56 = vrot.slane %v7206_v57, 7 }
 0x152   : > { %1029 = vst.msk [vmem:[#allocation3 + $0x68] sm:$0xff] %vm1017_vm8, %v995_v39  ;;  %v993_v36 = vmax.f32 %v961_v47, 0.0  ;;  %v966_v35 = vadd.f32 %v7122_v53, %v927_v52  ;;  %v925_v30 = vmul.f32 %v7117_v51, %v827_v58  ;;  %v1105_v44 = vrot.slane %v7217_v40, 7 }
 0x153   : > { %5724 = vmatmul.mubr.msk.bf16.vlgmr.msra.gmra.mxu0 %vm1017_vm8, %v7213_v49  ;;  %v5704_v61 = vpop.f32.mrf.mxu0  ;;  %v7231_v54 = vld [vmem:[#allocation3 + $0x38] sm:$0xff]  ;;  %v1089_v50 = vrot.slane %v7208_v60, 7  ;;  %v1789_v31 = vrot.slane %v7166_v45, 1  ;;  %v7237_v39 = vsel %vm1249_vm6, %v5383_v46, 0 }
 0x154   : > { %1027 = vst.msk [vmem:[#allocation3 + $0x58] sm:$0xff] %vm1017_vm8, %v993_v36  ;;  %v998_v47 = vmax.f32 %v966_v35, 0.0  ;;  %v964_v52 = vadd.f32 %v7122_v53, %v925_v30  ;;  %v928_v58 = vmul.f32 %v5704_v61, %v7117_v51  ;;  %5727 = vmatprep.mubr.msk.bf16.mxu0 %vm1017_vm8, %v7215_v62  ;;  %v1104_v29 = vrot.slane %v7231_v54, 7  ;;  %5790 = vmatpush3.bf16.msra.mxu0 %v1938_v55 }
 0x155   : > { %v830_v28 = vpop.f32.mrf.mxu0  ;;  %v1122_v27 = vsel %vm1117_vm5, %v1089_v50, %v1105_v44  ;;  %v1138_v26 = vsel %vm1117_vm5, %v1105_v44, %v1089_v50  ;;  %v1773_v36 = vrot.slane %v7153_v32, 1  ;;  %v1790_v35 = vrot.slane %v7157_v37, 1  ;;  %6068 = vmatprep.subr.msk.bf16.mxu0 %vm1249_vm6, %v5383_v46  ;;  %v7257_v24 = vld [vmem:[#allocation3 + $0x60] sm:$0xff] }
 0x156   : > { %1032 = vst.msk [vmem:[#allocation3 + $0x80] sm:$0xff] %vm1017_vm8, %v998_v47  ;;  %v996_v30 = vmax.f32 %v964_v52, 0.0  ;;  %v967_v61 = vadd.f32 %v7122_v53, %v928_v58  ;;  %v926_v55 = vmul.f32 %v7117_v51, %v830_v28  ;;  %v1121_v25 = vsel %vm1117_vm5, %v1088_v56, %v1104_v29 }
 0x157   : > { %v5707_v23 = vpop.f32.mrf.mxu0  ;;  %v1137_v44 = vsel %vm1117_vm5, %v1104_v29, %v1088_v56  ;;  %v1160_v37 = vsel %vm1150_vm7, %v1138_v26, 0.0  ;;  %v1822_v46 = vsel %vm1804_vm9, %v1789_v31, %v1773_v36  ;;  %v1774_v50 = vrot.slane %v7155_v33, 1 }
 0x158   : > { %1030 = vst.msk [vmem:[#allocation3 + $0x70] sm:$0xff] %vm1017_vm8, %v996_v30  ;;  %v999_v28 = vmax.f32 %v967_v61, 0.0  ;;  %v965_v47 = vadd.f32 %v7122_v53, %v926_v55  ;;  %v931_v52 = vmul.f32 %v5707_v23, %v7117_v51  ;;  %v1158_v58 = vsel %vm1150_vm7, %v1137_v44, 0.0 }
 0x159   : > { %v843_v22 = vpop.f32.mrf.mxu0  ;;  %v7271_v29 = vpack.c.bf16 %v1121_v25, %v1158_v58  ;;  %v7273_v56 = vpack.c.bf16 %v1122_v27, %v1160_v37  ;;  %v7275_v26 = vld [vmem:[#allocation3 + $0x68] sm:$0xff]  ;;  %v1091_v21 = vrot.slane %v7257_v24, 7  ;;  %v1807_v33 = vsel %vm1804_vm9, %v1774_v50, %v1790_v35  ;;  %v7284_v25 = vld [vmem:[#allocation3 + $0x50] sm:$0xff] }
 0x15a   : > { %1033 = vst.msk [vmem:[#allocation3 + $0x88] sm:$0xff] %vm1017_vm8, %v999_v28  ;;  %v997_v30 = vmax.f32 %v965_v47, 0.0  ;;  %v970_v23 = vadd.f32 %v7122_v53, %v931_v52  ;;  %v929_v61 = vmul.f32 %v7117_v51, %v843_v22  ;;  %v1107_v55 = vrot.slane %v7275_v26, 7 }
 0x15b   : > { %5728 = vmatmul.mubr.msk.bf16.gmra.mxu0 %vm1017_vm8, %v7271_v29  ;;  %v5708_v27 = vpop.f32.mrf.mxu0  ;;  %v7288_v44 = vld [vmem:[#allocation3 + $0x58] sm:$0xff]  ;;  %v1806_v37 = vsel %vm1804_vm9, %v1773_v36, %v1789_v31  ;;  %v1842_v28 = vsel %vm1838_vm10, %v1822_v46, 0.0  ;;  %v1823_v47 = vsel %vm1804_vm9, %v1790_v35, %v1774_v50  ;;  %v1090_v35 = vrot.slane %v7284_v25, 7 }
 0x15c   : > { %1031 = vst.msk [vmem:[#allocation3 + $0x78] sm:$0xff] %vm1017_vm8, %v997_v30  ;;  %v1002_v52 = vmax.f32 %v970_v23, 0.0  ;;  %v968_v58 = vadd.f32 %v7122_v53, %v929_v61  ;;  %v932_v20 = vmul.f32 %v5708_v27, %v7117_v51  ;;  %5731 = vmatprep.mubr.msk.bf16.mxu0 %vm1017_vm8, %v7273_v56  ;;  %v1124_v31 = vsel %vm1117_vm5, %v1091_v21, %v1107_v55 }
 0x15d   : > { %v846_v36 = vpop.f32.mrf.mxu0  ;;  %v1140_v46 = vsel %vm1117_vm5, %v1107_v55, %v1091_v21  ;;  %v1106_v50 = vrot.slane %v7288_v44, 7 }
 0x15e   : > { %1036 = vst.msk [vmem:[#allocation3 + $0xa0] sm:$0xff] %vm1017_vm8, %v1002_v52  ;;  %v1000_v23 = vmax.f32 %v968_v58, 0.0  ;;  %v971_v61 = vadd.f32 %v7122_v53, %v932_v20  ;;  %v930_v27 = vmul.f32 %v7117_v51, %v846_v36  ;;  %v1164_v22 = vsel %vm1150_vm7, %v1140_v46, 0.0  ;;  %v7329_v46 = vld [vmem:[#allocation3 + $0x80] sm:$0xff] }
 0x15f   : > { %v5711_v19 = vpop.f32.mrf.mxu0  ;;  %v7314_v18 = vpack.c.bf16 %v1124_v31, %v1164_v22  ;;  %v1123_v21 = vsel %vm1117_vm5, %v1090_v35, %v1106_v50  ;;  %v1139_v55 = vsel %vm1117_vm5, %v1106_v50, %v1090_v35  ;;  %v1844_v52 = vsel %vm1838_vm10, %v1823_v47, 0.0  ;;  %v7327_v31 = vld [vmem:[#allocation3 + $0x70] sm:$0xff] }
 0x160   : > { %1034 = vst.msk [vmem:[#allocation3 + $0x90] sm:$0xff] %vm1017_vm8, %v1000_v23  ;;  %v1003_v20 = vmax.f32 %v971_v61, 0.0  ;;  %v969_v58 = vadd.f32 %v7122_v53, %v930_v27  ;;  %v935_v36 = vmul.f32 %v5711_v19, %v7117_v51  ;;  %v1162_v22 = vsel %vm1150_vm7, %v1139_v55, 0.0 }
 0x161   : > { %5735 = vmatprep.mubr.msk.bf16.mxu1 %vm1017_vm8, %v7314_v18  ;;  %v859_v47 = vpop.f32.mrf.mxu0  ;;  %v7334_v50 = vpack.c.bf16 %v1123_v21, %v1162_v22  ;;  %v7336_v23 = vpack.c.bf16 %v1842_v28, %v1806_v37  ;;  %v7338_v61 = vld [vmem:[#allocation3 + $0x88] sm:$0xff]  ;;  %v1791_v19 = vrot.slane %v7231_v54, 1  ;;  %v1092_v21 = vrot.slane %v7327_v31, 7 }
 0x162   : > { %1037 = vst.msk [vmem:[#allocation3 + $0xa8] sm:$0xff] %vm1017_vm8, %v1003_v20  ;;  %v1001_v27 = vmax.f32 %v969_v58, 0.0  ;;  %v974_v55 = vadd.f32 %v7122_v53, %v935_v36  ;;  %v933_v30 = vmul.f32 %v7117_v51, %v859_v47  ;;  %v1109_v17 = vrot.slane %v7338_v61, 7 }
 0x163   : > { %9426 = vst [vmem:[#allocation45_spill] sm:$0xff] %v7336_v23  ;;  %5732 = vmatmul.mubr.msk.bf16.gmra.mxu0 %vm1017_vm8, %v7334_v50  ;;  %v5712_v37 = vpop.f32.mrf.mxu0  ;;  %v7348_v28 = vld [vmem:[#allocation3 + $0x78] sm:$0xff]  ;;  %v1093_v22 = vrot.slane %v7329_v46, 7  ;;  %v7352_v20 = vpack.c.bf16 %v1844_v52, %v1807_v33  ;;  %v9428_v35 = vpack.c.bf16 %v7188_v34, %v7184_v63  ;;  %v9429_v52 = vrot.slane %v7206_v57, 1 }
 0x164   : > { %1035 = vst.msk [vmem:[#allocation3 + $0x98] sm:$0xff] %vm1017_vm8, %v1001_v27  ;;  %v1006_v58 = vmax.f32 %v974_v55, 0.0  ;;  %v972_v36 = vadd.f32 %v7122_v53, %v933_v30  ;;  %v936_v47 = vmul.f32 %v5712_v37, %v7117_v51  ;;  %v1108_v16 = vrot.slane %v7348_v28, 7 }
 0x165   : > { %9427 = vst [vmem:[#allocation46_spill] sm:$0xff] %v7352_v20  ;;  %5791 = vmatprep.mubr.msk.bf16.mxu0 %vm1017_vm8, %v9428_v35  ;;  %v862_v15 = vpop.f32.mrf.mxu0  ;;  %v1126_v14 = vsel %vm1117_vm5, %v1093_v22, %v1109_v17  ;;  %v1142_v33 = vsel %vm1117_vm5, %v1109_v17, %v1093_v22  ;;  %v1824_v30 = vsel %vm1804_vm9, %v1791_v19, %v9429_v52  ;;  %v1792_v27 = vrot.slane %v7217_v40, 1 }
 0x166   : > { %1040 = vst.msk [vmem:[#allocation3 + $0xc0] sm:$0xff] %vm1017_vm8, %v1006_v58  ;;  %v1004_v63 = vmax.f32 %v972_v36, 0.0  ;;  %v975_v34 = vadd.f32 %v7122_v53, %v936_v47  ;;  %v934_v35 = vmul.f32 %v7117_v51, %v862_v15  ;;  %v1125_v55 = vsel %vm1117_vm5, %v1092_v21, %v1108_v16 }
 0x167   : > { %v5715_v37 = vpop.f32.mrf.mxu0  ;;  %v1141_v17 = vsel %vm1117_vm5, %v1108_v16, %v1092_v21  ;;  %v1168_v22 = vsel %vm1150_vm7, %v1142_v33, 0.0  ;;  %v1808_v58 = vsel %vm1804_vm9, %v9429_v52, %v1791_v19  ;;  %v7390_v21 = vld [vmem:[#allocation3 + $0x90] sm:$0xff]  ;;  %v7392_v33 = vld [vmem:[#allocation3 + $0xa0] sm:$0xff] }
 0x168   : > { %1038 = vst.msk [vmem:[#allocation3 + $0xb0] sm:$0xff] %vm1017_vm8, %v1004_v63  ;;  %v1007_v15 = vmax.f32 %v975_v34, 0.0  ;;  %v973_v47 = vadd.f32 %v7122_v53, %v934_v35  ;;  %v939_v13 = vmul.f32 %v5715_v37, %v7117_v51  ;;  %v1166_v16 = vsel %vm1150_vm7, %v1141_v17, 0.0 }
 0x169   : > { %v875_v12 = vpop.f32.mrf.mxu0  ;;  %v7394_v11 = vpack.c.bf16 %v1125_v55, %v1166_v16  ;;  %v7396_v19 = vpack.c.bf16 %v1126_v14, %v1168_v22  ;;  %v1846_v63 = vsel %vm1838_vm10, %v1824_v30, 0.0  ;;  %v7400_v34 = vld [vmem:[#allocation3 + $0xa8] sm:$0xff]  ;;  %v9430_v35 = vrot.slane %v7208_v60, 1 }
 0x16a   : > { %1041 = vst.msk [vmem:[#allocation3 + $0xc8] sm:$0xff] %vm1017_vm8, %v1007_v15  ;;  %v1005_v17 = vmax.f32 %v973_v47, 0.0  ;;  %v978_v52 = vadd.f32 %v7122_v53, %v939_v13  ;;  %v937_v55 = vmul.f32 %v7117_v51, %v875_v12  ;;  %v1111_v14 = vrot.slane %v7400_v34, 7  ;;  %v7413_v30 = vld [vmem:[%s9314_s4 + $0xc] sm:$0xf] }
 0x16b   : > { %v1825_v37 = vsel %vm1804_vm9, %v1792_v27, %v9430_v35  ;;  %5736 = vmatmul.mubr.msk.bf16.vlgmr.msra.gmra.mxu1 %vm1017_vm8, %v7394_v11  ;;  %5792 = vmatmul.mubr.msk.bf16.vlgmr.msra.gmra.mxu0 %vm1017_vm8, %v7336_v23  ;;  %v5716_v22 = vpop.f32.mrf.mxu0  ;;  %v7419_v15 = vld [vmem:[#allocation3 + $0x98] sm:$0xff]  ;;  %v1094_v13 = vrot.slane %v7390_v21, 7  ;;  %v1095_v12 = vrot.slane %v7392_v33, 7  ;;  %v9431_v47 = vmov %v9430_v35 }
 0x16c   : > { %v1809_v16 = vsel %vm1804_vm9, %v9431_v47, %v1792_v27  ;;  %v1793_v35 = vrot.slane %v7288_v44, 1  ;;  %1039 = vst.msk [vmem:[#allocation3 + $0xb8] sm:$0xff] %vm1017_vm8, %v1005_v17  ;;  %v1010_v36 = vmax.f32 %v978_v52, 0.0  ;;  %v976_v10 = vadd.f32 %v7122_v53, %v937_v55  ;;  %5756 = vmatpush3.bf16.msra.mxu1 %v7223_v41  ;;  %5739 = vmatprep.mubr.msk.bf16.mxu1 %vm1017_vm8, %v7396_v19  ;;  %v7438_v27 = vld [vmem:[%s9314_s4 + $0x18] sm:$0xf] }
 0x16d   : > { %v940_v9 = vmul.f32 %v5716_v22, %v7117_v51  ;;  %v1110_v8 = vrot.slane %v7419_v15, 7  ;;  %5795 = vmatprep.mubr.msk.bf16.mxu0 %vm1017_vm8, %v7352_v20  ;;  %v878_v17 = vpop.f32.mrf.mxu0  ;;  %v7442_v52 = vpack.c.bf16 %v1846_v63, %v1808_v58  ;;  %v1128_v41 = vsel %vm1117_vm5, %v1095_v12, %v1111_v14  ;;  %6067 = vmatprep.subr.msk.bf16.mxu1 %vm1249_vm6, %v7413_v30  ;;  %v7481_v5 = vld [vmem:[#allocation3 + $0xc0] sm:$0xff] }
 0x16e   : > { %v1144_v55 = vsel %vm1117_vm5, %v1111_v14, %v1095_v12  ;;  %v1848_v22 = vsel %vm1838_vm10, %v1825_v37, 0.0  ;;  %1044 = vst.msk [vmem:[#allocation3 + $0xe0] sm:$0xff] %vm1017_vm8, %v1010_v36  ;;  %v1008_v47 = vmax.f32 %v976_v10, 0.0  ;;  %v938_v58 = vmul.f32 %v7117_v51, %v878_v17  ;;  %5858 = vmatpush3.bf16.msra.mxu0 %v7237_v39 }
 0x16f   : > { %9432 = vst [vmem:[#allocation47_spill] sm:$0xff] %v7442_v52  ;;  %v979_v7 = vadd.f32 %v7122_v53, %v940_v9  ;;  %v1127_v63 = vsel %vm1117_vm5, %v1094_v13, %v1110_v8  ;;  %v5719_v6 = vpop.f32.mrf.mxu0  ;;  %v1143_v14 = vsel %vm1117_vm5, %v1110_v8, %v1094_v13  ;;  %v1172_v37 = vsel %vm1150_vm7, %v1144_v55, 0.0  ;;  %6070 = vmatprep.subr.msk.bf16.mxu0 %vm1249_vm6, %v7438_v27 }
 0x170   : > { %v9433_v12 = vrot.slane %v7284_v25, 1  ;;  %v9434_v9 = vrot.slane %v7275_v26, 1  ;;  %v9435_v36 = vrot.slane %v7257_v24, 1  ;;  %1042 = vst.msk [vmem:[#allocation3 + $0xd0] sm:$0xff] %vm1017_vm8, %v1008_v47  ;;  %v977_v39 = vadd.f32 %v7122_v53, %v938_v58 }
 0x171   : > { %v1011_v8 = vmax.f32 %v979_v7, 0.0  ;;  %v943_v13 = vmul.f32 %v5719_v6, %v7117_v51  ;;  %v1170_v55 = vsel %vm1150_vm7, %v1143_v14, 0.0  ;;  %v891_v4 = vpop.f32.mrf.mxu0  ;;  %v7489_v47 = vld [vmem:[#allocation3 + $0xc8] sm:$0xff]  ;;  %v9437_v7 = vrot.slane %v7257_v24, 1 }
 0x172   : > { %v1826_v10 = vsel %vm1804_vm9, %v1793_v35, %v9433_v12  ;;  %v1811_v17 = vsel %vm1804_vm9, %v9435_v36, %v9434_v9  ;;  %v7479_v12 = vld [vmem:[#allocation3 + $0xb0] sm:$0xff]  ;;  %v7483_v3 = vpack.c.bf16 %v1127_v63, %v1170_v55  ;;  %v7485_v9 = vpack.c.bf16 %v1128_v41, %v1172_v37 }
 0x173   : > { %v7487_v36 = vpack.c.bf16 %v1848_v22, %v1809_v16  ;;  %v9438_v6 = vrot.slane %v7275_v26, 1  ;;  %1045 = vst.msk [vmem:[#allocation3 + $0xe8] sm:$0xff] %vm1017_vm8, %v1011_v8  ;;  %v1009_v14 = vmax.f32 %v977_v39, 0.0  ;;  %v982_v2 = vadd.f32 %v7122_v53, %v943_v13  ;;  %5796 = vmatmul.mubr.msk.bf16.gmra.mxu0 %vm1017_vm8, %v7442_v52  ;;  %v5720_v16 = vpop.f32.mrf.mxu0  ;;  %v7505_v22 = vld [vmem:[#allocation3 + $0xb8] sm:$0xff] }
 0x174   : > { %v941_v63 = vmul.f32 %v7117_v51, %v891_v4  ;;  %v1113_v41 = vrot.slane %v7489_v47, 7  ;;  %5740 = vmatmul.mubr.msk.bf16.gmra.mxu1 %vm1017_vm8, %v7483_v3  ;;  %v1096_v37 = vrot.slane %v7479_v12, 7  ;;  %v9439_v8 = vrot.slane %v7284_v25, 1 }
 0x175   : > { %9436 = vst [vmem:[#allocation48_spill] sm:$0xff] %v7487_v36  ;;  %v1827_v58 = vsel %vm1804_vm9, %v9438_v6, %v9437_v7  ;;  %v1850_v4 = vsel %vm1838_vm10, %v1826_v10, 0.0  ;;  %v1097_v13 = vrot.slane %v7481_v5, 7  ;;  %1043 = vst.msk [vmem:[#allocation3 + $0xd8] sm:$0xff] %vm1017_vm8, %v1009_v14  ;;  %v1014_v55 = vmax.f32 %v982_v2, 0.0  ;;  %5743 = vmatprep.mubr.msk.bf16.mxu1 %vm1017_vm8, %v7485_v9  ;;  %5799 = vmatprep.mubr.msk.bf16.mxu0 %vm1017_vm8, %v7487_v36  ;;  %v7540_v23 = vld [vmem:[#allocation3 + $0xe0] sm:$0xff] }
 0x176   : > { %v1810_v39 = vsel %vm1804_vm9, %v9439_v8, %v1793_v35  ;;  %v980_v7 = vadd.f32 %v7122_v53, %v941_v63  ;;  %v944_v6 = vmul.f32 %v5720_v16, %v7117_v51  ;;  %v1112_v35 = vrot.slane %v7505_v22, 7  ;;  %v894_v8 = vpop.f32.mrf.mxu0 }
 0x177   : > { %v1146_v10 = vsel %vm1117_vm5, %v1113_v41, %v1097_v13  ;;  %v1852_v14 = vsel %vm1838_vm10, %v1827_v58, 0.0  ;;  %v1779_v2 = vrot.slane %v7327_v31, 1  ;;  %v1795_v63 = vrot.slane %v7348_v28, 1  ;;  %1048 = vst.msk [vmem:[#allocation3 + $0x100] sm:$0xff] %vm1017_vm8, %v1014_v55 }
 0x178   : > { %v1012_v16 = vmax.f32 %v980_v7, 0.0  ;;  %v983_v1 = vadd.f32 %v7122_v53, %v944_v6  ;;  %v942_v0 = vmul.f32 %v7117_v51, %v894_v8  ;;  %v1129_v36 = vsel %vm1117_vm5, %v1096_v37, %v1112_v35 }
 0x179   : > { %v1145_v52 = vsel %vm1117_vm5, %v1112_v35, %v1096_v37  ;;  %v1130_v58 = vsel %vm1117_vm5, %v1097_v13, %v1113_v41  ;;  %v1176_v20 = vsel %vm1150_vm7, %v1146_v10, 0.0  ;;  %v1796_v55 = vrot.slane %v7338_v61, 1  ;;  %v7553_v13 = vld [vmem:[#allocation3 + $0xd0] sm:$0xff] }
 0x17a   : > { %1046 = vst.msk [vmem:[#allocation3 + $0xf0] sm:$0xff] %vm1017_vm8, %v1012_v16  ;;  %v1015_v7 = vmax.f32 %v983_v1, 0.0  ;;  %v981_v51 = vadd.f32 %v7122_v53, %v942_v0  ;;  %v1174_v6 = vsel %vm1150_vm7, %v1145_v52, 0.0  ;;  %v7547_v8 = vpack.c.bf16 %v1850_v4, %v1810_v39  ;;  %v7557_v10 = vld [vmem:[#allocation3 + $0xe8] sm:$0xff] }
 0x17b   : > { %v7549_v37 = vpack.c.bf16 %v1129_v36, %v1174_v6  ;;  %v7551_v41 = vpack.c.bf16 %v1852_v14, %v1811_v17  ;;  %v1828_v35 = vsel %vm1804_vm9, %v1795_v63, %v1779_v2  ;;  %v1780_v1 = vrot.slane %v7329_v46, 1 }
 0x17c   : > { %1049 = vst.msk [vmem:[#allocation3 + $0x108] sm:$0xff] %vm1017_vm8, %v1015_v7  ;;  %v1013_v0 = vmax.f32 %v981_v51, 0.0  ;;  %v7561_v53 = vpack.c.bf16 %v1130_v58, %v1176_v20  ;;  %v1099_v52 = vrot.slane %v7540_v23, 7  ;;  %v1115_v36 = vrot.slane %v7557_v10, 7  ;;  %5800 = vmatmul.mubr.msk.bf16.gmra.mxu0 %vm1017_vm8, %v7547_v8  ;;  %v7569_v17 = vld [vmem:[#allocation3 + $0xd8] sm:$0xff] }
 0x17d   : > { %9440 = vst [vmem:[#allocation49_spill] sm:$0xff] %v7551_v41  ;;  %5744 = vmatmul.mubr.msk.bf16.gmra.mxu1 %vm1017_vm8, %v7549_v37  ;;  %v1829_v39 = vsel %vm1804_vm9, %v1796_v55, %v1780_v1  ;;  %5803 = vmatprep.mubr.msk.bf16.mxu0 %vm1017_vm8, %v7551_v41  ;;  %v1098_v20 = vrot.slane %v7553_v13, 7  ;;  %v1114_v4 = vrot.slane %v7569_v17, 7  ;;  %v1812_v16 = vsel %vm1804_vm9, %v1779_v2, %v1795_v63 }
 0x17e   : > { %1047 = vst.msk [vmem:[#allocation3 + $0xf8] sm:$0xff] %vm1017_vm8, %v1013_v0  ;;  %5747 = vmatprep.mubr.msk.bf16.mxu1 %vm1017_vm8, %v7561_v53  ;;  %v1148_v14 = vsel %vm1117_vm5, %v1115_v36, %v1099_v52  ;;  %v1854_v58 = vsel %vm1838_vm10, %v1828_v35, 0.0  ;;  %v1813_v7 = vsel %vm1804_vm9, %v1780_v1, %v1796_v55  ;;  %v1856_v0 = vsel %vm1838_vm10, %v1829_v39, 0.0 }
 0x17f   : > { %v1131_v51 = vsel %vm1117_vm5, %v1098_v20, %v1114_v4  ;;  %v1147_v6 = vsel %vm1117_vm5, %v1114_v4, %v1098_v20  ;;  %v7595_v41 = vrot.slane %v7419_v15, 1  ;;  %v1132_v63 = vsel %vm1117_vm5, %v1099_v52, %v1115_v36 }
 0x180   : > { %v1178_v2 = vsel %vm1150_vm7, %v1147_v6, 0.0  ;;  %v1180_v55 = vsel %vm1150_vm7, %v1148_v14, 0.0  ;;  %v7605_v35 = vpack.c.bf16 %v7166_v45, %v7153_v32  ;;  %v1798_v39 = vrot.slane %v7400_v34, 1 }
 0x181   : > { %9441 = vst [vmem:[#allocation50_spill] sm:$0xff] %v7595_v41  ;;  %v7607_v1 = vpack.c.bf16 %v1131_v51, %v1178_v2  ;;  %v7610_v20 = vpack.c.bf16 %v1854_v58, %v1812_v16  ;;  %v7612_v4 = vld [vmem:[#allocation3 + $0xf0] sm:$0xff]  ;;  %v1781_v6 = vrot.slane %v7390_v21, 1  ;;  %v7617_v52 = vpack.c.bf16 %v7231_v54, %v7206_v57 }
 0x182   : > { %v7619_v36 = vpack.c.bf16 %v1132_v63, %v1180_v55  ;;  %v7621_v14 = vpack.c.bf16 %v1856_v0, %v1813_v7  ;;  %v1782_v32 = vrot.slane %v7392_v33, 1  ;;  %v7626_v45 = vpack.c.bf16 %v7217_v40, %v7208_v60 }
 0x183   : > { %v1830_v57 = vsel %vm1804_vm9, %v7595_v41, %v1781_v6  ;;  %v1100_v60 = vrot.slane %v7612_v4, 7  ;;  %v7647_v58 = vpack.c.bf16 %v7288_v44, %v7284_v25  ;;  %v1814_v0 = vsel %vm1804_vm9, %v1781_v6, %v7595_v41 }
 0x184   : > { %9442 = vst [vmem:[#allocation51_spill] sm:$0xff] %v7621_v14  ;;  %5804 = vmatmul.mubr.msk.bf16.gmra.mxu0 %vm1017_vm8, %v7610_v20  ;;  %v1831_v54 = vsel %vm1804_vm9, %v1798_v39, %v1782_v32  ;;  %v1858_v2 = vsel %vm1838_vm10, %v1830_v57, 0.0  ;;  %v1815_v25 = vsel %vm1804_vm9, %v1782_v32, %v1798_v39  ;;  %v1799_v55 = vrot.slane %v7505_v22, 1 }
 0x185   : > { %5748 = vmatmul.mubr.msk.bf16.gmra.mxu1 %vm1017_vm8, %v7607_v1  ;;  %v7632_v16 = vld [vmem:[#allocation3 + $0xf8] sm:$0xff]  ;;  %5807 = vmatprep.mubr.msk.bf16.mxu0 %vm1017_vm8, %v7621_v14  ;;  %v1860_v44 = vsel %vm1838_vm10, %v1831_v54, 0.0  ;;  %v7671_v6 = vpack.c.bf16 %v7275_v26, %v7257_v24  ;;  %v7673_v57 = vpack.c.bf16 %v1858_v2, %v1814_v0  ;;  %v1800_v39 = vrot.slane %v7489_v47, 1 }
 0x186   : > { %5751 = vmatprep.mubr.msk.bf16.mxu1 %vm1017_vm8, %v7619_v36  ;;  %v1116_v40 = vrot.slane %v7632_v16, 7  ;;  %v7677_v32 = vpack.c.bf16 %v1860_v44, %v1815_v25  ;;  %v1784_v24 = vrot.slane %v7481_v5, 1  ;;  %v1801_v54 = vrot.slane %v7569_v17, 1 }
 0x187   : > { %9443 = vst [vmem:[#allocation52_spill] sm:$0xff] %v7673_v57  ;;  %v1785_v2 = vrot.slane %v7553_v13, 1  ;;  %v2392_v25 = vsel %vm1249_vm6, %v7413_v30, 0  ;;  %v7719_v30 = vld [vmem:[%s9314_s4 + $0x14] sm:$0xf] }
 0x188   : > { %v1133_v7 = vsel %vm1117_vm5, %v1100_v60, %v1116_v40  ;;  %v1149_v51 = vsel %vm1117_vm5, %v1116_v40, %v1100_v60  ;;  %v1446_v60 = vpack.c.bf16 %v7085_v43, %v7083_v42  ;;  %v1783_v40 = vrot.slane %v7479_v12, 1  ;;  %9444 = vst [vmem:[#allocation53_spill] sm:$0xff] %v7677_v32 }
 0x189   : > { %v1182_v63 = vsel %vm1150_vm7, %v1149_v51, 0.0  ;;  %v7691_v43 = vpack.c.bf16 %v7632_v16, %v7612_v4  ;;  %v1833_v26 = vsel %vm1804_vm9, %v1800_v39, %v1784_v24  ;;  %v1817_v44 = vsel %vm1804_vm9, %v1784_v24, %v1800_v39 }
 0x18a   : > { %v7665_v14 = vpack.c.bf16 %v1133_v7, %v1182_v63  ;;  %v1832_v42 = vsel %vm1804_vm9, %v1799_v55, %v1783_v40  ;;  %v1802_v7 = vrot.slane %v7557_v10, 1  ;;  %v1816_v51 = vsel %vm1804_vm9, %v1783_v40, %v1799_v55 }
 0x18b   : > { %v1862_v0 = vsel %vm1838_vm10, %v1832_v42, 0.0  ;;  %v1786_v63 = vrot.slane %v7540_v23, 1  ;;  %v1834_v55 = vsel %vm1804_vm9, %v1801_v54, %v1785_v2  ;;  %v1803_v42 = vrot.slane %v7632_v16, 1 }
 0x18c   : > { %5808 = vmatmul.mubr.msk.bf16.gmra.mxu0 %vm1017_vm8, %v7673_v57  ;;  %v7709_v41 = vpack.c.bf16 %v1862_v0, %v1816_v51  ;;  %v1787_v24 = vrot.slane %v7612_v4, 1  ;;  %v1818_v16 = vsel %vm1804_vm9, %v1785_v2, %v1801_v54 }
 0x18d   : > { %5752 = vmatmul.mubr.msk.bf16.gmra.mxu1 %vm1017_vm8, %v7665_v14  ;;  %5811 = vmatprep.mubr.msk.bf16.mxu0 %vm1017_vm8, %v7677_v32  ;;  %v1835_v40 = vsel %vm1804_vm9, %v1802_v7, %v1786_v63  ;;  %v1819_v51 = vsel %vm1804_vm9, %v1786_v63, %v1802_v7 }
 0x18e   : > { %5757 = vmatprep.mubr.msk.bf16.mxu1 %vm1017_vm8, %v1446_v60  ;;  %v1864_v60 = vsel %vm1838_vm10, %v1833_v26, 0.0  ;;  %9445 = vst [vmem:[#allocation54_spill] sm:$0xff] %v7709_v41  ;;  %v1866_v26 = vsel %vm1838_vm10, %v1834_v55, 0.0  ;;  %v1868_v0 = vsel %vm1838_vm10, %v1835_v40, 0.0  ;;  %v1836_v4 = vsel %vm1804_vm9, %v1803_v42, %v1787_v24  ;;  %v7766_v40 = vld [vmem:[#allocation3 + $0x40] sm:$0xff] }
 0x18f   : > { %v7725_v39 = vpack.c.bf16 %v1864_v60, %v1817_v44  ;;  %v7746_v54 = vpack.c.bf16 %v1866_v26, %v1818_v16  ;;  %v7748_v2 = vpack.c.bf16 %v1868_v0, %v1819_v51  ;;  %v1820_v7 = vsel %vm1804_vm9, %v1787_v24, %v1803_v42  ;;  %v7755_v60 = vld [vmem:[#allocation3 + $0x30] sm:$0xff]  ;;  %v7770_v24 = vld [vmem:[#allocation3 + $0x48] sm:$0xff]  ;;  %v7780_v0 = vld [vmem:[#allocation3 + $0x58] sm:$0xff] }
 0x190   : > { %v1870_v63 = vsel %vm1838_vm10, %v1836_v4, 0.0  ;;  %v4181_v55 = vrot.slane %v7755_v60, 1  ;;  %v7778_v51 = vld [vmem:[#allocation3 + $0x50] sm:$0xff] }
 0x191   : > { %9446 = vst [vmem:[#allocation55_spill] sm:$0xff] %v7725_v39  ;;  %9447 = vst [vmem:[#allocation56_spill] sm:$0xff] %v7746_v54  ;;  %v7768_v42 = vpack.c.bf16 %v1870_v63, %v1820_v7  ;;  %v4182_v63 = vrot.slane %v7766_v40, 1 }
 0x192   : > { %9448 = vst [vmem:[#allocation57_spill] sm:$0xff] %v7748_v2 }
 0x193   : > { %9449 = vst [vmem:[#allocation58_spill] sm:$0xff] %v7768_v42 }
 0x194   : > { %5812 = vmatmul.mubr.msk.bf16.gmra.mxu0 %vm1017_vm8, %v7709_v41 }
 0x195   : > { %5758 = vmatmul.mubr.msk.bf16.vlgmr.msra.gmra.mxu1 %vm1017_vm8, %v7605_v35  ;;  %5815 = vmatprep.mubr.msk.bf16.mxu0 %vm1017_vm8, %v7725_v39 }
 0x196   : > { %5824 = vmatpush3.bf16.msra.mxu1 %v2392_v25  ;;  %5761 = vmatprep.mubr.msk.bf16.mxu1 %vm1017_vm8, %v7172_v48  ;;  %v7744_v25 = vld [vmem:[#allocation3 + $0x38] sm:$0xff] }
 0x197   : > { %6069 = vmatprep.subr.msk.bf16.mxu1 %vm1249_vm6, %v7719_v30  ;;  %v4197_v44 = vrot.slane %v7744_v25, 1 }
 0x199   : > { %v7774_v16 = vsel %vm1804_vm9, %v4181_v55, %v4197_v44  ;;  %v4229_v26 = vsel %vm1804_vm9, %v4197_v44, %v4181_v55  ;;  %v7796_v44 = vld [vmem:[#allocation3 + $0x68] sm:$0xff]  ;;  %v4183_v55 = vrot.slane %v7778_v51, 1 }
 0x19a   : > { %9450 = vst [vmem:[#allocation59_spill] sm:$0xff] %v7774_v16  ;;  %v7784_v4 = vsel %vm1838_vm10, %v4229_v26, 0.0  ;;  %v4199_v26 = vrot.slane %v7780_v0, 1  ;;  %v4200_v16 = vrot.slane %v7796_v44, 1 }
 0x19b   : > { %9451 = vst [vmem:[#allocation60_spill] sm:$0xff] %v7784_v4  ;;  %v1453_v4 = vpack.c.bf16 %v7348_v28, %v7327_v31  ;;  %v7854_v31 = vld [vmem:[%s9314_s4 + $0x20] sm:$0xf] }
 0x19c   : > { %5816 = vmatmul.mubr.msk.bf16.gmra.mxu0 %vm1017_vm8, %v7746_v54  ;;  %v4198_v54 = vrot.slane %v7770_v24, 1  ;;  %v7816_v41 = vsel %vm1804_vm9, %v4183_v55, %v4199_v26  ;;  %v4231_v57 = vsel %vm1804_vm9, %v4199_v26, %v4183_v55  ;;  %v1454_v55 = vpack.c.bf16 %v7338_v61, %v7329_v46  ;;  %v7861_v61 = vld [vmem:[#allocation3 + $0x100] sm:$0xff] }
 0x19d   : > { %5762 = vmatmul.mubr.msk.bf16.gmra.mxu1 %vm1017_vm8, %v7617_v52  ;;  %5819 = vmatprep.mubr.msk.bf16.mxu0 %vm1017_vm8, %v7748_v2  ;;  %v7789_v2 = vld [vmem:[#allocation3 + $0x60] sm:$0xff]  ;;  %v2992_v28 = vrot.slane %v7861_v61, 1 }
 0x19e   : > { %5765 = vmatprep.mubr.msk.bf16.mxu1 %vm1017_vm8, %v7626_v45  ;;  %v7806_v7 = vsel %vm1804_vm9, %v4182_v63, %v4198_v54  ;;  %v4230_v39 = vsel %vm1804_vm9, %v4198_v54, %v4182_v63  ;;  %v4184_v32 = vrot.slane %v7789_v2, 1  ;;  %v7826_v54 = vsel %vm1838_vm10, %v4231_v57, 0.0 }
 0x19f   : > { %v3595_v57 = vsel %vm1249_vm6, %v7438_v27, 0  ;;  %v1455_v27 = vpack.c.bf16 %v7419_v15, %v7390_v21  ;;  %v3856_v15 = vpack.c.bf16 %v7770_v24, %v7766_v40 }
 0x1a0   : > { %v7832_v63 = vsel %vm1804_vm9, %v4184_v32, %v4200_v16 }
 0x1a4   : > { %5820 = vmatmul.mubr.msk.bf16.gmra.mxu0 %vm1017_vm8, %v7768_v42  ;;  %v7812_v42 = vsel %vm1838_vm10, %v4230_v39, 0.0  ;;  %v7849_v39 = vld [vmem:[#allocation3 + $0x108] sm:$0xff] }
 0x1a5   : > { %5766 = vmatmul.mubr.msk.bf16.gmra.mxu1 %vm1017_vm8, %v7647_v58  ;;  %5859 = vmatprep.mubr.msk.bf16.mxu0 %vm1017_vm8, %v7605_v35  ;;  %v4232_v35 = vsel %vm1804_vm9, %v4200_v16, %v4184_v32  ;;  %v1456_v32 = vpack.c.bf16 %v7400_v34, %v7392_v33  ;;  %v3855_v34 = vpack.c.bf16 %v7744_v25, %v7755_v60 }
 0x1a6   : > { %5769 = vmatprep.mubr.msk.bf16.mxu1 %vm1017_vm8, %v7671_v6  ;;  %v7844_v26 = vsel %vm1838_vm10, %v4232_v35, 0.0  ;;  %v1458_v35 = vpack.c.bf16 %v7489_v47, %v7481_v5  ;;  %v1459_v5 = vpack.c.bf16 %v7569_v17, %v7553_v13  ;;  %v1460_v47 = vpack.c.bf16 %v7557_v10, %v7540_v23  ;;  %v7937_v13 = vld [vmem:[#allocation3 + $0x20] sm:$0xff] }
 0x1a7   : > { %v4280_v46 = vpack.c.bf16 %v7844_v26, %v7832_v63  ;;  %v3140_v23 = vsel %vm1249_vm6, %v7719_v30, 0  ;;  %v3432_v17 = vrot.slane %v7937_v13, 7  ;;  %v3449_v30 = vrot.slane %v7744_v25, 7 }
 0x1ac   : > { %5860 = vmatmul.mubr.msk.bf16.vlgmr.msra.gmra.mxu0 %vm1017_vm8, %v7172_v48  ;;  %v3008_v48 = vrot.slane %v7849_v39, 1 }
 0x1ad   : > { %5770 = vmatmul.mubr.msk.bf16.gmra.mxu1 %vm1017_vm8, %v1453_v4  ;;  %5863 = vmatprep.mubr.msk.bf16.mxu0 %vm1017_vm8, %v7617_v52 }
 0x1ae   : > { %5773 = vmatprep.mubr.msk.bf16.mxu1 %vm1017_vm8, %v1454_v55  ;;  %5926 = vmatpush3.bf16.msra.mxu0 %v3595_v57  ;;  %v3024_v16 = vsel %vm1804_vm9, %v2992_v28, %v3008_v48  ;;  %v3040_v52 = vsel %vm1804_vm9, %v3008_v48, %v2992_v28  ;;  %v3858_v57 = vpack.c.bf16 %v7796_v44, %v7789_v2 }
 0x1af   : > { %6072 = vmatprep.subr.msk.bf16.mxu0 %vm1249_vm6, %v7854_v31  ;;  %v3072_v21 = vsel %vm1838_vm10, %v3040_v52, 0.0  ;;  %v3451_v52 = vrot.slane %v7780_v0, 7 }
 0x1b0   : > { %v7883_v33 = vpack.c.bf16 %v3072_v21, %v3024_v16  ;;  %v3452_v21 = vrot.slane %v7796_v44, 7 }
 0x1b4   : > { %5864 = vmatmul.mubr.msk.bf16.gmra.mxu0 %vm1017_vm8, %v7626_v45  ;;  %v1457_v45 = vpack.c.bf16 %v7505_v22, %v7479_v12  ;;  %v7904_v12 = vpack.c.bf16 %v7849_v39, %v7861_v61  ;;  %v7925_v22 = vld [vmem:[%s9314_s4 + $0x1c] sm:$0xf] }
 0x1b5   : > { %5774 = vmatmul.mubr.msk.bf16.gmra.mxu1 %vm1017_vm8, %v1455_v27  ;;  %5867 = vmatprep.mubr.msk.bf16.mxu0 %vm1017_vm8, %v7647_v58  ;;  %v3857_v58 = vpack.c.bf16 %v7780_v0, %v7778_v51 }
 0x1b6   : > { %5777 = vmatprep.mubr.msk.bf16.mxu1 %vm1017_vm8, %v1456_v32 }
 0x1bc   : > { %5868 = vmatmul.mubr.msk.bf16.gmra.mxu0 %vm1017_vm8, %v7671_v6 }
 0x1bd   : > { %5778 = vmatmul.mubr.msk.bf16.gmra.mxu1 %vm1017_vm8, %v1457_v45  ;;  %5871 = vmatprep.mubr.msk.bf16.mxu0 %vm1017_vm8, %v1453_v4  ;;  %v3433_v4 = vrot.slane %v7755_v60, 7 }
 0x1be   : > { %5781 = vmatprep.mubr.msk.bf16.mxu1 %vm1017_vm8, %v1458_v35 }
 0x1bf   : > { %v3481_v48 = vsel %vm1117_vm5, %v3449_v30, %v3433_v4 }
 0x1c4   : > { %5872 = vmatmul.mubr.msk.bf16.gmra.mxu0 %vm1017_vm8, %v1454_v55 }
 0x1c5   : > { %5782 = vmatmul.mubr.msk.bf16.gmra.mxu1 %vm1017_vm8, %v1459_v5  ;;  %5875 = vmatprep.mubr.msk.bf16.mxu0 %vm1017_vm8, %v1455_v27  ;;  %v3465_v27 = vsel %vm1117_vm5, %v3433_v4, %v3449_v30  ;;  %v2260_v4 = vrot.slane %v7849_v39, 7 }
 0x1c6   : > { %5785 = vmatprep.mubr.msk.bf16.mxu1 %vm1017_vm8, %v1460_v47 }
 0x1cc   : > { %5876 = vmatmul.mubr.msk.bf16.gmra.mxu0 %vm1017_vm8, %v1456_v32 }
 0x1cd   : > { %5786 = vmatmul.mubr.msk.bf16.gmra.mxu1 %vm1017_vm8, %v7691_v43  ;;  %5879 = vmatprep.mubr.msk.bf16.mxu0 %vm1017_vm8, %v1457_v45 }
 0x1ce   : > { %5825 = vmatprep.mubr.msk.bf16.mxu1 %vm1017_vm8, %v7213_v49  ;;  %v7933_v49 = vld [vmem:[#allocation3 + $0x28] sm:$0xff] }
 0x1cf   : > { %v3448_v10 = vrot.slane %v7933_v49, 7 }
 0x1d4   : > { %5880 = vmatmul.mubr.msk.bf16.gmra.mxu0 %vm1017_vm8, %v1458_v35  ;;  %v3435_v35 = vrot.slane %v7778_v51, 7 }
 0x1d5   : > { %5826 = vmatmul.mubr.msk.bf16.vlgmr.msra.gmra.mxu1 %vm1017_vm8, %v7215_v62  ;;  %5883 = vmatprep.mubr.msk.bf16.mxu0 %vm1017_vm8, %v1459_v5  ;;  %v3480_v62 = vsel %vm1117_vm5, %v3448_v10, %v3432_v17 }
 0x1d6   : > { %5892 = vmatpush3.bf16.msra.mxu1 %v3140_v23  ;;  %5829 = vmatprep.mubr.msk.bf16.mxu1 %vm1017_vm8, %v7271_v29  ;;  %v3464_v29 = vsel %vm1117_vm5, %v3432_v17, %v3448_v10  ;;  %v3496_v6 = vsel %vm1150_vm7, %v3480_v62, 0.0  ;;  %v4343_v23 = vsel %vm1249_vm6, %v7854_v31, 0  ;;  %v3483_v10 = vsel %vm1117_vm5, %v3451_v52, %v3435_v35 }
 0x1d7   : > { %6071 = vmatprep.subr.msk.bf16.mxu1 %vm1249_vm6, %v7925_v22  ;;  %v3528_v55 = vpack.c.bf16 %v3464_v29, %v3496_v6  ;;  %v3467_v31 = vsel %vm1117_vm5, %v3435_v35, %v3451_v52  ;;  %v3502_v62 = vsel %vm1150_vm7, %v3483_v10, 0.0 }
 0x1d8   : > { %v3531_v30 = vpack.c.bf16 %v3467_v31, %v3502_v62 }
 0x1dc   : > { %5884 = vmatmul.mubr.msk.bf16.gmra.mxu0 %vm1017_vm8, %v1460_v47  ;;  %v3436_v47 = vrot.slane %v7789_v2, 7 }
 0x1dd   : > { %5830 = vmatmul.mubr.msk.bf16.gmra.mxu1 %vm1017_vm8, %v7273_v56  ;;  %5887 = vmatprep.mubr.msk.bf16.mxu0 %vm1017_vm8, %v7691_v43  ;;  %v3450_v56 = vrot.slane %v7770_v24, 7 }
 0x1de   : > { %5833 = vmatprep.mubr.msk.bf16.mxu1 %vm1017_vm8, %v7334_v50  ;;  %v3434_v50 = vrot.slane %v7766_v40, 7  ;;  %v3484_v17 = vsel %vm1117_vm5, %v3452_v21, %v3436_v47  ;;  %v3468_v29 = vsel %vm1117_vm5, %v3436_v47, %v3452_v21 }
 0x1df   : > { %v3504_v6 = vsel %vm1150_vm7, %v3484_v17, 0.0 }
 0x1e0   : > { %v3482_v28 = vsel %vm1117_vm5, %v3450_v56, %v3434_v50  ;;  %v3466_v32 = vsel %vm1117_vm5, %v3434_v50, %v3450_v56  ;;  %v3532_v56 = vpack.c.bf16 %v3468_v29, %v3504_v6  ;;  %v9456_v6 = vld [vmem:[#allocation49_spill] sm:$0xff] }
 0x1e1   : > { %v3500_v16 = vsel %vm1150_vm7, %v3482_v28, 0.0 }
 0x1e2   : > { %v3530_v5 = vpack.c.bf16 %v3466_v32, %v3500_v16 }
 0x1e4   : > { %5888 = vmatmul.mubr.msk.bf16.gmra.mxu0 %vm1017_vm8, %v7904_v12 }
 0x1e5   : > { %5834 = vmatmul.mubr.msk.bf16.gmra.mxu1 %vm1017_vm8, %v7314_v18  ;;  %5927 = vmatprep.mubr.msk.bf16.mxu0 %vm1017_vm8, %v3528_v55  ;;  %v3498_v18 = vsel %vm1150_vm7, %v3481_v48, 0.0  ;;  %v2244_v55 = vrot.slane %v7861_v61, 7  ;;  %v8040_v61 = vld [vmem:[#allocation3 + $0x110] sm:$0xff]  ;;  %v8042_v48 = vld [vmem:[#allocation3 + $0x118] sm:$0xff] }
 0x1e6   : > { %5837 = vmatprep.mubr.msk.bf16.mxu1 %vm1017_vm8, %v7394_v11  ;;  %v3529_v45 = vpack.c.bf16 %v3465_v27, %v3498_v18  ;;  %v9453_v27 = vld [vmem:[#allocation46_spill] sm:$0xff]  ;;  %v3463_v18 = vrot.slane %v8042_v48, 7  ;;  %v4195_v25 = vrot.slane %v8040_v61, 1  ;;  %v4211_v60 = vrot.slane %v8042_v48, 1 }
 0x1e7   : > { %v2292_v50 = vsel %vm1117_vm5, %v2260_v4, %v2244_v55 }
 0x1ec   : > { %5928 = vmatmul.mubr.msk.bf16.vlgmr.msra.gmra.mxu0 %vm1017_vm8, %v3529_v45  ;;  %v9455_v45 = vld [vmem:[#allocation48_spill] sm:$0xff] }
 0x1ed   : > { %5838 = vmatmul.mubr.msk.bf16.gmra.mxu1 %vm1017_vm8, %v7396_v19  ;;  %5931 = vmatprep.mubr.msk.bf16.mxu0 %vm1017_vm8, %v3530_v5 }
 0x1ee   : > { %5841 = vmatprep.mubr.msk.bf16.mxu1 %vm1017_vm8, %v7483_v3  ;;  %5994 = vmatpush3.bf16.msra.mxu0 %v4343_v23 }
 0x1f4   : > { %5932 = vmatmul.mubr.msk.bf16.gmra.mxu0 %vm1017_vm8, %v3531_v30 }
 0x1f5   : > { %5842 = vmatmul.mubr.msk.bf16.gmra.mxu1 %vm1017_vm8, %v7485_v9  ;;  %5935 = vmatprep.mubr.msk.bf16.mxu0 %vm1017_vm8, %v3532_v56 }
 0x1f6   : > { %5845 = vmatprep.mubr.msk.bf16.mxu1 %vm1017_vm8, %v7549_v37 }
 0x1fc   : > { %5936 = vmatmul.mubr.msk.bf16.gmra.mxu0 %vm1017_vm8, %v7394_v11  ;;  %v2276_v11 = vsel %vm1117_vm5, %v2244_v55, %v2260_v4 }
 0x1fd   : > { %5846 = vmatmul.mubr.msk.bf16.gmra.mxu1 %vm1017_vm8, %v7561_v53  ;;  %5939 = vmatprep.mubr.msk.bf16.mxu0 %vm1017_vm8, %v7396_v19  ;;  %v2323_v19 = vsel %vm1150_vm7, %v2292_v50, 0.0 }
 0x1fe   : > { %5849 = vmatprep.mubr.msk.bf16.mxu1 %vm1017_vm8, %v7607_v1  ;;  %v2340_v39 = vpack.c.bf16 %v2276_v11, %v2323_v19  ;;  %v9457_v11 = vld [vmem:[#allocation51_spill] sm:$0xff]  ;;  %v9458_v19 = vld [vmem:[#allocation60_spill] sm:$0xff] }
 0x204   : > { %5940 = vmatmul.mubr.msk.bf16.gmra.mxu0 %vm1017_vm8, %v7483_v3  ;;  %v9452_v3 = vld [vmem:[#allocation45_spill] sm:$0xff] }
 0x205   : > { %5850 = vmatmul.mubr.msk.bf16.gmra.mxu1 %vm1017_vm8, %v7619_v36  ;;  %5943 = vmatprep.mubr.msk.bf16.mxu0 %vm1017_vm8, %v7485_v9  ;;  %v3921_v9 = vsel %vm1249_vm6, %v7925_v22, 0  ;;  %v3447_v22 = vrot.slane %v8040_v61, 7 }
 0x206   : > { %5853 = vmatprep.mubr.msk.bf16.mxu1 %vm1017_vm8, %v7665_v14 }
 0x207   : > { %v3495_v52 = vsel %vm1117_vm5, %v3463_v18, %v3447_v22  ;;  %v3479_v35 = vsel %vm1117_vm5, %v3447_v22, %v3463_v18  ;;  %v8113_v22 = vld [vmem:[#allocation3 + $0x78] sm:$0xff] }
 0x208   : > { %v3526_v5 = vsel %vm1150_vm7, %v3495_v52, 0.0  ;;  %v4201_v18 = vrot.slane %v8113_v22, 1 }
 0x209   : > { %v3543_v10 = vpack.c.bf16 %v3479_v35, %v3526_v5  ;;  %v9463_v5 = vld [vmem:[#allocation53_spill] sm:$0xff] }
 0x20c   : > { %5944 = vmatmul.mubr.msk.bf16.gmra.mxu0 %vm1017_vm8, %v7549_v37  ;;  %v9454_v37 = vld [vmem:[#allocation47_spill] sm:$0xff] }
 0x20d   : > { %5854 = vmatmul.mubr.msk.bf16.gmra.mxu1 %vm1017_vm8, %v2340_v39  ;;  %5947 = vmatprep.mubr.msk.bf16.mxu0 %vm1017_vm8, %v7561_v53 }
 0x20e   : > { %5893 = vmatprep.mubr.msk.bf16.mxu1 %vm1017_vm8, %v9452_v3  ;;  %v9461_v3 = vld [vmem:[#allocation52_spill] sm:$0xff] }
 0x213   : > { %v5725_v28 = vpop.f32.mrf.mxu0 }
 0x214   : > { %5948 = vmatmul.mubr.msk.bf16.gmra.mxu0 %vm1017_vm8, %v7607_v1  ;;  %1416 = vst.msk [vmem:[#allocation4 + $0x10] sm:$0xff] %vm1017_vm8, %v5725_v28  ;;  %v4196_v1 = vrot.slane %v7933_v49, 1 }
 0x215   : > { %5894 = vmatmul.mubr.msk.bf16.vlgmr.msra.gmra.mxu1 %vm1017_vm8, %v9453_v27  ;;  %5951 = vmatprep.mubr.msk.bf16.mxu0 %vm1017_vm8, %v7619_v36  ;;  %v1287_v53 = vpop.f32.mrf.mxu0  ;;  %v4180_v36 = vrot.slane %v7937_v13, 1 }
 0x216   : > { %5960 = vmatpush3.bf16.msra.mxu1 %v3921_v9  ;;  %5897 = vmatprep.mubr.msk.bf16.mxu1 %vm1017_vm8, %v9454_v37  ;;  %1414 = vst.msk [vmem:[#allocation4] sm:$0xff] %vm1017_vm8, %v1287_v53  ;;  %v9462_v9 = vpack.c.bf16 %v7812_v42, %v7806_v7 }
 0x217   : > { %v5726_v32 = vpop.f32.mrf.mxu0  ;;  %v4228_v47 = vsel %vm1804_vm9, %v4196_v1, %v4180_v36  ;;  %v4212_v17 = vsel %vm1804_vm9, %v4180_v36, %v4196_v1  ;;  %v8126_v36 = vld [vmem:[#allocation3 + $0x80] sm:$0xff] }
 0x218   : > { %1417 = vst.msk [vmem:[#allocation4 + $0x18] sm:$0xff] %vm1017_vm8, %v5726_v32  ;;  %v8117_v32 = vld [vmem:[#allocation3 + $0x88] sm:$0xff] }
 0x219   : > { %v1290_v16 = vpop.f32.mrf.mxu0  ;;  %v4202_v42 = vrot.slane %v8117_v32, 1 }
 0x21a   : > { %1415 = vst.msk [vmem:[#allocation4 + $0x8] sm:$0xff] %vm1017_vm8, %v1290_v16  ;;  %v8122_v16 = vld [vmem:[#allocation3 + $0x70] sm:$0xff] }
 0x21b   : > { %v5729_v21 = vpop.f32.mrf.mxu0  ;;  %v4185_v52 = vrot.slane %v8122_v16, 1 }
 0x21c   : > { %5952 = vmatmul.mubr.msk.bf16.gmra.mxu0 %vm1017_vm8, %v7665_v14  ;;  %1420 = vst.msk [vmem:[#allocation4 + $0x30] sm:$0xff] %vm1017_vm8, %v5729_v21  ;;  %v4186_v21 = vrot.slane %v8126_v36, 1 }
 0x21d   : > { %5898 = vmatmul.mubr.msk.bf16.gmra.mxu1 %vm1017_vm8, %v9455_v45  ;;  %5955 = vmatprep.mubr.msk.bf16.mxu0 %vm1017_vm8, %v2340_v39  ;;  %v1303_v23 = vpop.f32.mrf.mxu0  ;;  %v9459_v39 = vld [vmem:[#allocation59_spill] sm:$0xff] }
 0x21e   : > { %5901 = vmatprep.mubr.msk.bf16.mxu1 %vm1017_vm8, %v7547_v8  ;;  %1418 = vst.msk [vmem:[#allocation4 + $0x20] sm:$0xff] %vm1017_vm8, %v1303_v23  ;;  %v4245_v8 = vsel %vm1838_vm10, %v4228_v47, 0.0  ;;  %v9464_v47 = vpack.c.bf16 %v7826_v54, %v7816_v41  ;;  %v4233_v23 = vsel %vm1804_vm9, %v4201_v18, %v4185_v52  ;;  %v4217_v54 = vsel %vm1804_vm9, %v4185_v52, %v4201_v18  ;;  %v9468_v18 = vld [vmem:[#allocation56_spill] sm:$0xff] }
 0x21f   : > { %v5730_v14 = vpop.f32.mrf.mxu0  ;;  %v4276_v62 = vpack.c.bf16 %v4245_v8, %v4212_v17  ;;  %v4255_v8 = vsel %vm1838_vm10, %v4233_v23, 0.0  ;;  %v4218_v63 = vsel %vm1804_vm9, %v4186_v21, %v4202_v42 }
 0x220   : > { %1421 = vst.msk [vmem:[#allocation4 + $0x38] sm:$0xff] %vm1017_vm8, %v5730_v14  ;;  %v9465_v14 = vld [vmem:[#allocation54_spill] sm:$0xff] }
 0x221   : > { %v1306_v31 = vpop.f32.mrf.mxu0 }
 0x222   : > { %1419 = vst.msk [vmem:[#allocation4 + $0x28] sm:$0xff] %vm1017_vm8, %v1306_v31 }
 0x223   : > { %v5733_v29 = vpop.f32.mrf.mxu0 }
 0x224   : > { %5956 = vmatmul.mubr.msk.bf16.gmra.mxu0 %vm1017_vm8, %v3543_v10  ;;  %1424 = vst.msk [vmem:[#allocation4 + $0x50] sm:$0xff] %vm1017_vm8, %v5733_v29  ;;  %v4234_v10 = vsel %vm1804_vm9, %v4202_v42, %v4186_v21 }
 0x225   : > { %5902 = vmatmul.mubr.msk.bf16.gmra.mxu1 %vm1017_vm8, %v9456_v6  ;;  %5995 = vmatprep.mubr.msk.bf16.mxu0 %vm1017_vm8, %v4276_v62  ;;  %v1319_v30 = vpop.f32.mrf.mxu0  ;;  %v4257_v26 = vsel %vm1838_vm10, %v4234_v10, 0.0 }
 0x226   : > { %5905 = vmatprep.mubr.msk.bf16.mxu1 %vm1017_vm8, %v7610_v20  ;;  %1422 = vst.msk [vmem:[#allocation4 + $0x40] sm:$0xff] %vm1017_vm8, %v1319_v30  ;;  %v9460_v20 = vpack.c.bf16 %v9458_v19, %v9459_v39  ;;  %v8171_v19 = vld [vmem:[#allocation3 + $0xa0] sm:$0xff] }
 0x227   : > { %v5734_v56 = vpop.f32.mrf.mxu0  ;;  %v4188_v39 = vrot.slane %v8171_v19, 1 }
 0x228   : > { %1425 = vst.msk [vmem:[#allocation4 + $0x58] sm:$0xff] %vm1017_vm8, %v5734_v56  ;;  %v4281_v56 = vpack.c.bf16 %v4255_v8, %v4217_v54 }
 0x229   : > { %v1322_v4 = vpop.f32.mrf.mxu0 }
 0x22a   : > { %1423 = vst.msk [vmem:[#allocation4 + $0x48] sm:$0xff] %vm1017_vm8, %v1322_v4  ;;  %v8167_v4 = vld [vmem:[#allocation3 + $0x90] sm:$0xff] }
 0x22b   : > { %v5737_v55 = vpop.f32.mrf.mxu1  ;;  %v8093_v50 = vpop.f32.mrf.mxu0 }
 0x22c   : > { %5996 = vmatmul.mubr.msk.bf16.vlgmr.msra.gmra.mxu0 %vm1017_vm8, %v9460_v20  ;;  %1428 = vst.msk [vmem:[#allocation4 + $0x70] sm:$0xff] %vm1017_vm8, %v5737_v55  ;;  %v4187_v55 = vrot.slane %v8167_v4, 1 }
 0x22d   : > { %5906 = vmatmul.mubr.msk.bf16.gmra.mxu1 %vm1017_vm8, %v9457_v11  ;;  %5999 = vmatprep.mubr.msk.bf16.mxu0 %vm1017_vm8, %v9462_v9  ;;  %v1335_v28 = vpop.f32.mrf.mxu1  ;;  %v8108_v27 = vpop.f32.mrf.mxu0  ;;  %v4282_v11 = vpack.c.bf16 %v4257_v26, %v4218_v63  ;;  %v9466_v9 = vld [vmem:[#allocation55_spill] sm:$0xff] }
 0x22e   : > { %5909 = vmatprep.mubr.msk.bf16.mxu1 %vm1017_vm8, %v9461_v3  ;;  %1426 = vst.msk [vmem:[#allocation4 + $0x60] sm:$0xff] %vm1017_vm8, %v1335_v28  ;;  %v9467_v28 = vld [vmem:[#allocation50_spill] sm:$0xff] }
 0x22f   : > { %v5738_v37 = vpop.f32.mrf.mxu1  ;;  %v8111_v53 = vpop.f32.mrf.mxu0  ;;  %v4219_v21 = vsel %vm1804_vm9, %v4187_v55, %v9467_v28 }
 0x230   : > { %1429 = vst.msk [vmem:[#allocation4 + $0x78] sm:$0xff] %vm1017_vm8, %v5738_v37  ;;  %v4235_v37 = vsel %vm1804_vm9, %v9467_v28, %v4187_v55 }
 0x231   : > { %v1338_v7 = vpop.f32.mrf.mxu1  ;;  %v8120_v1 = vpop.f32.mrf.mxu0 }
 0x232   : > { %1427 = vst.msk [vmem:[#allocation4 + $0x68] sm:$0xff] %vm1017_vm8, %v1338_v7 }
 0x233   : > { %v8129_v35 = vpop.f32.mrf.mxu0 }
 0x234   : > { %v5741_v45 = vpop.f32.mrf.mxu1  ;;  %6000 = vmatmul.mubr.msk.bf16.gmra.mxu0 %vm1017_vm8, %v9464_v47 }
 0x235   : > { %5910 = vmatmul.mubr.msk.bf16.gmra.mxu1 %vm1017_vm8, %v9463_v5  ;;  %1432 = vst.msk [vmem:[#allocation4 + $0x90] sm:$0xff] %vm1017_vm8, %v5741_v45  ;;  %6003 = vmatprep.mubr.msk.bf16.mxu0 %vm1017_vm8, %v4280_v46  ;;  %v8148_v41 = vpop.f32.mrf.mxu0  ;;  %v8162_v46 = vld [vmem:[#allocation3 + $0xa8] sm:$0xff]  ;;  %v4259_v45 = vsel %vm1838_vm10, %v4235_v37, 0.0  ;;  %v3854_v37 = vpack.c.bf16 %v7933_v49, %v7937_v13 }
 0x236   : > { %5913 = vmatprep.mubr.msk.bf16.mxu1 %vm1017_vm8, %v9465_v14  ;;  %v1351_v17 = vpop.f32.mrf.mxu1  ;;  %v4204_v29 = vrot.slane %v8162_v46, 1  ;;  %v4283_v8 = vpack.c.bf16 %v4259_v45, %v4219_v21 }
 0x237   : > { %1430 = vst.msk [vmem:[#allocation4 + $0x80] sm:$0xff] %vm1017_vm8, %v1351_v17  ;;  %v8155_v62 = vpop.f32.mrf.mxu0 }
 0x238   : > { %v5742_v31 = vpop.f32.mrf.mxu1  ;;  %v4236_v42 = vsel %vm1804_vm9, %v4204_v29, %v4188_v39  ;;  %v4220_v23 = vsel %vm1804_vm9, %v4188_v39, %v4204_v29  ;;  %v9470_v29 = vld [vmem:[#allocation58_spill] sm:$0xff] }
 0x239   : > { %1433 = vst.msk [vmem:[#allocation4 + $0x98] sm:$0xff] %vm1017_vm8, %v5742_v31  ;;  %v8165_v30 = vpop.f32.mrf.mxu0  ;;  %v4261_v10 = vsel %vm1838_vm10, %v4236_v42, 0.0 }
 0x23a   : > { %v1354_v6 = vpop.f32.mrf.mxu1  ;;  %v4284_v31 = vpack.c.bf16 %v4261_v10, %v4220_v23  ;;  %v1678_v10 = vld [vmem:[#allocation4 + $0x10] sm:$0xff] }
 0x23b   : > { %1431 = vst.msk [vmem:[#allocation4 + $0x88] sm:$0xff] %vm1017_vm8, %v1354_v6  ;;  %v9469_v6 = vld [vmem:[#allocation57_spill] sm:$0xff] }
 0x23c   : > { %v8174_v3 = vpop.f32.mrf.mxu0  ;;  %6004 = vmatmul.mubr.msk.bf16.gmra.mxu0 %vm1017_vm8, %v4281_v56 }
 0x23d   : > { %v5745_v20 = vpop.f32.mrf.mxu1  ;;  %5914 = vmatmul.mubr.msk.bf16.gmra.mxu1 %vm1017_vm8, %v9466_v9  ;;  %6007 = vmatprep.mubr.msk.bf16.mxu0 %vm1017_vm8, %v4282_v11 }
 0x23e   : > { %1436 = vst.msk [vmem:[#allocation4 + $0xb0] sm:$0xff] %vm1017_vm8, %v5745_v20  ;;  %5917 = vmatprep.mubr.msk.bf16.mxu1 %vm1017_vm8, %v9468_v18  ;;  %v8188_v52 = vpop.f32.mrf.mxu0 }
 0x23f   : > { %v1367_v7 = vpop.f32.mrf.mxu1 }
 0x240   : > { %1434 = vst.msk [vmem:[#allocation4 + $0xa0] sm:$0xff] %vm1017_vm8, %v1367_v7  ;;  %v8196_v47 = vpop.f32.mrf.mxu0 }
 0x241   : > { %v5746_v5 = vpop.f32.mrf.mxu1 }
 0x242   : > { %1437 = vst.msk [vmem:[#allocation4 + $0xb8] sm:$0xff] %vm1017_vm8, %v5746_v5  ;;  %v8203_v54 = vpop.f32.mrf.mxu0 }
 0x243   : > { %v1370_v17 = vpop.f32.mrf.mxu1 }
 0x244   : > { %1435 = vst.msk [vmem:[#allocation4 + $0xa8] sm:$0xff] %vm1017_vm8, %v1370_v17  ;;  %v8206_v26 = vpop.f32.mrf.mxu0  ;;  %6008 = vmatmul.mubr.msk.bf16.gmra.mxu0 %vm1017_vm8, %v4283_v8 }
 0x245   : > { %v5749_v63 = vpop.f32.mrf.mxu1  ;;  %5918 = vmatmul.mubr.msk.bf16.gmra.mxu1 %vm1017_vm8, %v9469_v6  ;;  %6011 = vmatprep.mubr.msk.bf16.mxu0 %vm1017_vm8, %v4284_v31  ;;  %v1676_v31 = vld [vmem:[#allocation4] sm:$0xff] }
 0x246   : > { %1440 = vst.msk [vmem:[#allocation4 + $0xd0] sm:$0xff] %vm1017_vm8, %v5749_v63  ;;  %5921 = vmatprep.mubr.msk.bf16.mxu1 %vm1017_vm8, %v9470_v29  ;;  %v8215_v55 = vpop.f32.mrf.mxu0 }
 0x247   : > { %v1383_v56 = vpop.f32.mrf.mxu1 }
 0x248   : > { %1438 = vst.msk [vmem:[#allocation4 + $0xc0] sm:$0xff] %vm1017_vm8, %v1383_v56  ;;  %v8218_v39 = vpop.f32.mrf.mxu0  ;;  %v1679_v56 = vld [vmem:[#allocation4 + $0x18] sm:$0xff] }
 0x249   : > { %v5750_v11 = vpop.f32.mrf.mxu1 }
 0x24a   : > { %1441 = vst.msk [vmem:[#allocation4 + $0xd8] sm:$0xff] %vm1017_vm8, %v5750_v11  ;;  %v8221_v28 = vpop.f32.mrf.mxu0 }
 0x24b   : > { %v1386_v20 = vpop.f32.mrf.mxu1 }
 0x24c   : > { %1439 = vst.msk [vmem:[#allocation4 + $0xc8] sm:$0xff] %vm1017_vm8, %v1386_v20  ;;  %v8226_v7 = vpop.f32.mrf.mxu0  ;;  %6012 = vmatmul.mubr.msk.bf16.gmra.mxu0 %vm1017_vm8, %v9465_v14  ;;  %v4243_v20 = vsel %vm1804_vm9, %v4211_v60, %v4195_v25 }
 0x24d   : > { %v5753_v42 = vpop.f32.mrf.mxu1  ;;  %5922 = vmatmul.mubr.msk.bf16.gmra.mxu1 %vm1017_vm8, %v7883_v33  ;;  %6015 = vmatprep.mubr.msk.bf16.mxu0 %vm1017_vm8, %v9466_v9  ;;  %v4275_v51 = vsel %vm1838_vm10, %v4243_v20, 0.0 }
 0x24e   : > { %1444 = vst.msk [vmem:[#allocation4 + $0xf0] sm:$0xff] %vm1017_vm8, %v5753_v42  ;;  %5961 = vmatprep.mubr.msk.bf16.mxu1 %vm1017_vm8, %v3854_v37  ;;  %v8236_v45 = vpop.f32.mrf.mxu0 }
 0x24f   : > { %v1399_v21 = vpop.f32.mrf.mxu1 }
 0x250   : > { %1442 = vst.msk [vmem:[#allocation4 + $0xe0] sm:$0xff] %vm1017_vm8, %v1399_v21  ;;  %v8239_v13 = vpop.f32.mrf.mxu0  ;;  %v1682_v21 = vld [vmem:[#allocation4 + $0x30] sm:$0xff] }
 0x251   : > { %v5754_v49 = vpop.f32.mrf.mxu1 }
 0x252   : > { %1445 = vst.msk [vmem:[#allocation4 + $0xf8] sm:$0xff] %vm1017_vm8, %v5754_v49  ;;  %v8242_v23 = vpop.f32.mrf.mxu0 }
 0x253   : > { %v1402_v5 = vpop.f32.mrf.mxu1 }
 0x254   : > { %1443 = vst.msk [vmem:[#allocation4 + $0xe8] sm:$0xff] %vm1017_vm8, %v1402_v5  ;;  %v8245_v17 = vpop.f32.mrf.mxu0  ;;  %6016 = vmatmul.mubr.msk.bf16.gmra.mxu0 %vm1017_vm8, %v9468_v18 }
 0x255   : > { %v5759_v14 = vpop.f32.mrf.mxu1  ;;  %5962 = vmatmul.mubr.msk.bf16.vlgmr.msra.gmra.mxu1 %vm1017_vm8, %v3855_v34  ;;  %6019 = vmatprep.mubr.msk.bf16.mxu0 %vm1017_vm8, %v9469_v6 }
 0x256   : > { %v1710_v9 = vadd.f32 %v5759_v14, %v1678_v10  ;;  %5965 = vmatprep.mubr.msk.bf16.mxu1 %vm1017_vm8, %v3856_v15  ;;  %v8259_v63 = vpop.f32.mrf.mxu0  ;;  %v1677_v15 = vld [vmem:[#allocation4 + $0x8] sm:$0xff]  ;;  %v4227_v14 = vsel %vm1804_vm9, %v4195_v25, %v4211_v60 }
 0x257   : > { %v1549_v8 = vpop.f32.mrf.mxu1  ;;  %v1681_v60 = vld [vmem:[#allocation4 + $0x28] sm:$0xff] }
 0x258   : > { %1742 = vst.msk [vmem:[#allocation4 + $0x10] sm:$0xff] %vm1017_vm8, %v1710_v9  ;;  %v1708_v34 = vadd.f32 %v1676_v31, %v1549_v8  ;;  %v8264_v11 = vpop.f32.mrf.mxu0 }
 0x259   : > { %v5760_v18 = vpop.f32.mrf.mxu1 }
 0x25a   : > { %1740 = vst.msk [vmem:[#allocation4] sm:$0xff] %vm1017_vm8, %v1708_v34  ;;  %v1711_v40 = vadd.f32 %v5760_v18, %v1679_v56  ;;  %v8267_v6 = vpop.f32.mrf.mxu0 }
 0x25b   : > { %v1552_v24 = vpop.f32.mrf.mxu1 }
 0x25c   : > { %1743 = vst.msk [vmem:[#allocation4 + $0x18] sm:$0xff] %vm1017_vm8, %v1711_v40  ;;  %v1709_v37 = vadd.f32 %v1677_v15, %v1552_v24  ;;  %v8272_v49 = vpop.f32.mrf.mxu0  ;;  %6020 = vmatmul.mubr.msk.bf16.gmra.mxu0 %vm1017_vm8, %v9470_v29  ;;  %v3860_v40 = vpack.c.bf16 %v8117_v32, %v8126_v36 }
 0x25d   : > { %v5763_v42 = vpop.f32.mrf.mxu1  ;;  %5966 = vmatmul.mubr.msk.bf16.gmra.mxu1 %vm1017_vm8, %v3857_v58  ;;  %6023 = vmatprep.mubr.msk.bf16.mxu0 %vm1017_vm8, %v7883_v33  ;;  %v1680_v58 = vld [vmem:[#allocation4 + $0x20] sm:$0xff]  ;;  %v4291_v33 = vpack.c.bf16 %v4275_v51, %v4227_v14  ;;  %v1687_v51 = vld [vmem:[#allocation4 + $0x58] sm:$0xff] }
 0x25e   : > { %1741 = vst.msk [vmem:[#allocation4 + $0x8] sm:$0xff] %vm1017_vm8, %v1709_v37  ;;  %v1714_v5 = vadd.f32 %v5763_v42, %v1682_v21  ;;  %5969 = vmatprep.mubr.msk.bf16.mxu1 %vm1017_vm8, %v3858_v57  ;;  %v8291_v29 = vpop.f32.mrf.mxu0  ;;  %v1683_v57 = vld [vmem:[#allocation4 + $0x38] sm:$0xff] }
 0x25f   : > { %v1565_v0 = vpop.f32.mrf.mxu1  ;;  %v2103_v10 = vld [vmem:[#allocation4 + $0x10] sm:$0xff] }
 0x260   : > { %1746 = vst.msk [vmem:[#allocation4 + $0x30] sm:$0xff] %vm1017_vm8, %v1714_v5  ;;  %v1712_v9 = vadd.f32 %v1680_v58, %v1565_v0  ;;  %v2135_v2 = vadd.f32 %v8093_v50, %v2103_v10  ;;  %v8295_v8 = vpop.f32.mrf.mxu0  ;;  %v3859_v50 = vpack.c.bf16 %v8113_v22, %v8122_v16 }
 0x261   : > { %v5764_v44 = vpop.f32.mrf.mxu1  ;;  %v2101_v38 = vld [vmem:[#allocation4] sm:$0xff] }
 0x262   : > { %1744 = vst.msk [vmem:[#allocation4 + $0x20] sm:$0xff] %vm1017_vm8, %v1712_v9  ;;  %v1715_v59 = vadd.f32 %v5764_v44, %v1683_v57  ;;  %2167 = vst.msk [vmem:[#allocation4 + $0x10] sm:$0xff] %vm1017_vm8, %v2135_v2  ;;  %v2133_v31 = vadd.f32 %v2101_v38, %v8108_v27  ;;  %v8300_v34 = vpop.f32.mrf.mxu0  ;;  %v1686_v27 = vld [vmem:[#allocation4 + $0x50] sm:$0xff]  ;;  %v1685_v2 = vld [vmem:[#allocation4 + $0x48] sm:$0xff] }
 0x263   : > { %v1568_v25 = vpop.f32.mrf.mxu1  ;;  %v2104_v18 = vld [vmem:[#allocation4 + $0x18] sm:$0xff] }
 0x264   : > { %1747 = vst.msk [vmem:[#allocation4 + $0x38] sm:$0xff] %vm1017_vm8, %v1715_v59  ;;  %v1713_v56 = vadd.f32 %v1681_v60, %v1568_v25  ;;  %2165 = vst.msk [vmem:[#allocation4] sm:$0xff] %vm1017_vm8, %v2133_v31  ;;  %v2136_v24 = vadd.f32 %v8111_v53, %v2104_v18  ;;  %v8309_v20 = vpop.f32.mrf.mxu0  ;;  %6024 = vmatmul.mubr.msk.bf16.gmra.mxu0 %vm1017_vm8, %v4291_v33  ;;  %v1684_v53 = vld [vmem:[#allocation4 + $0x40] sm:$0xff]  ;;  %v6254_v57 = vld [vmem:[#allocation3 + $0x98] sm:$0xff]  ;;  %v3862_v59 = vpack.c.bf16 %v8162_v46, %v8171_v19 }
 0x265   : > { %v5767_v15 = vpop.f32.mrf.mxu1  ;;  %5970 = vmatmul.mubr.msk.bf16.gmra.mxu1 %vm1017_vm8, %v3859_v50  ;;  %v2102_v22 = vld [vmem:[#allocation4 + $0x8] sm:$0xff]  ;;  %v3861_v33 = vpack.c.bf16 %v6254_v57, %v8167_v4  ;;  %v1688_v18 = vld [vmem:[#allocation4 + $0x60] sm:$0xff] }
 0x266   : > { %1745 = vst.msk [vmem:[#allocation4 + $0x28] sm:$0xff] %vm1017_vm8, %v1713_v56  ;;  %v1718_v16 = vadd.f32 %v5767_v15, %v1686_v27  ;;  %5973 = vmatprep.mubr.msk.bf16.mxu1 %vm1017_vm8, %v3860_v40  ;;  %2168 = vst.msk [vmem:[#allocation4 + $0x18] sm:$0xff] %vm1017_vm8, %v2136_v24  ;;  %v2134_v32 = vadd.f32 %v2102_v22, %v8120_v1  ;;  %v8317_v37 = vpop.f32.mrf.mxu0  ;;  %v1691_v27 = vld [vmem:[#allocation4 + $0x78] sm:$0xff] }
 0x267   : > { %v1581_v36 = vpop.f32.mrf.mxu1  ;;  %v2107_v42 = vld [vmem:[#allocation4 + $0x30] sm:$0xff] }
 0x268   : > { %1750 = vst.msk [vmem:[#allocation4 + $0x50] sm:$0xff] %vm1017_vm8, %v1718_v16  ;;  %v1716_v21 = vadd.f32 %v1684_v53, %v1581_v36  ;;  %2166 = vst.msk [vmem:[#allocation4 + $0x8] sm:$0xff] %vm1017_vm8, %v2134_v32  ;;  %v2139_v5 = vadd.f32 %v8129_v35, %v2107_v42  ;;  %v8322_v0 = vpop.f32.mrf.mxu0  ;;  %v1689_v53 = vld [vmem:[#allocation4 + $0x68] sm:$0xff] }
 0x269   : > { %v5768_v14 = vpop.f32.mrf.mxu1  ;;  %v2105_v58 = vld [vmem:[#allocation4 + $0x20] sm:$0xff] }
 0x26a   : > { %1748 = vst.msk [vmem:[#allocation4 + $0x40] sm:$0xff] %vm1017_vm8, %v1716_v21  ;;  %v1719_v1 = vadd.f32 %v5768_v14, %v1687_v51  ;;  %2171 = vst.msk [vmem:[#allocation4 + $0x30] sm:$0xff] %vm1017_vm8, %v2139_v5  ;;  %v2137_v10 = vadd.f32 %v2105_v58, %v8148_v41  ;;  %v8327_v44 = vpop.f32.mrf.mxu0  ;;  %v1690_v41 = vld [vmem:[#allocation4 + $0x70] sm:$0xff]  ;;  %v6256_v5 = vld [vmem:[#allocation3 + $0xb8] sm:$0xff] }
 0x26b   : > { %v1584_v9 = vpop.f32.mrf.mxu1  ;;  %v2108_v35 = vld [vmem:[#allocation4 + $0x38] sm:$0xff]  ;;  %v6255_v21 = vld [vmem:[#allocation3 + $0xb0] sm:$0xff]  ;;  %v6257_v58 = vld [vmem:[#allocation3 + $0xc0] sm:$0xff] }
 0x26c   : > { %1751 = vst.msk [vmem:[#allocation4 + $0x58] sm:$0xff] %vm1017_vm8, %v1719_v1  ;;  %v1717_v38 = vadd.f32 %v1685_v2, %v1584_v9  ;;  %2169 = vst.msk [vmem:[#allocation4 + $0x20] sm:$0xff] %vm1017_vm8, %v2137_v10  ;;  %v2140_v31 = vadd.f32 %v8155_v62, %v2108_v35  ;;  %v8335_v60 = vpop.f32.mrf.mxu0  ;;  %v3863_v14 = vpack.c.bf16 %v6256_v5, %v6255_v21  ;;  %v6258_v1 = vld [vmem:[#allocation3 + $0xc8] sm:$0xff] }
 0x26d   : > { %v5771_v25 = vpop.f32.mrf.mxu1  ;;  %5974 = vmatmul.mubr.msk.bf16.gmra.mxu1 %vm1017_vm8, %v3861_v33  ;;  %v2106_v50 = vld [vmem:[#allocation4 + $0x28] sm:$0xff]  ;;  %v3864_v10 = vpack.c.bf16 %v6258_v1, %v6257_v58 }
 0x26e   : > { %1749 = vst.msk [vmem:[#allocation4 + $0x48] sm:$0xff] %vm1017_vm8, %v1717_v38  ;;  %v1722_v4 = vadd.f32 %v5771_v25, %v1690_v41  ;;  %5977 = vmatprep.mubr.msk.bf16.mxu1 %vm1017_vm8, %v3862_v59  ;;  %2172 = vst.msk [vmem:[#allocation4 + $0x38] sm:$0xff] %vm1017_vm8, %v2140_v31  ;;  %v2138_v46 = vadd.f32 %v2106_v50, %v8165_v30  ;;  %v8342_v56 = vpop.f32.mrf.mxu0  ;;  %v1692_v31 = vld [vmem:[#allocation4 + $0x80] sm:$0xff]  ;;  %v6262_v21 = vld [vmem:[#allocation3 + $0xe8] sm:$0xff] }
 0x26f   : > { %v1597_v19 = vpop.f32.mrf.mxu1  ;;  %v2111_v62 = vld [vmem:[#allocation4 + $0x50] sm:$0xff] }
 0x270   : > { %1754 = vst.msk [vmem:[#allocation4 + $0x70] sm:$0xff] %vm1017_vm8, %v1722_v4  ;;  %v1720_v40 = vadd.f32 %v1688_v18, %v1597_v19  ;;  %2170 = vst.msk [vmem:[#allocation4 + $0x28] sm:$0xff] %vm1017_vm8, %v2138_v46  ;;  %v2143_v24 = vadd.f32 %v8174_v3, %v2111_v62  ;;  %v8347_v22 = vpop.f32.mrf.mxu0  ;;  %v1695_v46 = vld [vmem:[#allocation4 + $0x98] sm:$0xff] }
 0x271   : > { %v5772_v15 = vpop.f32.mrf.mxu1  ;;  %v2109_v16 = vld [vmem:[#allocation4 + $0x40] sm:$0xff] }
 0x272   : > { %1752 = vst.msk [vmem:[#allocation4 + $0x60] sm:$0xff] %vm1017_vm8, %v1720_v40  ;;  %v1723_v30 = vadd.f32 %v5772_v15, %v1691_v27  ;;  %2175 = vst.msk [vmem:[#allocation4 + $0x50] sm:$0xff] %vm1017_vm8, %v2143_v24  ;;  %v2141_v32 = vadd.f32 %v2109_v16, %v8188_v52  ;;  %v8352_v42 = vpop.f32.mrf.mxu0  ;;  %v1694_v52 = vld [vmem:[#allocation4 + $0x90] sm:$0xff]  ;;  %v4760_v40 = vld [vmem:[%s9317_s7] sm:$0xf] }
 0x273   : > { %v1600_v36 = vpop.f32.mrf.mxu1  ;;  %v2112_v3 = vld [vmem:[#allocation4 + $0x58] sm:$0xff]  ;;  %v1693_v15 = vld [vmem:[#allocation4 + $0x88] sm:$0xff]  ;;  %6073 = vmatprep.subr.msk.bf16.mxu1 %vm1249_vm6, %v4760_v40 }
 0x274   : > { %1755 = vst.msk [vmem:[#allocation4 + $0x78] sm:$0xff] %vm1017_vm8, %v1723_v30  ;;  %v1721_v51 = vadd.f32 %v1689_v53, %v1600_v36  ;;  %2173 = vst.msk [vmem:[#allocation4 + $0x40] sm:$0xff] %vm1017_vm8, %v2141_v32  ;;  %v2144_v9 = vadd.f32 %v8196_v47, %v2112_v3  ;;  %v8357_v57 = vpop.f32.mrf.mxu0  ;;  %v6260_v16 = vld [vmem:[#allocation3 + $0xd8] sm:$0xff]  ;;  %v6261_v53 = vld [vmem:[#allocation3 + $0xe0] sm:$0xff] }
 0x275   : > { %v5775_v2 = vpop.f32.mrf.mxu1  ;;  %5978 = vmatmul.mubr.msk.bf16.gmra.mxu1 %vm1017_vm8, %v3863_v14  ;;  %v2110_v33 = vld [vmem:[#allocation4 + $0x48] sm:$0xff]  ;;  %v4810_v14 = vsel %vm1249_vm6, %v4760_v40, 0 }
 0x276   : > { %1753 = vst.msk [vmem:[#allocation4 + $0x68] sm:$0xff] %vm1017_vm8, %v1721_v51  ;;  %v1726_v35 = vadd.f32 %v5775_v2, %v1694_v52  ;;  %5981 = vmatprep.mubr.msk.bf16.mxu1 %vm1017_vm8, %v3864_v10  ;;  %2176 = vst.msk [vmem:[#allocation4 + $0x58] sm:$0xff] %vm1017_vm8, %v2144_v9  ;;  %v2142_v38 = vadd.f32 %v2110_v33, %v8203_v54  ;;  %v8364_v25 = vpop.f32.mrf.mxu0  ;;  %v1698_v51 = vld [vmem:[#allocation4 + $0xb0] sm:$0xff]  ;;  %6028 = vmatpush3.bf16.msra.mxu1 %v4810_v14  ;;  %v1696_v2 = vld [vmem:[#allocation4 + $0xa0] sm:$0xff] }
 0x277   : > { %v1613_v59 = vpop.f32.mrf.mxu1  ;;  %v2115_v47 = vld [vmem:[#allocation4 + $0x70] sm:$0xff] }
 0x278   : > { %1758 = vst.msk [vmem:[#allocation4 + $0x90] sm:$0xff] %vm1017_vm8, %v1726_v35  ;;  %v1724_v41 = vadd.f32 %v1692_v31, %v1613_v59  ;;  %2174 = vst.msk [vmem:[#allocation4 + $0x48] sm:$0xff] %vm1017_vm8, %v2142_v38  ;;  %v2147_v50 = vadd.f32 %v8206_v26, %v2115_v47  ;;  %v8369_v19 = vpop.f32.mrf.mxu0  ;;  %v6259_v26 = vld [vmem:[#allocation3 + $0xd0] sm:$0xff]  ;;  %v1699_v31 = vld [vmem:[#allocation4 + $0xb8] sm:$0xff] }
 0x279   : > { %v5776_v4 = vpop.f32.mrf.mxu1  ;;  %v2113_v18 = vld [vmem:[#allocation4 + $0x60] sm:$0xff]  ;;  %v3865_v30 = vpack.c.bf16 %v6260_v16, %v6259_v26 }
 0x27a   : > { %1756 = vst.msk [vmem:[#allocation4 + $0x80] sm:$0xff] %vm1017_vm8, %v1724_v41  ;;  %v1727_v54 = vadd.f32 %v5776_v4, %v1695_v46  ;;  %2179 = vst.msk [vmem:[#allocation4 + $0x70] sm:$0xff] %vm1017_vm8, %v2147_v50  ;;  %v2145_v62 = vadd.f32 %v2113_v18, %v8215_v55  ;;  %v8377_v27 = vpop.f32.mrf.mxu0  ;;  %v3866_v55 = vpack.c.bf16 %v6262_v21, %v6261_v53  ;;  %v1697_v46 = vld [vmem:[#allocation4 + $0xa8] sm:$0xff] }
 0x27b   : > { %v1616_v24 = vpop.f32.mrf.mxu1  ;;  %v2116_v32 = vld [vmem:[#allocation4 + $0x78] sm:$0xff] }
 0x27c   : > { %1759 = vst.msk [vmem:[#allocation4 + $0x98] sm:$0xff] %vm1017_vm8, %v1727_v54  ;;  %v1725_v36 = vadd.f32 %v1693_v15, %v1616_v24  ;;  %2177 = vst.msk [vmem:[#allocation4 + $0x60] sm:$0xff] %vm1017_vm8, %v2145_v62  ;;  %v2148_v5 = vadd.f32 %v8218_v39, %v2116_v32  ;;  %v8384_v58 = vpop.f32.mrf.mxu0  ;;  %v1702_v24 = vld [vmem:[#allocation4 + $0xd0] sm:$0xff] }
 0x27d   : > { %v5779_v3 = vpop.f32.mrf.mxu1  ;;  %5982 = vmatmul.mubr.msk.bf16.gmra.mxu1 %vm1017_vm8, %v3865_v30  ;;  %v2114_v1 = vld [vmem:[#allocation4 + $0x68] sm:$0xff] }
 0x27e   : > { %1757 = vst.msk [vmem:[#allocation4 + $0x88] sm:$0xff] %vm1017_vm8, %v1725_v36  ;;  %v1730_v10 = vadd.f32 %v5779_v3, %v1698_v51  ;;  %5985 = vmatprep.mubr.msk.bf16.mxu1 %vm1017_vm8, %v3866_v55  ;;  %2180 = vst.msk [vmem:[#allocation4 + $0x78] sm:$0xff] %vm1017_vm8, %v2148_v5  ;;  %v2146_v9 = vadd.f32 %v2114_v1, %v8221_v28  ;;  %v8391_v52 = vpop.f32.mrf.mxu0  ;;  %v1703_v55 = vld [vmem:[#allocation4 + $0xd8] sm:$0xff]  ;;  %v1701_v1 = vld [vmem:[#allocation4 + $0xc8] sm:$0xff] }
 0x27f   : > { %v1629_v39 = vpop.f32.mrf.mxu1  ;;  %v2119_v33 = vld [vmem:[#allocation4 + $0x90] sm:$0xff] }
 0x280   : > { %1762 = vst.msk [vmem:[#allocation4 + $0xb0] sm:$0xff] %vm1017_vm8, %v1730_v10  ;;  %v1728_v35 = vadd.f32 %v1696_v2, %v1629_v39  ;;  %2178 = vst.msk [vmem:[#allocation4 + $0x68] sm:$0xff] %vm1017_vm8, %v2146_v9  ;;  %v2151_v38 = vadd.f32 %v8226_v7, %v2119_v33  ;;  %v8396_v47 = vpop.f32.mrf.mxu0  ;;  %v1706_v39 = vld [vmem:[#allocation4 + $0xf0] sm:$0xff] }
 0x281   : > { %v5780_v59 = vpop.f32.mrf.mxu1  ;;  %v2117_v41 = vld [vmem:[#allocation4 + $0x80] sm:$0xff] }
 0x282   : > { %1760 = vst.msk [vmem:[#allocation4 + $0xa0] sm:$0xff] %vm1017_vm8, %v1728_v35  ;;  %v1731_v28 = vadd.f32 %v5780_v59, %v1699_v31  ;;  %2183 = vst.msk [vmem:[#allocation4 + $0x90] sm:$0xff] %vm1017_vm8, %v2151_v38  ;;  %v2149_v50 = vadd.f32 %v2117_v41, %v8236_v45  ;;  %v8401_v18 = vpop.f32.mrf.mxu0  ;;  %v1704_v59 = vld [vmem:[#allocation4 + $0xe0] sm:$0xff] }
 0x283   : > { %v1632_v4 = vpop.f32.mrf.mxu1  ;;  %v2120_v54 = vld [vmem:[#allocation4 + $0x98] sm:$0xff] }
 0x284   : > { %1763 = vst.msk [vmem:[#allocation4 + $0xb8] sm:$0xff] %vm1017_vm8, %v1731_v28  ;;  %v1729_v7 = vadd.f32 %v1697_v46, %v1632_v4  ;;  %2181 = vst.msk [vmem:[#allocation4 + $0x80] sm:$0xff] %vm1017_vm8, %v2149_v50  ;;  %v2152_v62 = vadd.f32 %v8239_v13, %v2120_v54  ;;  %v8406_v15 = vpop.f32.mrf.mxu0  ;;  %v1700_v13 = vld [vmem:[#allocation4 + $0xc0] sm:$0xff]  ;;  %v1707_v4 = vld [vmem:[#allocation4 + $0xf8] sm:$0xff] }
 0x285   : > { %v5783_v40 = vpop.f32.mrf.mxu1  ;;  %5986 = vmatmul.mubr.msk.bf16.gmra.mxu1 %vm1017_vm8, %v7691_v43  ;;  %v2118_v45 = vld [vmem:[#allocation4 + $0x88] sm:$0xff] }
 0x286   : > { %1761 = vst.msk [vmem:[#allocation4 + $0xa8] sm:$0xff] %vm1017_vm8, %v1729_v7  ;;  %v1734_v26 = vadd.f32 %v5783_v40, %v1702_v24  ;;  %5989 = vmatprep.mubr.msk.bf16.mxu1 %vm1017_vm8, %v7904_v12  ;;  %2184 = vst.msk [vmem:[#allocation4 + $0x98] sm:$0xff] %vm1017_vm8, %v2152_v62  ;;  %v2150_v16 = vadd.f32 %v2118_v45, %v8242_v23  ;;  %v8415_v32 = vpop.f32.mrf.mxu0  ;;  %v3869_v12 = vpack.c.bf16 %v8042_v48, %v8040_v61  ;;  %v1705_v40 = vld [vmem:[#allocation4 + $0xe8] sm:$0xff] }
 0x287   : > { %v1645_v30 = vpop.f32.mrf.mxu1  ;;  %v2123_v36 = vld [vmem:[#allocation4 + $0xb0] sm:$0xff] }
 0x288   : > { %1766 = vst.msk [vmem:[#allocation4 + $0xd0] sm:$0xff] %vm1017_vm8, %v1734_v26  ;;  %v1732_v53 = vadd.f32 %v1700_v13, %v1645_v30  ;;  %2182 = vst.msk [vmem:[#allocation4 + $0x88] sm:$0xff] %vm1017_vm8, %v2150_v16  ;;  %v2155_v43 = vadd.f32 %v8245_v17, %v2123_v36  ;;  %v8420_v5 = vpop.f32.mrf.mxu0  ;;  %v2557_v30 = vld [vmem:[#allocation4 + $0x10] sm:$0xff] }
 0x289   : > { %v5784_v21 = vpop.f32.mrf.mxu1  ;;  %v2121_v23 = vld [vmem:[#allocation4 + $0xa0] sm:$0xff] }
 0x28a   : > { %1764 = vst.msk [vmem:[#allocation4 + $0xc0] sm:$0xff] %vm1017_vm8, %v1732_v53  ;;  %v1735_v14 = vadd.f32 %v5784_v21, %v1703_v55  ;;  %2187 = vst.msk [vmem:[#allocation4 + $0xb0] sm:$0xff] %vm1017_vm8, %v2155_v43  ;;  %v2153_v3 = vadd.f32 %v2121_v23, %v8259_v63  ;;  %v8427_v10 = vpop.f32.mrf.mxu0  ;;  %v2555_v21 = vld [vmem:[#allocation4] sm:$0xff] }
 0x28b   : > { %v1648_v51 = vpop.f32.mrf.mxu1  ;;  %v2124_v17 = vld [vmem:[#allocation4 + $0xb8] sm:$0xff] }
 0x28c   : > { %1767 = vst.msk [vmem:[#allocation4 + $0xd8] sm:$0xff] %vm1017_vm8, %v1735_v14  ;;  %v1733_v9 = vadd.f32 %v1701_v1, %v1648_v51  ;;  %2185 = vst.msk [vmem:[#allocation4 + $0xa0] sm:$0xff] %vm1017_vm8, %v2153_v3  ;;  %v2156_v61 = vadd.f32 %v8264_v11, %v2124_v17  ;;  %v8432_v2 = vpop.f32.mrf.mxu0  ;;  %v2558_v3 = vld [vmem:[#allocation4 + $0x18] sm:$0xff] }
 0x28d   : > { %v5787_v48 = vpop.f32.mrf.mxu1  ;;  %5990 = vmatmul.mubr.msk.bf16.gmra.mxu1 %vm1017_vm8, %v3869_v12  ;;  %v2122_v33 = vld [vmem:[#allocation4 + $0xa8] sm:$0xff] }
 0x28e   : > { %1765 = vst.msk [vmem:[#allocation4 + $0xc8] sm:$0xff] %vm1017_vm8, %v1733_v9  ;;  %v1738_v63 = vadd.f32 %v5787_v48, %v1706_v39  ;;  %2188 = vst.msk [vmem:[#allocation4 + $0xb8] sm:$0xff] %vm1017_vm8, %v2156_v61  ;;  %v2154_v35 = vadd.f32 %v2122_v33, %v8267_v6  ;;  %v8438_v31 = vpop.f32.mrf.mxu0  ;;  %v2556_v61 = vld [vmem:[#allocation4 + $0x8] sm:$0xff] }
 0x28f   : > { %v1661_v38 = vpop.f32.mrf.mxu1  ;;  %v2127_v41 = vld [vmem:[#allocation4 + $0xd0] sm:$0xff] }
 0x290   : > { %1770 = vst.msk [vmem:[#allocation4 + $0xf0] sm:$0xff] %vm1017_vm8, %v1738_v63  ;;  %v1736_v11 = vadd.f32 %v1704_v59, %v1661_v38  ;;  %2186 = vst.msk [vmem:[#allocation4 + $0xa8] sm:$0xff] %vm1017_vm8, %v2154_v35  ;;  %v2159_v28 = vadd.f32 %v8272_v49, %v2127_v41  ;;  %v8443_v46 = vpop.f32.mrf.mxu0  ;;  %v2561_v35 = vld [vmem:[#allocation4 + $0x30] sm:$0xff] }
 0x291   : > { %v5788_v50 = vpop.f32.mrf.mxu1  ;;  %v2125_v54 = vld [vmem:[#allocation4 + $0xc0] sm:$0xff] }
 0x292   : > { %1768 = vst.msk [vmem:[#allocation4 + $0xe0] sm:$0xff] %vm1017_vm8, %v1736_v11  ;;  %v1739_v6 = vadd.f32 %v5788_v50, %v1707_v4  ;;  %2191 = vst.msk [vmem:[#allocation4 + $0xd0] sm:$0xff] %vm1017_vm8, %v2159_v28  ;;  %v2157_v7 = vadd.f32 %v2125_v54, %v8291_v29  ;;  %v8448_v24 = vpop.f32.mrf.mxu0  ;;  %v2559_v28 = vld [vmem:[#allocation4 + $0x20] sm:$0xff] }
 0x293   : > { %v1664_v62 = vpop.f32.mrf.mxu1  ;;  %v2128_v45 = vld [vmem:[#allocation4 + $0xd8] sm:$0xff] }
 0x294   : > { %1771 = vst.msk [vmem:[#allocation4 + $0xf8] sm:$0xff] %vm1017_vm8, %v1739_v6  ;;  %v1737_v49 = vadd.f32 %v1705_v40, %v1664_v62  ;;  %2189 = vst.msk [vmem:[#allocation4 + $0xc0] sm:$0xff] %vm1017_vm8, %v2157_v7  ;;  %v2160_v26 = vadd.f32 %v8295_v8, %v2128_v45  ;;  %v8453_v13 = vpop.f32.mrf.mxu0  ;;  %v2562_v7 = vld [vmem:[#allocation4 + $0x38] sm:$0xff] }
 0x295   : > { %v5827_v16 = vpop.f32.mrf.mxu1  ;;  %v2126_v36 = vld [vmem:[#allocation4 + $0xc8] sm:$0xff] }
 0x296   : > { %1769 = vst.msk [vmem:[#allocation4 + $0xe8] sm:$0xff] %vm1017_vm8, %v1737_v49  ;;  %v2589_v29 = vadd.f32 %v5827_v16, %v2557_v30  ;;  %2192 = vst.msk [vmem:[#allocation4 + $0xd8] sm:$0xff] %vm1017_vm8, %v2160_v26  ;;  %v2158_v53 = vadd.f32 %v2126_v36, %v8300_v34  ;;  %v8458_v55 = vpop.f32.mrf.mxu0  ;;  %v2560_v26 = vld [vmem:[#allocation4 + $0x28] sm:$0xff] }
 0x297   : > { %v2428_v43 = vpop.f32.mrf.mxu1  ;;  %v2131_v12 = vld [vmem:[#allocation4 + $0xf0] sm:$0xff] }
 0x298   : > { %2621 = vst.msk [vmem:[#allocation4 + $0x10] sm:$0xff] %vm1017_vm8, %v2589_v29  ;;  %v2587_v8 = vadd.f32 %v2555_v21, %v2428_v43  ;;  %2190 = vst.msk [vmem:[#allocation4 + $0xc8] sm:$0xff] %vm1017_vm8, %v2158_v53  ;;  %v2163_v23 = vadd.f32 %v8309_v20, %v2131_v12  ;;  %v8463_v51 = vpop.f32.mrf.mxu0  ;;  %v2565_v53 = vld [vmem:[#allocation4 + $0x50] sm:$0xff] }
 0x299   : > { %v5828_v14 = vpop.f32.mrf.mxu1  ;;  %v2129_v1 = vld [vmem:[#allocation4 + $0xe0] sm:$0xff] }
 0x29a   : > { %2619 = vst.msk [vmem:[#allocation4] sm:$0xff] %vm1017_vm8, %v2587_v8  ;;  %v2590_v34 = vadd.f32 %v5828_v14, %v2558_v3  ;;  %2195 = vst.msk [vmem:[#allocation4 + $0xf0] sm:$0xff] %vm1017_vm8, %v2163_v23  ;;  %v2161_v17 = vadd.f32 %v2129_v1, %v8317_v37  ;;  %v8468_v48 = vpop.f32.mrf.mxu0  ;;  %v2563_v23 = vld [vmem:[#allocation4 + $0x40] sm:$0xff] }
 0x29b   : > { %v2431_v9 = vpop.f32.mrf.mxu1  ;;  %v2132_v39 = vld [vmem:[#allocation4 + $0xf8] sm:$0xff] }
 0x29c   : > { %2622 = vst.msk [vmem:[#allocation4 + $0x18] sm:$0xff] %vm1017_vm8, %v2590_v34  ;;  %v2588_v20 = vadd.f32 %v2556_v61, %v2431_v9  ;;  %2193 = vst.msk [vmem:[#allocation4 + $0xe0] sm:$0xff] %vm1017_vm8, %v2161_v17  ;;  %v2164_v33 = vadd.f32 %v8322_v0, %v2132_v39  ;;  %v8473_v38 = vpop.f32.mrf.mxu0  ;;  %v2566_v17 = vld [vmem:[#allocation4 + $0x58] sm:$0xff] }
 0x29d   : > { %v5831_v63 = vpop.f32.mrf.mxu1  ;;  %v2130_v59 = vld [vmem:[#allocation4 + $0xe8] sm:$0xff] }
 0x29e   : > { %2620 = vst.msk [vmem:[#allocation4 + $0x8] sm:$0xff] %vm1017_vm8, %v2588_v20  ;;  %v2593_v37 = vadd.f32 %v5831_v63, %v2561_v35  ;;  %2196 = vst.msk [vmem:[#allocation4 + $0xf8] sm:$0xff] %vm1017_vm8, %v2164_v33  ;;  %v2162_v41 = vadd.f32 %v2130_v59, %v8327_v44  ;;  %v8478_v50 = vpop.f32.mrf.mxu0  ;;  %v2564_v33 = vld [vmem:[#allocation4 + $0x48] sm:$0xff] }
 0x29f   : > { %v2444_v11 = vpop.f32.mrf.mxu1  ;;  %v2883_v4 = vld [vmem:[#allocation4 + $0x10] sm:$0xff] }
 0x2a0   : > { %2625 = vst.msk [vmem:[#allocation4 + $0x30] sm:$0xff] %vm1017_vm8, %v2593_v37  ;;  %v2591_v0 = vadd.f32 %v2559_v28, %v2444_v11  ;;  %2194 = vst.msk [vmem:[#allocation4 + $0xe8] sm:$0xff] %vm1017_vm8, %v2162_v41  ;;  %v2915_v54 = vadd.f32 %v8335_v60, %v2883_v4  ;;  %v8483_v62 = vpop.f32.mrf.mxu0  ;;  %v2569_v41 = vld [vmem:[#allocation4 + $0x70] sm:$0xff] }
 0x2a1   : > { %v5832_v6 = vpop.f32.mrf.mxu1  ;;  %v2881_v40 = vld [vmem:[#allocation4] sm:$0xff] }
 0x2a2   : > { %2623 = vst.msk [vmem:[#allocation4 + $0x20] sm:$0xff] %vm1017_vm8, %v2591_v0  ;;  %v2594_v44 = vadd.f32 %v5832_v6, %v2562_v7  ;;  %2947 = vst.msk [vmem:[#allocation4 + $0x10] sm:$0xff] %vm1017_vm8, %v2915_v54  ;;  %v2913_v45 = vadd.f32 %v2881_v40, %v8342_v56  ;;  %v8488_v16 = vpop.f32.mrf.mxu0  ;;  %v2567_v54 = vld [vmem:[#allocation4 + $0x60] sm:$0xff] }
 0x2a3   : > { %v2447_v49 = vpop.f32.mrf.mxu1  ;;  %v2884_v30 = vld [vmem:[#allocation4 + $0x18] sm:$0xff] }
 0x2a4   : > { %2626 = vst.msk [vmem:[#allocation4 + $0x38] sm:$0xff] %vm1017_vm8, %v2594_v44  ;;  %v2592_v60 = vadd.f32 %v2560_v26, %v2447_v49  ;;  %2945 = vst.msk [vmem:[#allocation4] sm:$0xff] %vm1017_vm8, %v2913_v45  ;;  %v2916_v36 = vadd.f32 %v8347_v22, %v2884_v30  ;;  %v8493_v43 = vpop.f32.mrf.mxu0  ;;  %v2570_v45 = vld [vmem:[#allocation4 + $0x78] sm:$0xff] }
 0x2a5   : > { %v5835_v29 = vpop.f32.mrf.mxu1  ;;  %v2882_v21 = vld [vmem:[#allocation4 + $0x8] sm:$0xff] }
 0x2a6   : > { %2624 = vst.msk [vmem:[#allocation4 + $0x28] sm:$0xff] %vm1017_vm8, %v2592_v60  ;;  %v2597_v56 = vadd.f32 %v5835_v29, %v2565_v53  ;;  %2948 = vst.msk [vmem:[#allocation4 + $0x18] sm:$0xff] %vm1017_vm8, %v2916_v36  ;;  %v2914_v12 = vadd.f32 %v2882_v21, %v8352_v42  ;;  %v8498_v14 = vpop.f32.mrf.mxu0  ;;  %v2568_v36 = vld [vmem:[#allocation4 + $0x68] sm:$0xff] }
 0x2a7   : > { %v2460_v8 = vpop.f32.mrf.mxu1  ;;  %v2887_v3 = vld [vmem:[#allocation4 + $0x30] sm:$0xff] }
 0x2a8   : > { %2629 = vst.msk [vmem:[#allocation4 + $0x50] sm:$0xff] %vm1017_vm8, %v2597_v56  ;;  %v2595_v22 = vadd.f32 %v2563_v23, %v2460_v8  ;;  %2946 = vst.msk [vmem:[#allocation4 + $0x8] sm:$0xff] %vm1017_vm8, %v2914_v12  ;;  %v2919_v1 = vadd.f32 %v8357_v57, %v2887_v3  ;;  %v8503_v9 = vpop.f32.mrf.mxu0  ;;  %v2573_v12 = vld [vmem:[#allocation4 + $0x90] sm:$0xff] }
 0x2a9   : > { %v5836_v34 = vpop.f32.mrf.mxu1  ;;  %v2885_v61 = vld [vmem:[#allocation4 + $0x20] sm:$0xff] }
 0x2aa   : > { %2627 = vst.msk [vmem:[#allocation4 + $0x40] sm:$0xff] %vm1017_vm8, %v2595_v22  ;;  %v2598_v42 = vadd.f32 %v5836_v34, %v2566_v17  ;;  %2951 = vst.msk [vmem:[#allocation4 + $0x30] sm:$0xff] %vm1017_vm8, %v2919_v1  ;;  %v2917_v39 = vadd.f32 %v2885_v61, %v8364_v25  ;;  %v8508_v63 = vpop.f32.mrf.mxu0  ;;  %v2571_v1 = vld [vmem:[#allocation4 + $0x80] sm:$0xff] }
 0x2ab   : > { %v2463_v20 = vpop.f32.mrf.mxu1  ;;  %v2888_v35 = vld [vmem:[#allocation4 + $0x38] sm:$0xff] }
 0x2ac   : > { %2630 = vst.msk [vmem:[#allocation4 + $0x58] sm:$0xff] %vm1017_vm8, %v2598_v42  ;;  %v2596_v57 = vadd.f32 %v2564_v33, %v2463_v20  ;;  %2949 = vst.msk [vmem:[#allocation4 + $0x20] sm:$0xff] %vm1017_vm8, %v2917_v39  ;;  %v2920_v59 = vadd.f32 %v8369_v19, %v2888_v35  ;;  %v8513_v11 = vpop.f32.mrf.mxu0  ;;  %v2574_v39 = vld [vmem:[#allocation4 + $0x98] sm:$0xff] }
 0x2ad   : > { %v5839_v37 = vpop.f32.mrf.mxu1  ;;  %v2886_v28 = vld [vmem:[#allocation4 + $0x28] sm:$0xff] }
 0x2ae   : > { %2628 = vst.msk [vmem:[#allocation4 + $0x48] sm:$0xff] %vm1017_vm8, %v2596_v57  ;;  %v2601_v25 = vadd.f32 %v5839_v37, %v2569_v41  ;;  %2952 = vst.msk [vmem:[#allocation4 + $0x38] sm:$0xff] %vm1017_vm8, %v2920_v59  ;;  %v2918_v4 = vadd.f32 %v2886_v28, %v8377_v27  ;;  %v8518_v6 = vpop.f32.mrf.mxu0  ;;  %v2572_v59 = vld [vmem:[#allocation4 + $0x88] sm:$0xff] }
 0x2af   : > { %v2476_v0 = vpop.f32.mrf.mxu1  ;;  %v2891_v7 = vld [vmem:[#allocation4 + $0x50] sm:$0xff] }
 0x2b0   : > { %2633 = vst.msk [vmem:[#allocation4 + $0x70] sm:$0xff] %vm1017_vm8, %v2601_v25  ;;  %v2599_v19 = vadd.f32 %v2567_v54, %v2476_v0  ;;  %2950 = vst.msk [vmem:[#allocation4 + $0x28] sm:$0xff] %vm1017_vm8, %v2918_v4  ;;  %v2923_v40 = vadd.f32 %v8384_v58, %v2891_v7  ;;  %v8523_v49 = vpop.f32.mrf.mxu0  ;;  %v2577_v4 = vld [vmem:[#allocation4 + $0xb0] sm:$0xff] }
 0x2b1   : > { %v5840_v44 = vpop.f32.mrf.mxu1  ;;  %v2889_v26 = vld [vmem:[#allocation4 + $0x40] sm:$0xff] }
 0x2b2   : > { %2631 = vst.msk [vmem:[#allocation4 + $0x60] sm:$0xff] %vm1017_vm8, %v2599_v19  ;;  %v2602_v27 = vadd.f32 %v5840_v44, %v2570_v45  ;;  %2955 = vst.msk [vmem:[#allocation4 + $0x50] sm:$0xff] %vm1017_vm8, %v2923_v40  ;;  %v2921_v30 = vadd.f32 %v2889_v26, %v8391_v52  ;;  %v8528_v29 = vpop.f32.mrf.mxu0  ;;  %v2575_v40 = vld [vmem:[#allocation4 + $0xa0] sm:$0xff] }
 0x2b3   : > { %v2479_v60 = vpop.f32.mrf.mxu1  ;;  %v2892_v53 = vld [vmem:[#allocation4 + $0x58] sm:$0xff] }
 0x2b4   : > { %2634 = vst.msk [vmem:[#allocation4 + $0x78] sm:$0xff] %vm1017_vm8, %v2602_v27  ;;  %v2600_v58 = vadd.f32 %v2568_v36, %v2479_v60  ;;  %2953 = vst.msk [vmem:[#allocation4 + $0x40] sm:$0xff] %vm1017_vm8, %v2921_v30  ;;  %v2924_v21 = vadd.f32 %v8396_v47, %v2892_v53  ;;  %v8533_v8 = vpop.f32.mrf.mxu0  ;;  %v2578_v30 = vld [vmem:[#allocation4 + $0xb8] sm:$0xff] }
 0x2b5   : > { %v5843_v56 = vpop.f32.mrf.mxu1  ;;  %v2890_v23 = vld [vmem:[#allocation4 + $0x48] sm:$0xff] }
 0x2b6   : > { %2632 = vst.msk [vmem:[#allocation4 + $0x68] sm:$0xff] %vm1017_vm8, %v2600_v58  ;;  %v2605_v52 = vadd.f32 %v5843_v56, %v2573_v12  ;;  %2956 = vst.msk [vmem:[#allocation4 + $0x58] sm:$0xff] %vm1017_vm8, %v2924_v21  ;;  %v2922_v3 = vadd.f32 %v2890_v23, %v8401_v18  ;;  %v8538_v34 = vpop.f32.mrf.mxu0  ;;  %v2576_v21 = vld [vmem:[#allocation4 + $0xa8] sm:$0xff] }
 0x2b7   : > { %v2492_v22 = vpop.f32.mrf.mxu1  ;;  %v2895_v17 = vld [vmem:[#allocation4 + $0x70] sm:$0xff] }
 0x2b8   : > { %2637 = vst.msk [vmem:[#allocation4 + $0x90] sm:$0xff] %vm1017_vm8, %v2605_v52  ;;  %v2603_v47 = vadd.f32 %v2571_v1, %v2492_v22  ;;  %2954 = vst.msk [vmem:[#allocation4 + $0x48] sm:$0xff] %vm1017_vm8, %v2922_v3  ;;  %v2927_v61 = vadd.f32 %v8406_v15, %v2895_v17  ;;  %v8543_v20 = vpop.f32.mrf.mxu0  ;;  %v2581_v3 = vld [vmem:[#allocation4 + $0xd0] sm:$0xff] }
 0x2b9   : > { %v5844_v42 = vpop.f32.mrf.mxu1  ;;  %v2893_v33 = vld [vmem:[#allocation4 + $0x60] sm:$0xff] }
 0x2ba   : > { %2635 = vst.msk [vmem:[#allocation4 + $0x80] sm:$0xff] %vm1017_vm8, %v2603_v47  ;;  %v2606_v18 = vadd.f32 %v5844_v42, %v2574_v39  ;;  %2959 = vst.msk [vmem:[#allocation4 + $0x70] sm:$0xff] %vm1017_vm8, %v2927_v61  ;;  %v2925_v35 = vadd.f32 %v2893_v33, %v8415_v32  ;;  %v8548_v37 = vpop.f32.mrf.mxu0  ;;  %v2579_v61 = vld [vmem:[#allocation4 + $0xc0] sm:$0xff] }
 0x2bb   : > { %v2495_v57 = vpop.f32.mrf.mxu1  ;;  %v2896_v41 = vld [vmem:[#allocation4 + $0x78] sm:$0xff] }
 0x2bc   : > { %2638 = vst.msk [vmem:[#allocation4 + $0x98] sm:$0xff] %vm1017_vm8, %v2606_v18  ;;  %v2604_v15 = vadd.f32 %v2572_v59, %v2495_v57  ;;  %2957 = vst.msk [vmem:[#allocation4 + $0x60] sm:$0xff] %vm1017_vm8, %v2925_v35  ;;  %v2928_v28 = vadd.f32 %v8420_v5, %v2896_v41  ;;  %v8553_v0 = vpop.f32.mrf.mxu0  ;;  %v2582_v35 = vld [vmem:[#allocation4 + $0xd8] sm:$0xff] }
 0x2bd   : > { %v5847_v25 = vpop.f32.mrf.mxu1  ;;  %v2894_v54 = vld [vmem:[#allocation4 + $0x68] sm:$0xff] }
 0x2be   : > { %2636 = vst.msk [vmem:[#allocation4 + $0x88] sm:$0xff] %vm1017_vm8, %v2604_v15  ;;  %v2609_v32 = vadd.f32 %v5847_v25, %v2577_v4  ;;  %2960 = vst.msk [vmem:[#allocation4 + $0x78] sm:$0xff] %vm1017_vm8, %v2928_v28  ;;  %v2926_v7 = vadd.f32 %v2894_v54, %v8427_v10  ;;  %v8558_v44 = vpop.f32.mrf.mxu0  ;;  %v2580_v28 = vld [vmem:[#allocation4 + $0xc8] sm:$0xff] }
 0x2bf   : > { %v2508_v19 = vpop.f32.mrf.mxu1  ;;  %v2899_v45 = vld [vmem:[#allocation4 + $0x90] sm:$0xff] }
 0x2c0   : > { %2641 = vst.msk [vmem:[#allocation4 + $0xb0] sm:$0xff] %vm1017_vm8, %v2609_v32  ;;  %v2607_v5 = vadd.f32 %v2575_v40, %v2508_v19  ;;  %2958 = vst.msk [vmem:[#allocation4 + $0x68] sm:$0xff] %vm1017_vm8, %v2926_v7  ;;  %v2931_v26 = vadd.f32 %v8432_v2, %v2899_v45  ;;  %v8563_v60 = vpop.f32.mrf.mxu0  ;;  %v2585_v7 = vld [vmem:[#allocation4 + $0xf0] sm:$0xff] }
 0x2c1   : > { %v5848_v27 = vpop.f32.mrf.mxu1  ;;  %v2897_v36 = vld [vmem:[#allocation4 + $0x80] sm:$0xff] }
 0x2c2   : > { %2639 = vst.msk [vmem:[#allocation4 + $0xa0] sm:$0xff] %vm1017_vm8, %v2607_v5  ;;  %v2610_v10 = vadd.f32 %v5848_v27, %v2578_v30  ;;  %2963 = vst.msk [vmem:[#allocation4 + $0x90] sm:$0xff] %vm1017_vm8, %v2931_v26  ;;  %v2929_v53 = vadd.f32 %v2897_v36, %v8438_v31  ;;  %v8568_v56 = vpop.f32.mrf.mxu0  ;;  %v2583_v26 = vld [vmem:[#allocation4 + $0xe0] sm:$0xff] }
 0x2c3   : > { %v2511_v58 = vpop.f32.mrf.mxu1  ;;  %v2900_v12 = vld [vmem:[#allocation4 + $0x98] sm:$0xff] }
 0x2c4   : > { %2642 = vst.msk [vmem:[#allocation4 + $0xb8] sm:$0xff] %vm1017_vm8, %v2610_v10  ;;  %v2608_v2 = vadd.f32 %v2576_v21, %v2511_v58  ;;  %2961 = vst.msk [vmem:[#allocation4 + $0x80] sm:$0xff] %vm1017_vm8, %v2929_v53  ;;  %v2932_v23 = vadd.f32 %v8443_v46, %v2900_v12  ;;  %v8573_v22 = vpop.f32.mrf.mxu0  ;;  %v2586_v53 = vld [vmem:[#allocation4 + $0xf8] sm:$0xff] }
 0x2c5   : > { %v5851_v52 = vpop.f32.mrf.mxu1  ;;  %v2898_v1 = vld [vmem:[#allocation4 + $0x88] sm:$0xff] }
 0x2c6   : > { %2640 = vst.msk [vmem:[#allocation4 + $0xa8] sm:$0xff] %vm1017_vm8, %v2608_v2  ;;  %v2613_v31 = vadd.f32 %v5851_v52, %v2581_v3  ;;  %2964 = vst.msk [vmem:[#allocation4 + $0x98] sm:$0xff] %vm1017_vm8, %v2932_v23  ;;  %v2930_v17 = vadd.f32 %v2898_v1, %v8448_v24  ;;  %v8578_v42 = vpop.f32.mrf.mxu0  ;;  %v2584_v23 = vld [vmem:[#allocation4 + $0xe8] sm:$0xff] }
 0x2c7   : > { %v2524_v47 = vpop.f32.mrf.mxu1  ;;  %v2903_v39 = vld [vmem:[#allocation4 + $0xb0] sm:$0xff] }
 0x2c8   : > { %2645 = vst.msk [vmem:[#allocation4 + $0xd0] sm:$0xff] %vm1017_vm8, %v2613_v31  ;;  %v2611_v46 = vadd.f32 %v2579_v61, %v2524_v47  ;;  %2962 = vst.msk [vmem:[#allocation4 + $0x88] sm:$0xff] %vm1017_vm8, %v2930_v17  ;;  %v2935_v33 = vadd.f32 %v8453_v13, %v2903_v39  ;;  %v8583_v57 = vpop.f32.mrf.mxu0  ;;  %v3305_v17 = vld [vmem:[#allocation4 + $0x10] sm:$0xff] }
 0x2c9   : > { %v5852_v18 = vpop.f32.mrf.mxu1  ;;  %v2901_v59 = vld [vmem:[#allocation4 + $0xa0] sm:$0xff] }
 0x2ca   : > { %2643 = vst.msk [vmem:[#allocation4 + $0xc0] sm:$0xff] %vm1017_vm8, %v2611_v46  ;;  %v2614_v24 = vadd.f32 %v5852_v18, %v2582_v35  ;;  %2967 = vst.msk [vmem:[#allocation4 + $0xb0] sm:$0xff] %vm1017_vm8, %v2935_v33  ;;  %v2933_v41 = vadd.f32 %v2901_v59, %v8458_v55  ;;  %v8588_v25 = vpop.f32.mrf.mxu0  ;;  %v3303_v33 = vld [vmem:[#allocation4] sm:$0xff] }
 0x2cb   : > { %v2527_v15 = vpop.f32.mrf.mxu1  ;;  %v2904_v4 = vld [vmem:[#allocation4 + $0xb8] sm:$0xff] }
 0x2cc   : > { %2646 = vst.msk [vmem:[#allocation4 + $0xd8] sm:$0xff] %vm1017_vm8, %v2614_v24  ;;  %v2612_v13 = vadd.f32 %v2580_v28, %v2527_v15  ;;  %2965 = vst.msk [vmem:[#allocation4 + $0xa0] sm:$0xff] %vm1017_vm8, %v2933_v41  ;;  %v2936_v54 = vadd.f32 %v8463_v51, %v2904_v4  ;;  %v8593_v19 = vpop.f32.mrf.mxu0  ;;  %v3306_v41 = vld [vmem:[#allocation4 + $0x18] sm:$0xff] }
 0x2cd   : > { %v5855_v32 = vpop.f32.mrf.mxu1  ;;  %v2902_v40 = vld [vmem:[#allocation4 + $0xa8] sm:$0xff] }
 0x2ce   : > { %2644 = vst.msk [vmem:[#allocation4 + $0xc8] sm:$0xff] %vm1017_vm8, %v2612_v13  ;;  %v2617_v55 = vadd.f32 %v5855_v32, %v2585_v7  ;;  %2968 = vst.msk [vmem:[#allocation4 + $0xb8] sm:$0xff] %vm1017_vm8, %v2936_v54  ;;  %v2934_v45 = vadd.f32 %v2902_v40, %v8468_v48  ;;  %v8598_v27 = vpop.f32.mrf.mxu0  ;;  %v3304_v54 = vld [vmem:[#allocation4 + $0x8] sm:$0xff] }
 0x2cf   : > { %v2540_v5 = vpop.f32.mrf.mxu1  ;;  %v2907_v30 = vld [vmem:[#allocation4 + $0xd0] sm:$0xff] }
 0x2d0   : > { %2649 = vst.msk [vmem:[#allocation4 + $0xf0] sm:$0xff] %vm1017_vm8, %v2617_v55  ;;  %v2615_v51 = vadd.f32 %v2583_v26, %v2540_v5  ;;  %2966 = vst.msk [vmem:[#allocation4 + $0xa8] sm:$0xff] %vm1017_vm8, %v2934_v45  ;;  %v2939_v36 = vadd.f32 %v8473_v38, %v2907_v30  ;;  %v8603_v58 = vpop.f32.mrf.mxu0  ;;  %v3309_v45 = vld [vmem:[#allocation4 + $0x30] sm:$0xff] }
 0x2d1   : > { %v5856_v10 = vpop.f32.mrf.mxu1  ;;  %v2905_v21 = vld [vmem:[#allocation4 + $0xc0] sm:$0xff] }
 0x2d2   : > { %2647 = vst.msk [vmem:[#allocation4 + $0xe0] sm:$0xff] %vm1017_vm8, %v2615_v51  ;;  %v2618_v48 = vadd.f32 %v5856_v10, %v2586_v53  ;;  %2971 = vst.msk [vmem:[#allocation4 + $0xd0] sm:$0xff] %vm1017_vm8, %v2939_v36  ;;  %v2937_v12 = vadd.f32 %v2905_v21, %v8478_v50  ;;  %v8608_v52 = vpop.f32.mrf.mxu0  ;;  %v3307_v36 = vld [vmem:[#allocation4 + $0x20] sm:$0xff] }
 0x2d3   : > { %v2543_v2 = vpop.f32.mrf.mxu1  ;;  %v2908_v3 = vld [vmem:[#allocation4 + $0xd8] sm:$0xff] }
 0x2d4   : > { %2650 = vst.msk [vmem:[#allocation4 + $0xf8] sm:$0xff] %vm1017_vm8, %v2618_v48  ;;  %v2616_v38 = vadd.f32 %v2584_v23, %v2543_v2  ;;  %2969 = vst.msk [vmem:[#allocation4 + $0xc0] sm:$0xff] %vm1017_vm8, %v2937_v12  ;;  %v2940_v1 = vadd.f32 %v8483_v62, %v2908_v3  ;;  %v8613_v47 = vpop.f32.mrf.mxu0  ;;  %v3310_v12 = vld [vmem:[#allocation4 + $0x38] sm:$0xff] }
 0x2d5   : > { %v5895_v31 = vpop.f32.mrf.mxu1  ;;  %v2906_v61 = vld [vmem:[#allocation4 + $0xc8] sm:$0xff] }
 0x2d6   : > { %2648 = vst.msk [vmem:[#allocation4 + $0xe8] sm:$0xff] %vm1017_vm8, %v2616_v38  ;;  %v3337_v50 = vadd.f32 %v5895_v31, %v3305_v17  ;;  %2972 = vst.msk [vmem:[#allocation4 + $0xd8] sm:$0xff] %vm1017_vm8, %v2940_v1  ;;  %v2938_v39 = vadd.f32 %v2906_v61, %v8488_v16  ;;  %v8618_v18 = vpop.f32.mrf.mxu0  ;;  %v3308_v1 = vld [vmem:[#allocation4 + $0x28] sm:$0xff] }
 0x2d7   : > { %v3176_v46 = vpop.f32.mrf.mxu1  ;;  %v2911_v35 = vld [vmem:[#allocation4 + $0xf0] sm:$0xff] }
 0x2d8   : > { %3369 = vst.msk [vmem:[#allocation4 + $0x10] sm:$0xff] %vm1017_vm8, %v3337_v50  ;;  %v3335_v62 = vadd.f32 %v3303_v33, %v3176_v46  ;;  %2970 = vst.msk [vmem:[#allocation4 + $0xc8] sm:$0xff] %vm1017_vm8, %v2938_v39  ;;  %v2943_v59 = vadd.f32 %v8493_v43, %v2911_v35  ;;  %v8623_v15 = vpop.f32.mrf.mxu0  ;;  %v3313_v39 = vld [vmem:[#allocation4 + $0x50] sm:$0xff] }
 0x2d9   : > { %v5896_v24 = vpop.f32.mrf.mxu1  ;;  %v2909_v28 = vld [vmem:[#allocation4 + $0xe0] sm:$0xff] }
 0x2da   : > { %3367 = vst.msk [vmem:[#allocation4] sm:$0xff] %vm1017_vm8, %v3335_v62  ;;  %v3338_v16 = vadd.f32 %v5896_v24, %v3306_v41  ;;  %2975 = vst.msk [vmem:[#allocation4 + $0xf0] sm:$0xff] %vm1017_vm8, %v2943_v59  ;;  %v2941_v4 = vadd.f32 %v2909_v28, %v8498_v14  ;;  %v8628_v32 = vpop.f32.mrf.mxu0  ;;  %v3311_v59 = vld [vmem:[#allocation4 + $0x40] sm:$0xff] }
 0x2db   : > { %v3179_v13 = vpop.f32.mrf.mxu1  ;;  %v2912_v7 = vld [vmem:[#allocation4 + $0xf8] sm:$0xff] }
 0x2dc   : > { %3370 = vst.msk [vmem:[#allocation4 + $0x18] sm:$0xff] %vm1017_vm8, %v3338_v16  ;;  %v3336_v43 = vadd.f32 %v3304_v54, %v3179_v13  ;;  %2973 = vst.msk [vmem:[#allocation4 + $0xe0] sm:$0xff] %vm1017_vm8, %v2941_v4  ;;  %v2944_v40 = vadd.f32 %v8503_v9, %v2912_v7  ;;  %v8633_v5 = vpop.f32.mrf.mxu0  ;;  %v3314_v4 = vld [vmem:[#allocation4 + $0x58] sm:$0xff] }
 0x2dd   : > { %v5899_v55 = vpop.f32.mrf.mxu1  ;;  %v2910_v26 = vld [vmem:[#allocation4 + $0xe8] sm:$0xff] }
 0x2de   : > { %3368 = vst.msk [vmem:[#allocation4 + $0x8] sm:$0xff] %vm1017_vm8, %v3336_v43  ;;  %v3341_v14 = vadd.f32 %v5899_v55, %v3309_v45  ;;  %2976 = vst.msk [vmem:[#allocation4 + $0xf8] sm:$0xff] %vm1017_vm8, %v2944_v40  ;;  %v2942_v30 = vadd.f32 %v2910_v26, %v8508_v63  ;;  %v8638_v10 = vpop.f32.mrf.mxu0  ;;  %v3312_v40 = vld [vmem:[#allocation4 + $0x48] sm:$0xff] }
 0x2df   : > { %v3192_v51 = vpop.f32.mrf.mxu1  ;;  %v3760_v53 = vld [vmem:[#allocation4 + $0x10] sm:$0xff] }
 0x2e0   : > { %3373 = vst.msk [vmem:[#allocation4 + $0x30] sm:$0xff] %vm1017_vm8, %v3341_v14  ;;  %v3339_v9 = vadd.f32 %v3307_v36, %v3192_v51  ;;  %2974 = vst.msk [vmem:[#allocation4 + $0xe8] sm:$0xff] %vm1017_vm8, %v2942_v30  ;;  %v3792_v21 = vadd.f32 %v8513_v11, %v3760_v53  ;;  %v8643_v2 = vpop.f32.mrf.mxu0  ;;  %v3317_v30 = vld [vmem:[#allocation4 + $0x70] sm:$0xff] }
 0x2e1   : > { %v5900_v48 = vpop.f32.mrf.mxu1  ;;  %v3758_v23 = vld [vmem:[#allocation4] sm:$0xff] }
 0x2e2   : > { %3371 = vst.msk [vmem:[#allocation4 + $0x20] sm:$0xff] %vm1017_vm8, %v3339_v9  ;;  %v3342_v63 = vadd.f32 %v5900_v48, %v3310_v12  ;;  %3824 = vst.msk [vmem:[#allocation4 + $0x10] sm:$0xff] %vm1017_vm8, %v3792_v21  ;;  %v3790_v3 = vadd.f32 %v3758_v23, %v8518_v6  ;;  %v8648_v31 = vpop.f32.mrf.mxu0  ;;  %v3315_v21 = vld [vmem:[#allocation4 + $0x60] sm:$0xff] }
 0x2e3   : > { %v3195_v38 = vpop.f32.mrf.mxu1  ;;  %v3761_v17 = vld [vmem:[#allocation4 + $0x18] sm:$0xff] }
 0x2e4   : > { %3374 = vst.msk [vmem:[#allocation4 + $0x38] sm:$0xff] %vm1017_vm8, %v3342_v63  ;;  %v3340_v11 = vadd.f32 %v3308_v1, %v3195_v38  ;;  %3822 = vst.msk [vmem:[#allocation4] sm:$0xff] %vm1017_vm8, %v3790_v3  ;;  %v3793_v61 = vadd.f32 %v8523_v49, %v3761_v17  ;;  %v8653_v46 = vpop.f32.mrf.mxu0  ;;  %v3318_v3 = vld [vmem:[#allocation4 + $0x78] sm:$0xff] }
 0x2e5   : > { %v5903_v50 = vpop.f32.mrf.mxu1  ;;  %v3759_v33 = vld [vmem:[#allocation4 + $0x8] sm:$0xff] }
 0x2e6   : > { %3372 = vst.msk [vmem:[#allocation4 + $0x28] sm:$0xff] %vm1017_vm8, %v3340_v11  ;;  %v3345_v6 = vadd.f32 %v5903_v50, %v3313_v39  ;;  %3825 = vst.msk [vmem:[#allocation4 + $0x18] sm:$0xff] %vm1017_vm8, %v3793_v61  ;;  %v3791_v35 = vadd.f32 %v3759_v33, %v8528_v29  ;;  %v8658_v24 = vpop.f32.mrf.mxu0  ;;  %v3316_v61 = vld [vmem:[#allocation4 + $0x68] sm:$0xff] }
 0x2e7   : > { %v3208_v62 = vpop.f32.mrf.mxu1  ;;  %v3764_v41 = vld [vmem:[#allocation4 + $0x30] sm:$0xff] }
 0x2e8   : > { %3377 = vst.msk [vmem:[#allocation4 + $0x50] sm:$0xff] %vm1017_vm8, %v3345_v6  ;;  %v3343_v49 = vadd.f32 %v3311_v59, %v3208_v62  ;;  %3823 = vst.msk [vmem:[#allocation4 + $0x8] sm:$0xff] %vm1017_vm8, %v3791_v35  ;;  %v3796_v28 = vadd.f32 %v8533_v8, %v3764_v41  ;;  %v8663_v13 = vpop.f32.mrf.mxu0  ;;  %v3321_v35 = vld [vmem:[#allocation4 + $0x90] sm:$0xff] }
 0x2e9   : > { %v5904_v16 = vpop.f32.mrf.mxu1  ;;  %v3762_v54 = vld [vmem:[#allocation4 + $0x20] sm:$0xff] }
 0x2ea   : > { %3375 = vst.msk [vmem:[#allocation4 + $0x40] sm:$0xff] %vm1017_vm8, %v3343_v49  ;;  %v3346_v29 = vadd.f32 %v5904_v16, %v3314_v4  ;;  %3828 = vst.msk [vmem:[#allocation4 + $0x30] sm:$0xff] %vm1017_vm8, %v3796_v28  ;;  %v3794_v7 = vadd.f32 %v3762_v54, %v8538_v34  ;;  %v8668_v55 = vpop.f32.mrf.mxu0  ;;  %v3319_v28 = vld [vmem:[#allocation4 + $0x80] sm:$0xff] }
 0x2eb   : > { %v3211_v43 = vpop.f32.mrf.mxu1  ;;  %v3765_v45 = vld [vmem:[#allocation4 + $0x38] sm:$0xff] }
 0x2ec   : > { %3378 = vst.msk [vmem:[#allocation4 + $0x58] sm:$0xff] %vm1017_vm8, %v3346_v29  ;;  %v3344_v8 = vadd.f32 %v3312_v40, %v3211_v43  ;;  %3826 = vst.msk [vmem:[#allocation4 + $0x20] sm:$0xff] %vm1017_vm8, %v3794_v7  ;;  %v3797_v26 = vadd.f32 %v8543_v20, %v3765_v45  ;;  %v8673_v51 = vpop.f32.mrf.mxu0  ;;  %v3322_v7 = vld [vmem:[#allocation4 + $0x98] sm:$0xff] }
 0x2ed   : > { %v5907_v14 = vpop.f32.mrf.mxu1  ;;  %v3763_v36 = vld [vmem:[#allocation4 + $0x28] sm:$0xff] }
 0x2ee   : > { %3376 = vst.msk [vmem:[#allocation4 + $0x48] sm:$0xff] %vm1017_vm8, %v3344_v8  ;;  %v3349_v34 = vadd.f32 %v5907_v14, %v3317_v30  ;;  %3829 = vst.msk [vmem:[#allocation4 + $0x38] sm:$0xff] %vm1017_vm8, %v3797_v26  ;;  %v3795_v53 = vadd.f32 %v3763_v36, %v8548_v37  ;;  %v8678_v48 = vpop.f32.mrf.mxu0  ;;  %v3320_v26 = vld [vmem:[#allocation4 + $0x88] sm:$0xff] }
 0x2ef   : > { %v3224_v9 = vpop.f32.mrf.mxu1  ;;  %v3768_v12 = vld [vmem:[#allocation4 + $0x50] sm:$0xff] }
 0x2f0   : > { %3381 = vst.msk [vmem:[#allocation4 + $0x70] sm:$0xff] %vm1017_vm8, %v3349_v34  ;;  %v3347_v20 = vadd.f32 %v3315_v21, %v3224_v9  ;;  %3827 = vst.msk [vmem:[#allocation4 + $0x28] sm:$0xff] %vm1017_vm8, %v3795_v53  ;;  %v3800_v23 = vadd.f32 %v8553_v0, %v3768_v12  ;;  %v8683_v38 = vpop.f32.mrf.mxu0  ;;  %v3325_v34 = vld [vmem:[#allocation4 + $0xb0] sm:$0xff] }
 0x2f1   : > { %v5908_v63 = vpop.f32.mrf.mxu1  ;;  %v3766_v1 = vld [vmem:[#allocation4 + $0x40] sm:$0xff] }
 0x2f2   : > { %3379 = vst.msk [vmem:[#allocation4 + $0x60] sm:$0xff] %vm1017_vm8, %v3347_v20  ;;  %v3350_v37 = vadd.f32 %v5908_v63, %v3318_v3  ;;  %3832 = vst.msk [vmem:[#allocation4 + $0x50] sm:$0xff] %vm1017_vm8, %v3800_v23  ;;  %v3798_v17 = vadd.f32 %v3766_v1, %v8558_v44  ;;  %v8688_v50 = vpop.f32.mrf.mxu0  ;;  %v3323_v20 = vld [vmem:[#allocation4 + $0xa0] sm:$0xff]  ;;  %v3326_v1 = vld [vmem:[#allocation4 + $0xb8] sm:$0xff] }
 0x2f3   : > { %v3227_v11 = vpop.f32.mrf.mxu1  ;;  %v3769_v39 = vld [vmem:[#allocation4 + $0x58] sm:$0xff] }
 0x2f4   : > { %3382 = vst.msk [vmem:[#allocation4 + $0x78] sm:$0xff] %vm1017_vm8, %v3350_v37  ;;  %v3348_v0 = vadd.f32 %v3316_v61, %v3227_v11  ;;  %3830 = vst.msk [vmem:[#allocation4 + $0x40] sm:$0xff] %vm1017_vm8, %v3798_v17  ;;  %v3801_v33 = vadd.f32 %v8563_v60, %v3769_v39  ;;  %v8693_v62 = vpop.f32.mrf.mxu0  ;;  %v3324_v39 = vld [vmem:[#allocation4 + $0xa8] sm:$0xff] }
 0x2f5   : > { %v5911_v6 = vpop.f32.mrf.mxu1  ;;  %v3767_v59 = vld [vmem:[#allocation4 + $0x48] sm:$0xff] }
 0x2f6   : > { %3380 = vst.msk [vmem:[#allocation4 + $0x68] sm:$0xff] %vm1017_vm8, %v3348_v0  ;;  %v3353_v44 = vadd.f32 %v5911_v6, %v3321_v35  ;;  %3833 = vst.msk [vmem:[#allocation4 + $0x58] sm:$0xff] %vm1017_vm8, %v3801_v33  ;;  %v3799_v41 = vadd.f32 %v3767_v59, %v8568_v56  ;;  %v8698_v16 = vpop.f32.mrf.mxu0  ;;  %v3329_v35 = vld [vmem:[#allocation4 + $0xd0] sm:$0xff] }
 0x2f7   : > { %v3240_v49 = vpop.f32.mrf.mxu1  ;;  %v3772_v4 = vld [vmem:[#allocation4 + $0x70] sm:$0xff] }
 0x2f8   : > { %3385 = vst.msk [vmem:[#allocation4 + $0x90] sm:$0xff] %vm1017_vm8, %v3353_v44  ;;  %v3351_v60 = vadd.f32 %v3319_v28, %v3240_v49  ;;  %3831 = vst.msk [vmem:[#allocation4 + $0x48] sm:$0xff] %vm1017_vm8, %v3799_v41  ;;  %v3804_v54 = vadd.f32 %v8573_v22, %v3772_v4  ;;  %v8706_v45 = vpop.f32.mrf.mxu0  ;;  %v3327_v28 = vld [vmem:[#allocation4 + $0xc0] sm:$0xff] }
 0x2f9   : > { %v5912_v29 = vpop.f32.mrf.mxu1  ;;  %v3770_v43 = vld [vmem:[#allocation4 + $0x60] sm:$0xff] }
 0x2fa   : > { %3383 = vst.msk [vmem:[#allocation4 + $0x80] sm:$0xff] %vm1017_vm8, %v3351_v60  ;;  %v3354_v40 = vadd.f32 %v5912_v29, %v3322_v7  ;;  %3836 = vst.msk [vmem:[#allocation4 + $0x70] sm:$0xff] %vm1017_vm8, %v3804_v54  ;;  %v3802_v56 = vadd.f32 %v3770_v43, %v8578_v42  ;;  %v8714_v21 = vpop.f32.mrf.mxu0  ;;  %v3330_v29 = vld [vmem:[#allocation4 + $0xd8] sm:$0xff] }
 0x2fb   : > { %v3243_v8 = vpop.f32.mrf.mxu1  ;;  %v3773_v14 = vld [vmem:[#allocation4 + $0x78] sm:$0xff] }
 0x2fc   : > { %3386 = vst.msk [vmem:[#allocation4 + $0x98] sm:$0xff] %vm1017_vm8, %v3354_v40  ;;  %v3352_v30 = vadd.f32 %v3320_v26, %v3243_v8  ;;  %3834 = vst.msk [vmem:[#allocation4 + $0x60] sm:$0xff] %vm1017_vm8, %v3802_v56  ;;  %v3805_v22 = vadd.f32 %v8583_v57, %v3773_v14  ;;  %v8722_v11 = vpop.f32.mrf.mxu0  ;;  %v3328_v8 = vld [vmem:[#allocation4 + $0xc8] sm:$0xff] }
 0x2fd   : > { %v5915_v36 = vpop.f32.mrf.mxu1  ;;  %v3771_v53 = vld [vmem:[#allocation4 + $0x68] sm:$0xff] }
 0x2fe   : > { %3384 = vst.msk [vmem:[#allocation4 + $0x88] sm:$0xff] %vm1017_vm8, %v3352_v30  ;;  %v3357_v9 = vadd.f32 %v5915_v36, %v3325_v34  ;;  %3837 = vst.msk [vmem:[#allocation4 + $0x78] sm:$0xff] %vm1017_vm8, %v3805_v22  ;;  %v3803_v42 = vadd.f32 %v3771_v53, %v8588_v25  ;;  %v8730_v41 = vpop.f32.mrf.mxu0  ;;  %v3333_v22 = vld [vmem:[#allocation4 + $0xf0] sm:$0xff] }
 0x2ff   : > { %v3256_v12 = vpop.f32.mrf.mxu1  ;;  %v3776_v23 = vld [vmem:[#allocation4 + $0x90] sm:$0xff] }
 0x300   : > { %3389 = vst.msk [vmem:[#allocation4 + $0xb0] sm:$0xff] %vm1017_vm8, %v3357_v9  ;;  %v3355_v63 = vadd.f32 %v3323_v20, %v3256_v12  ;;  %3835 = vst.msk [vmem:[#allocation4 + $0x68] sm:$0xff] %vm1017_vm8, %v3803_v42  ;;  %v3808_v57 = vadd.f32 %v8593_v19, %v3776_v23  ;;  %v8738_v40 = vpop.f32.mrf.mxu0  ;;  %v3331_v42 = vld [vmem:[#allocation4 + $0xe0] sm:$0xff] }
 0x301   : > { %v5916_v3 = vpop.f32.mrf.mxu1  ;;  %v3774_v37 = vld [vmem:[#allocation4 + $0x80] sm:$0xff] }
 0x302   : > { %3387 = vst.msk [vmem:[#allocation4 + $0xa0] sm:$0xff] %vm1017_vm8, %v3355_v63  ;;  %v3358_v17 = vadd.f32 %v5916_v3, %v3326_v1  ;;  %3840 = vst.msk [vmem:[#allocation4 + $0x90] sm:$0xff] %vm1017_vm8, %v3808_v57  ;;  %v3806_v25 = vadd.f32 %v3774_v37, %v8598_v27  ;;  %v8746_v53 = vpop.f32.mrf.mxu0  ;;  %v3334_v63 = vld [vmem:[#allocation4 + $0xf8] sm:$0xff] }
 0x303   : > { %v3259_v61 = vpop.f32.mrf.mxu1  ;;  %v3777_v0 = vld [vmem:[#allocation4 + $0x98] sm:$0xff] }
 0x304   : > { %3390 = vst.msk [vmem:[#allocation4 + $0xb8] sm:$0xff] %vm1017_vm8, %v3358_v17  ;;  %v3356_v33 = vadd.f32 %v3324_v39, %v3259_v61  ;;  %3838 = vst.msk [vmem:[#allocation4 + $0x80] sm:$0xff] %vm1017_vm8, %v3806_v25  ;;  %v3809_v19 = vadd.f32 %v8603_v58, %v3777_v0  ;;  %v8754_v1 = vpop.f32.mrf.mxu0  ;;  %v3332_v17 = vld [vmem:[#allocation4 + $0xe8] sm:$0xff]  ;;  %v4086_v0 = vld [vmem:[#allocation4 + $0x10] sm:$0xff] }
 0x305   : > { %v5919_v6 = vpop.f32.mrf.mxu1  ;;  %v3775_v59 = vld [vmem:[#allocation4 + $0x88] sm:$0xff] }
 0x306   : > { %3388 = vst.msk [vmem:[#allocation4 + $0xa8] sm:$0xff] %vm1017_vm8, %v3356_v33  ;;  %v3361_v44 = vadd.f32 %v5919_v6, %v3329_v35  ;;  %3841 = vst.msk [vmem:[#allocation4 + $0x98] sm:$0xff] %vm1017_vm8, %v3809_v19  ;;  %v3807_v27 = vadd.f32 %v3775_v59, %v8608_v52  ;;  %v8762_v6 = vpop.f32.mrf.mxu0  ;;  %v4084_v59 = vld [vmem:[#allocation4] sm:$0xff] }
 0x307   : > { %v3272_v49 = vpop.f32.mrf.mxu1  ;;  %v3780_v4 = vld [vmem:[#allocation4 + $0xb0] sm:$0xff] }
 0x308   : > { %3393 = vst.msk [vmem:[#allocation4 + $0xd0] sm:$0xff] %vm1017_vm8, %v3361_v44  ;;  %v3359_v60 = vadd.f32 %v3327_v28, %v3272_v49  ;;  %3839 = vst.msk [vmem:[#allocation4 + $0x88] sm:$0xff] %vm1017_vm8, %v3807_v27  ;;  %v3812_v58 = vadd.f32 %v8613_v47, %v3780_v4  ;;  %v4087_v28 = vld [vmem:[#allocation4 + $0x18] sm:$0xff] }
 0x309   : > { %v5920_v54 = vpop.f32.mrf.mxu1  ;;  %v3778_v7 = vld [vmem:[#allocation4 + $0xa0] sm:$0xff] }
 0x30a   : > { %3391 = vst.msk [vmem:[#allocation4 + $0xc0] sm:$0xff] %vm1017_vm8, %v3359_v60  ;;  %v3362_v43 = vadd.f32 %v5920_v54, %v3330_v29  ;;  %3844 = vst.msk [vmem:[#allocation4 + $0xb0] sm:$0xff] %vm1017_vm8, %v3812_v58  ;;  %v3810_v52 = vadd.f32 %v3778_v7, %v8618_v18  ;;  %v8770_v58 = vpop.f32.mrf.mxu0  ;;  %v4085_v29 = vld [vmem:[#allocation4 + $0x8] sm:$0xff] }
 0x30b   : > { %v3275_v56 = vpop.f32.mrf.mxu1  ;;  %v3781_v26 = vld [vmem:[#allocation4 + $0xb8] sm:$0xff] }
 0x30c   : > { %3394 = vst.msk [vmem:[#allocation4 + $0xd8] sm:$0xff] %vm1017_vm8, %v3362_v43  ;;  %v3360_v14 = vadd.f32 %v3328_v8, %v3275_v56  ;;  %3842 = vst.msk [vmem:[#allocation4 + $0xa0] sm:$0xff] %vm1017_vm8, %v3810_v52  ;;  %v3813_v47 = vadd.f32 %v8623_v15, %v3781_v26  ;;  %v4090_v56 = vld [vmem:[#allocation4 + $0x30] sm:$0xff] }
 0x30d   : > { %v5923_v30 = vpop.f32.mrf.mxu1  ;;  %v3779_v36 = vld [vmem:[#allocation4 + $0xa8] sm:$0xff] }
 0x30e   : > { %3392 = vst.msk [vmem:[#allocation4 + $0xc8] sm:$0xff] %vm1017_vm8, %v3360_v14  ;;  %v3365_v34 = vadd.f32 %v5923_v30, %v3333_v22  ;;  %3845 = vst.msk [vmem:[#allocation4 + $0xb8] sm:$0xff] %vm1017_vm8, %v3813_v47  ;;  %v3811_v18 = vadd.f32 %v3779_v36, %v8628_v32  ;;  %v8778_v14 = vpop.f32.mrf.mxu0  ;;  %v4088_v22 = vld [vmem:[#allocation4 + $0x20] sm:$0xff] }
 0x30f   : > { %v3288_v9 = vpop.f32.mrf.mxu1  ;;  %v3784_v12 = vld [vmem:[#allocation4 + $0xd0] sm:$0xff] }
 0x310   : > { %3397 = vst.msk [vmem:[#allocation4 + $0xf0] sm:$0xff] %vm1017_vm8, %v3365_v34  ;;  %v3363_v20 = vadd.f32 %v3331_v42, %v3288_v9  ;;  %3843 = vst.msk [vmem:[#allocation4 + $0xa8] sm:$0xff] %vm1017_vm8, %v3811_v18  ;;  %v3816_v15 = vadd.f32 %v8633_v5, %v3784_v12  ;;  %v4091_v9 = vld [vmem:[#allocation4 + $0x38] sm:$0xff]  ;;  %v8786_v12 = vpop.f32.mrf.mxu0 }
 0x311   : > { %v5924_v23 = vpop.f32.mrf.mxu1  ;;  %v3782_v57 = vld [vmem:[#allocation4 + $0xc0] sm:$0xff] }
 0x312   : > { %3395 = vst.msk [vmem:[#allocation4 + $0xe0] sm:$0xff] %vm1017_vm8, %v3363_v20  ;;  %v3366_v3 = vadd.f32 %v5924_v23, %v3334_v63  ;;  %3848 = vst.msk [vmem:[#allocation4 + $0xd0] sm:$0xff] %vm1017_vm8, %v3816_v15  ;;  %v3814_v32 = vadd.f32 %v3782_v57, %v8638_v10 }
 0x313   : > { %v3291_v37 = vpop.f32.mrf.mxu1  ;;  %v3785_v25 = vld [vmem:[#allocation4 + $0xd8] sm:$0xff] }
 0x314   : > { %3398 = vst.msk [vmem:[#allocation4 + $0xf8] sm:$0xff] %vm1017_vm8, %v3366_v3  ;;  %v3364_v61 = vadd.f32 %v3332_v17, %v3291_v37  ;;  %3846 = vst.msk [vmem:[#allocation4 + $0xc0] sm:$0xff] %vm1017_vm8, %v3814_v32  ;;  %v3817_v5 = vadd.f32 %v8643_v2, %v3785_v25  ;;  %v4094_v32 = vld [vmem:[#allocation4 + $0x50] sm:$0xff]  ;;  %v8794_v17 = vpop.f32.mrf.mxu0 }
 0x315   : > { %v5963_v39 = vpop.f32.mrf.mxu1  ;;  %v3783_v33 = vld [vmem:[#allocation4 + $0xc8] sm:$0xff] }
 0x316   : > { %3396 = vst.msk [vmem:[#allocation4 + $0xe8] sm:$0xff] %vm1017_vm8, %v3364_v61  ;;  %v4118_v19 = vadd.f32 %v5963_v39, %v4086_v0  ;;  %3849 = vst.msk [vmem:[#allocation4 + $0xd8] sm:$0xff] %vm1017_vm8, %v3817_v5  ;;  %v3815_v10 = vadd.f32 %v3783_v33, %v8648_v31  ;;  %v4092_v5 = vld [vmem:[#allocation4 + $0x40] sm:$0xff] }
 0x317   : > { %v3957_v35 = vpop.f32.mrf.mxu1  ;;  %v3788_v44 = vld [vmem:[#allocation4 + $0xf0] sm:$0xff] }
 0x318   : > { %4150 = vst.msk [vmem:[#allocation4 + $0x10] sm:$0xff] %vm1017_vm8, %v4118_v19  ;;  %v4116_v27 = vadd.f32 %v4084_v59, %v3957_v35  ;;  %3847 = vst.msk [vmem:[#allocation4 + $0xc8] sm:$0xff] %vm1017_vm8, %v3815_v10  ;;  %v3820_v2 = vadd.f32 %v8653_v46, %v3788_v44  ;;  %v4095_v19 = vld [vmem:[#allocation4 + $0x58] sm:$0xff]  ;;  %v8805_v35 = vld [vmem:[%s9315_s5] ss:$0 sm:$0xff] }
 0x319   : > { %v5964_v49 = vpop.f32.mrf.mxu1  ;;  %v3786_v4 = vld [vmem:[#allocation4 + $0xe0] sm:$0xff] }
 0x31a   : > { %4148 = vst.msk [vmem:[#allocation4] sm:$0xff] %vm1017_vm8, %v4116_v27  ;;  %v4119_v60 = vadd.f32 %v5964_v49, %v4087_v28  ;;  %3852 = vst.msk [vmem:[#allocation4 + $0xf0] sm:$0xff] %vm1017_vm8, %v3820_v2  ;;  %v3818_v31 = vadd.f32 %v3786_v4, %v8658_v24  ;;  %v4093_v2 = vld [vmem:[#allocation4 + $0x48] sm:$0xff] }
 0x31b   : > { %v3960_v54 = vpop.f32.mrf.mxu1  ;;  %v3789_v7 = vld [vmem:[#allocation4 + $0xf8] sm:$0xff] }
 0x31c   : > { %4151 = vst.msk [vmem:[#allocation4 + $0x18] sm:$0xff] %vm1017_vm8, %v4119_v60  ;;  %v4117_v43 = vadd.f32 %v4085_v29, %v3960_v54  ;;  %3850 = vst.msk [vmem:[#allocation4 + $0xe0] sm:$0xff] %vm1017_vm8, %v3818_v31  ;;  %v3821_v46 = vadd.f32 %v8663_v13, %v3789_v7  ;;  %v4098_v54 = vld [vmem:[#allocation4 + $0x70] sm:$0xff] }
 0x31d   : > { %v5967_v52 = vpop.f32.mrf.mxu1  ;;  %v3787_v8 = vld [vmem:[#allocation4 + $0xe8] sm:$0xff] }
 0x31e   : > { %4149 = vst.msk [vmem:[#allocation4 + $0x8] sm:$0xff] %vm1017_vm8, %v4117_v43  ;;  %v4122_v26 = vadd.f32 %v5967_v52, %v4090_v56  ;;  %3853 = vst.msk [vmem:[#allocation4 + $0xf8] sm:$0xff] %vm1017_vm8, %v3821_v46  ;;  %v3819_v24 = vadd.f32 %v3787_v8, %v8668_v55 }
 0x31f   : > { %v4508_v47 = vld [vmem:[#allocation4 + $0x10] sm:$0xff]  ;;  %v3973_v30 = vpop.f32.mrf.mxu1 }
 0x320   : > { %v4540_v36 = vadd.f32 %v8673_v51, %v4508_v47  ;;  %4154 = vst.msk [vmem:[#allocation4 + $0x30] sm:$0xff] %vm1017_vm8, %v4122_v26  ;;  %v4120_v13 = vadd.f32 %v4088_v22, %v3973_v30  ;;  %3851 = vst.msk [vmem:[#allocation4 + $0xe8] sm:$0xff] %vm1017_vm8, %v3819_v24  ;;  %v4089_v51 = vld [vmem:[#allocation4 + $0x28] sm:$0xff]  ;;  %v4096_v24 = vld [vmem:[#allocation4 + $0x60] sm:$0xff] }
 0x321   : > { %v4506_v34 = vld [vmem:[#allocation4] sm:$0xff]  ;;  %v5968_v18 = vpop.f32.mrf.mxu1 }
 0x322   : > { %4572 = vst.msk [vmem:[#allocation4 + $0x10] sm:$0xff] %vm1017_vm8, %v4540_v36  ;;  %v4538_v42 = vadd.f32 %v4506_v34, %v8678_v48  ;;  %4152 = vst.msk [vmem:[#allocation4 + $0x20] sm:$0xff] %vm1017_vm8, %v4120_v13  ;;  %v4123_v55 = vadd.f32 %v5968_v18, %v4091_v9  ;;  %v4099_v18 = vld [vmem:[#allocation4 + $0x78] sm:$0xff] }
 0x323   : > { %v4509_v20 = vld [vmem:[#allocation4 + $0x18] sm:$0xff]  ;;  %v3976_v15 = vpop.f32.mrf.mxu1 }
 0x324   : > { %4570 = vst.msk [vmem:[#allocation4] sm:$0xff] %vm1017_vm8, %v4538_v42  ;;  %v4541_v23 = vadd.f32 %v8683_v38, %v4509_v20  ;;  %4155 = vst.msk [vmem:[#allocation4 + $0x38] sm:$0xff] %vm1017_vm8, %v4123_v55  ;;  %v4121_v63 = vadd.f32 %v4089_v51, %v3976_v15 }
 0x325   : > { %v4507_v57 = vld [vmem:[#allocation4 + $0x8] sm:$0xff]  ;;  %v5971_v3 = vpop.f32.mrf.mxu1 }
 0x326   : > { %4573 = vst.msk [vmem:[#allocation4 + $0x18] sm:$0xff] %vm1017_vm8, %v4541_v23  ;;  %v4539_v48 = vadd.f32 %v4507_v57, %v8688_v50  ;;  %4153 = vst.msk [vmem:[#allocation4 + $0x28] sm:$0xff] %vm1017_vm8, %v4121_v63  ;;  %v4126_v37 = vadd.f32 %v5971_v3, %v4094_v32  ;;  %v4097_v57 = vld [vmem:[#allocation4 + $0x68] sm:$0xff] }
 0x327   : > { %v4512_v25 = vld [vmem:[#allocation4 + $0x30] sm:$0xff]  ;;  %v3989_v61 = vpop.f32.mrf.mxu1 }
 0x328   : > { %4571 = vst.msk [vmem:[#allocation4 + $0x8] sm:$0xff] %vm1017_vm8, %v4539_v48  ;;  %v4544_v38 = vadd.f32 %v8693_v62, %v4512_v25  ;;  %4158 = vst.msk [vmem:[#allocation4 + $0x50] sm:$0xff] %vm1017_vm8, %v4126_v37  ;;  %v4124_v39 = vadd.f32 %v4092_v5, %v3989_v61  ;;  %v8807_v62 = vpop.f32.mrf.mxu0 }
 0x329   : > { %v4510_v0 = vld [vmem:[#allocation4 + $0x20] sm:$0xff]  ;;  %v5972_v33 = vpop.f32.mrf.mxu1  ;;  %v4604_v59 = vld [vmem:[#allocation4 + $0x10] sm:$0xff] }
 0x32a   : > { %4576 = vst.msk [vmem:[#allocation4 + $0x30] sm:$0xff] %vm1017_vm8, %v4544_v38  ;;  %v4542_v50 = vadd.f32 %v4510_v0, %v8698_v16  ;;  %4156 = vst.msk [vmem:[#allocation4 + $0x40] sm:$0xff] %vm1017_vm8, %v4124_v39  ;;  %v4127_v10 = vadd.f32 %v5972_v33, %v4095_v19  ;;  %v4643_v7 = vmul.f32 %v8805_v35, %v4604_v59  ;;  %v8823_v56 = vpop.f32.mrf.mxu0  ;;  %v4102_v39 = vld [vmem:[#allocation4 + $0x90] sm:$0xff] }
 0x32b   : > { %v4513_v44 = vld [vmem:[#allocation4 + $0x38] sm:$0xff]  ;;  %v3992_v27 = vpop.f32.mrf.mxu1  ;;  %v4602_v49 = vld [vmem:[#allocation4] sm:$0xff] }
 0x32c   : > { %4574 = vst.msk [vmem:[#allocation4 + $0x20] sm:$0xff] %vm1017_vm8, %v4542_v50  ;;  %v4545_v28 = vadd.f32 %v8706_v45, %v4513_v44  ;;  %4159 = vst.msk [vmem:[#allocation4 + $0x58] sm:$0xff] %vm1017_vm8, %v4127_v10  ;;  %v4125_v16 = vadd.f32 %v4093_v2, %v3992_v27  ;;  %v4641_v4 = vmul.f32 %v8805_v35, %v4602_v49  ;;  %v8820_v45 = vld [vmem:[%s9471_s10] ss:$0 sm:$0xff]  ;;  %v8836_v51 = vpop.f32.mrf.mxu0 }
 0x32d   : > { %v4511_v60 = vld [vmem:[#allocation4 + $0x28] sm:$0xff]  ;;  %v5975_v31 = vpop.f32.mrf.mxu1  ;;  %v4605_v29 = vld [vmem:[#allocation4 + $0x18] sm:$0xff]  ;;  %v4682_v9 = vadd.f32 %v8820_v45, %v4643_v7  ;;  %v4100_v2 = vld [vmem:[#allocation4 + $0x80] sm:$0xff] }
 0x32e   : > { %4577 = vst.msk [vmem:[#allocation4 + $0x38] sm:$0xff] %vm1017_vm8, %v4545_v28  ;;  %v4543_v43 = vadd.f32 %v4511_v60, %v8714_v21  ;;  %4157 = vst.msk [vmem:[#allocation4 + $0x48] sm:$0xff] %vm1017_vm8, %v4125_v16  ;;  %v4130_v46 = vadd.f32 %v5975_v31, %v4098_v54  ;;  %v4644_v52 = vmul.f32 %v8805_v35, %v4605_v29  ;;  %v8846_v59 = vpop.f32.mrf.mxu0  ;;  %v4103_v7 = vld [vmem:[#allocation4 + $0x98] sm:$0xff] }
 0x32f   : > { %v4516_v8 = vld [vmem:[#allocation4 + $0x50] sm:$0xff]  ;;  %v4005_v26 = vpop.f32.mrf.mxu1  ;;  %v4603_v47 = vld [vmem:[#allocation4 + $0x8] sm:$0xff]  ;;  %v4680_v30 = vadd.f32 %v8820_v45, %v4641_v4  ;;  %v4714_v0 = vmax.f32 %v4682_v9, 0.0 }
 0x330   : > { %4575 = vst.msk [vmem:[#allocation4 + $0x28] sm:$0xff] %vm1017_vm8, %v4543_v43  ;;  %v4548_v21 = vadd.f32 %v8722_v11, %v4516_v8  ;;  %4162 = vst.msk [vmem:[#allocation4 + $0x70] sm:$0xff] %vm1017_vm8, %v4130_v46  ;;  %v4128_v22 = vadd.f32 %v4096_v24, %v4005_v26  ;;  %v4642_v36 = vmul.f32 %v8805_v35, %v4603_v47  ;;  %v8862_v24 = vpop.f32.mrf.mxu0 }
 0x331   : > { %v4514_v13 = vld [vmem:[#allocation4 + $0x40] sm:$0xff]  ;;  %v5976_v34 = vpop.f32.mrf.mxu1  ;;  %v4683_v42 = vadd.f32 %v8820_v45, %v4644_v52  ;;  %v4608_v15 = vld [vmem:[#allocation4 + $0x30] sm:$0xff]  ;;  %v4712_v3 = vmax.f32 %v4680_v30, 0.0 }
 0x332   : > { %4580 = vst.msk [vmem:[#allocation4 + $0x50] sm:$0xff] %vm1017_vm8, %v4548_v21  ;;  %v4546_v55 = vadd.f32 %v4514_v13, %v8730_v41  ;;  %4160 = vst.msk [vmem:[#allocation4 + $0x60] sm:$0xff] %vm1017_vm8, %v4128_v22  ;;  %v4131_v20 = vadd.f32 %v5976_v34, %v4099_v18  ;;  %v4681_v11 = vadd.f32 %v8820_v45, %v4642_v36  ;;  %v4101_v21 = vld [vmem:[#allocation4 + $0x88] sm:$0xff] }
 0x333   : > { %v4517_v23 = vld [vmem:[#allocation4 + $0x58] sm:$0xff]  ;;  %v4008_v63 = vpop.f32.mrf.mxu1  ;;  %v4715_v32 = vmax.f32 %v4683_v42, 0.0  ;;  %v4606_v48 = vld [vmem:[#allocation4 + $0x20] sm:$0xff]  ;;  %v4647_v19 = vmul.f32 %v8805_v35, %v4608_v15 }
 0x334   : > { %4578 = vst.msk [vmem:[#allocation4 + $0x40] sm:$0xff] %vm1017_vm8, %v4546_v55  ;;  %v4549_v37 = vadd.f32 %v8738_v40, %v4517_v23  ;;  %4163 = vst.msk [vmem:[#allocation4 + $0x78] sm:$0xff] %vm1017_vm8, %v4131_v20  ;;  %v4129_v41 = vadd.f32 %v4097_v57, %v4008_v63  ;;  %v4713_v25 = vmax.f32 %v4681_v11, 0.0  ;;  %v4645_v61 = vmul.f32 %v8805_v35, %v4606_v48  ;;  %v4106_v20 = vld [vmem:[#allocation4 + $0xb0] sm:$0xff] }
 0x335   : > { %v4515_v5 = vld [vmem:[#allocation4 + $0x48] sm:$0xff]  ;;  %v5979_v38 = vpop.f32.mrf.mxu1  ;;  %v4609_v33 = vld [vmem:[#allocation4 + $0x38] sm:$0xff]  ;;  %v4745_v49 = vpack.c.bf16 %v4715_v32, %v4714_v0  ;;  %v4686_v43 = vadd.f32 %v8820_v45, %v4647_v19 }
 0x336   : > { %4581 = vst.msk [vmem:[#allocation4 + $0x58] sm:$0xff] %vm1017_vm8, %v4549_v37  ;;  %v4547_v50 = vadd.f32 %v4515_v5, %v8746_v53  ;;  %4161 = vst.msk [vmem:[#allocation4 + $0x68] sm:$0xff] %vm1017_vm8, %v4129_v41  ;;  %v4134_v40 = vadd.f32 %v5979_v38, %v4102_v39  ;;  %v4744_v10 = vpack.c.bf16 %v4713_v25, %v4712_v3  ;;  %v8872_v3 = vpop.f32.mrf.mxu0  ;;  %v4104_v37 = vld [vmem:[#allocation4 + $0xa0] sm:$0xff]  ;;  %v4107_v19 = vld [vmem:[#allocation4 + $0xb8] sm:$0xff] }
 0x337   : > { %v4520_v44 = vld [vmem:[#allocation4 + $0x70] sm:$0xff]  ;;  %v4021_v27 = vpop.f32.mrf.mxu1  ;;  %v4607_v28 = vld [vmem:[#allocation4 + $0x28] sm:$0xff]  ;;  %v4684_v16 = vadd.f32 %v8820_v45, %v4645_v61  ;;  %v4648_v4 = vmul.f32 %v8805_v35, %v4609_v33  ;;  %v4718_v11 = vmax.f32 %v4686_v43, 0.0 }
 0x338   : > { %4579 = vst.msk [vmem:[#allocation4 + $0x48] sm:$0xff] %vm1017_vm8, %v4547_v50  ;;  %v4552_v60 = vadd.f32 %v8754_v1, %v4520_v44  ;;  %4166 = vst.msk [vmem:[#allocation4 + $0x90] sm:$0xff] %vm1017_vm8, %v4134_v40  ;;  %v4132_v53 = vadd.f32 %v4100_v2, %v4021_v27  ;;  %6029 = vmatprep.mubr.msk.bf16.mxu1 %vm1017_vm8, %v4744_v10  ;;  %v4646_v31 = vmul.f32 %v8805_v35, %v4607_v28  ;;  %v8888_v2 = vpop.f32.mrf.mxu0 }
 0x339   : > { %v4518_v54 = vld [vmem:[#allocation4 + $0x60] sm:$0xff]  ;;  %v5980_v29 = vpop.f32.mrf.mxu1  ;;  %6030 = vmatmul.mubr.msk.bf16.vlgmr.msra.gmra.mxu1 %vm1017_vm8, %v4745_v49  ;;  %v4687_v46 = vadd.f32 %v8820_v45, %v4648_v4  ;;  %v4612_v26 = vld [vmem:[#allocation4 + $0x50] sm:$0xff]  ;;  %v4716_v22 = vmax.f32 %v4684_v16, 0.0  ;;  %v4105_v16 = vld [vmem:[#allocation4 + $0xa8] sm:$0xff] }
 0x33a   : > { %4584 = vst.msk [vmem:[#allocation4 + $0x70] sm:$0xff] %vm1017_vm8, %v4552_v60  ;;  %v4550_v1 = vadd.f32 %v4518_v54, %v8762_v6  ;;  %4164 = vst.msk [vmem:[#allocation4 + $0x80] sm:$0xff] %vm1017_vm8, %v4132_v53  ;;  %v4135_v52 = vadd.f32 %v5980_v29, %v4103_v7  ;;  %v4685_v8 = vadd.f32 %v8820_v45, %v4646_v31 }
 0x33b   : > { %v4521_v47 = vld [vmem:[#allocation4 + $0x78] sm:$0xff]  ;;  %v4024_v30 = vpop.f32.mrf.mxu1  ;;  %v4719_v36 = vmax.f32 %v4687_v46, 0.0  ;;  %v4610_v13 = vld [vmem:[#allocation4 + $0x40] sm:$0xff]  ;;  %v4651_v23 = vmul.f32 %v8805_v35, %v4612_v26  ;;  %v4110_v46 = vld [vmem:[#allocation4 + $0xd0] sm:$0xff] }
 0x33c   : > { %4582 = vst.msk [vmem:[#allocation4 + $0x60] sm:$0xff] %vm1017_vm8, %v4550_v1  ;;  %v4553_v34 = vadd.f32 %v8770_v58, %v4521_v47  ;;  %4167 = vst.msk [vmem:[#allocation4 + $0x98] sm:$0xff] %vm1017_vm8, %v4135_v52  ;;  %v4133_v6 = vadd.f32 %v4101_v21, %v4024_v30  ;;  %v4717_v18 = vmax.f32 %v4685_v8, 0.0  ;;  %v4649_v9 = vmul.f32 %v8805_v35, %v4610_v13  ;;  %v8898_v30 = vpop.f32.mrf.mxu0 }
 0x33d   : > { %v4519_v42 = vld [vmem:[#allocation4 + $0x68] sm:$0xff]  ;;  %v5983_v55 = vpop.f32.mrf.mxu1  ;;  %v4613_v15 = vld [vmem:[#allocation4 + $0x58] sm:$0xff]  ;;  %v4747_v41 = vpack.c.bf16 %v4719_v36, %v4718_v11  ;;  %v4690_v50 = vadd.f32 %v8820_v45, %v4651_v23  ;;  %v4108_v36 = vld [vmem:[#allocation4 + $0xc0] sm:$0xff] }
 0x33e   : > { %4585 = vst.msk [vmem:[#allocation4 + $0x78] sm:$0xff] %vm1017_vm8, %v4553_v34  ;;  %v4551_v63 = vadd.f32 %v4519_v42, %v8778_v14  ;;  %4165 = vst.msk [vmem:[#allocation4 + $0x88] sm:$0xff] %vm1017_vm8, %v4133_v6  ;;  %v4138_v58 = vadd.f32 %v5983_v55, %v4106_v20  ;;  %v4746_v57 = vpack.c.bf16 %v4717_v18, %v4716_v22  ;;  %v4111_v11 = vld [vmem:[#allocation4 + $0xd8] sm:$0xff] }
 0x33f   : > { %v4524_v32 = vld [vmem:[#allocation4 + $0x90] sm:$0xff]  ;;  %v4037_v48 = vpop.f32.mrf.mxu1  ;;  %v4611_v25 = vld [vmem:[#allocation4 + $0x48] sm:$0xff]  ;;  %v4688_v61 = vadd.f32 %v8820_v45, %v4649_v9  ;;  %v4652_v5 = vmul.f32 %v8805_v35, %v4613_v15  ;;  %v4722_v1 = vmax.f32 %v4690_v50, 0.0 }
 0x340   : > { %4583 = vst.msk [vmem:[#allocation4 + $0x68] sm:$0xff] %vm1017_vm8, %v4551_v63  ;;  %v4556_v38 = vadd.f32 %v8786_v12, %v4524_v32  ;;  %4170 = vst.msk [vmem:[#allocation4 + $0xb0] sm:$0xff] %vm1017_vm8, %v4138_v58  ;;  %v4136_v14 = vadd.f32 %v4104_v37, %v4037_v48  ;;  %6033 = vmatprep.mubr.msk.bf16.mxu1 %vm1017_vm8, %v4746_v57  ;;  %v4650_v39 = vmul.f32 %v8805_v35, %v4611_v25  ;;  %v6022_v32 = vpop.f32.mrf.mxu0 }
 0x341   : > { %v4522_v0 = vld [vmem:[#allocation4 + $0x80] sm:$0xff]  ;;  %v5984_v33 = vpop.f32.mrf.mxu1  ;;  %6034 = vmatmul.mubr.msk.bf16.gmra.mxu1 %vm1017_vm8, %v4747_v41  ;;  %v4691_v40 = vadd.f32 %v8820_v45, %v4652_v5  ;;  %v4616_v27 = vld [vmem:[#allocation4 + $0x70] sm:$0xff]  ;;  %v4720_v4 = vmax.f32 %v4688_v61, 0.0  ;;  %v4109_v41 = vld [vmem:[#allocation4 + $0xc8] sm:$0xff] }
 0x342   : > { %4588 = vst.msk [vmem:[#allocation4 + $0x90] sm:$0xff] %vm1017_vm8, %v4556_v38  ;;  %v4554_v12 = vadd.f32 %v4522_v0, %v8794_v17  ;;  %4168 = vst.msk [vmem:[#allocation4 + $0xa0] sm:$0xff] %vm1017_vm8, %v4136_v14  ;;  %v4139_v10 = vadd.f32 %v5984_v33, %v4107_v19  ;;  %v4689_v44 = vadd.f32 %v8820_v45, %v4650_v39  ;;  %v4114_v19 = vld [vmem:[#allocation4 + $0xf0] sm:$0xff] }
 0x343   : > { %v4525_v49 = vld [vmem:[#allocation4 + $0x98] sm:$0xff]  ;;  %v4040_v28 = vpop.f32.mrf.mxu1  ;;  %v4723_v60 = vmax.f32 %v4691_v40, 0.0  ;;  %v4614_v53 = vld [vmem:[#allocation4 + $0x60] sm:$0xff]  ;;  %v4655_v8 = vmul.f32 %v8805_v35, %v4616_v27  ;;  %v4478_v27 = vpop.f32.mrf.mxu0 }
 0x344   : > { %4586 = vst.msk [vmem:[#allocation4 + $0x80] sm:$0xff] %vm1017_vm8, %v4554_v12  ;;  %v4557_v31 = vadd.f32 %v8807_v62, %v4525_v49  ;;  %4171 = vst.msk [vmem:[#allocation4 + $0xb8] sm:$0xff] %vm1017_vm8, %v4139_v10  ;;  %v4137_v17 = vadd.f32 %v4105_v16, %v4040_v28  ;;  %v4721_v54 = vmax.f32 %v4689_v44, 0.0  ;;  %v4653_v29 = vmul.f32 %v8805_v35, %v4614_v53  ;;  %v4112_v16 = vld [vmem:[#allocation4 + $0xe0] sm:$0xff] }
 0x345   : > { %v4523_v7 = vld [vmem:[#allocation4 + $0x88] sm:$0xff]  ;;  %v5987_v43 = vpop.f32.mrf.mxu1  ;;  %v4617_v52 = vld [vmem:[#allocation4 + $0x78] sm:$0xff]  ;;  %v4749_v13 = vpack.c.bf16 %v4723_v60, %v4722_v1  ;;  %v4694_v15 = vadd.f32 %v8820_v45, %v4655_v8 }
 0x346   : > { %4589 = vst.msk [vmem:[#allocation4 + $0x98] sm:$0xff] %vm1017_vm8, %v4557_v31  ;;  %v4555_v26 = vadd.f32 %v4523_v7, %v8823_v56  ;;  %4169 = vst.msk [vmem:[#allocation4 + $0xa8] sm:$0xff] %vm1017_vm8, %v4137_v17  ;;  %v4142_v62 = vadd.f32 %v5987_v43, %v4110_v46  ;;  %v4748_v47 = vpack.c.bf16 %v4721_v54, %v4720_v4  ;;  %v4115_v43 = vld [vmem:[#allocation4 + $0xf8] sm:$0xff]  ;;  %v6025_v46 = vpop.f32.mrf.mxu0 }
 0x347   : > { %v4528_v21 = vld [vmem:[#allocation4 + $0xb0] sm:$0xff]  ;;  %v4053_v22 = vpop.f32.mrf.mxu1  ;;  %v4615_v34 = vld [vmem:[#allocation4 + $0x68] sm:$0xff]  ;;  %v4692_v6 = vadd.f32 %v8820_v45, %v4653_v29  ;;  %v4656_v18 = vmul.f32 %v8805_v35, %v4617_v52  ;;  %v4726_v50 = vmax.f32 %v4694_v15, 0.0 }
 0x348   : > { %4587 = vst.msk [vmem:[#allocation4 + $0x88] sm:$0xff] %vm1017_vm8, %v4555_v26  ;;  %v4560_v9 = vadd.f32 %v8836_v51, %v4528_v21  ;;  %4174 = vst.msk [vmem:[#allocation4 + $0xd0] sm:$0xff] %vm1017_vm8, %v4142_v62  ;;  %v4140_v56 = vadd.f32 %v4108_v36, %v4053_v22  ;;  %6037 = vmatprep.mubr.msk.bf16.mxu1 %vm1017_vm8, %v4748_v47  ;;  %v4654_v42 = vmul.f32 %v8805_v35, %v4615_v34  ;;  %v4113_v22 = vld [vmem:[#allocation4 + $0xe8] sm:$0xff] }
 0x349   : > { %v4526_v55 = vld [vmem:[#allocation4 + $0xa0] sm:$0xff]  ;;  %v5988_v20 = vpop.f32.mrf.mxu1  ;;  %6038 = vmatmul.mubr.msk.bf16.gmra.mxu1 %vm1017_vm8, %v4749_v13  ;;  %v4695_v23 = vadd.f32 %v8820_v45, %v4656_v18  ;;  %v4620_v57 = vld [vmem:[#allocation4 + $0x90] sm:$0xff]  ;;  %v4724_v25 = vmax.f32 %v4692_v6, 0.0 }
 0x34a   : > { %4592 = vst.msk [vmem:[#allocation4 + $0xb0] sm:$0xff] %vm1017_vm8, %v4560_v9  ;;  %v4558_v51 = vadd.f32 %v4526_v55, %v8846_v59  ;;  %4172 = vst.msk [vmem:[#allocation4 + $0xc0] sm:$0xff] %vm1017_vm8, %v4140_v56  ;;  %v4143_v63 = vadd.f32 %v5988_v20, %v4111_v11  ;;  %v4693_v58 = vadd.f32 %v8820_v45, %v4654_v42  ;;  %v4491_v42 = vpop.f32.mrf.mxu0 }
 0x34b   : > { %v4529_v48 = vld [vmem:[#allocation4 + $0xb8] sm:$0xff]  ;;  %v4056_v37 = vpop.f32.mrf.mxu1  ;;  %v4727_v61 = vmax.f32 %v4695_v23, 0.0  ;;  %v4618_v5 = vld [vmem:[#allocation4 + $0x80] sm:$0xff]  ;;  %v4659_v12 = vmul.f32 %v8805_v35, %v4620_v57 }
 0x34c   : > { %4590 = vst.msk [vmem:[#allocation4 + $0xa0] sm:$0xff] %vm1017_vm8, %v4558_v51  ;;  %v4561_v38 = vadd.f32 %v8862_v24, %v4529_v48  ;;  %4175 = vst.msk [vmem:[#allocation4 + $0xd8] sm:$0xff] %vm1017_vm8, %v4143_v63  ;;  %v4141_v59 = vadd.f32 %v4109_v41, %v4056_v37  ;;  %v4725_v14 = vmax.f32 %v4693_v58, 0.0  ;;  %v4657_v39 = vmul.f32 %v8805_v35, %v4618_v5 }
 0x34d   : > { %v4527_v0 = vld [vmem:[#allocation4 + $0xa8] sm:$0xff]  ;;  %v5991_v33 = vpop.f32.mrf.mxu1  ;;  %v4621_v40 = vld [vmem:[#allocation4 + $0x98] sm:$0xff]  ;;  %v4751_v4 = vpack.c.bf16 %v4727_v61, %v4726_v50  ;;  %v4698_v1 = vadd.f32 %v8820_v45, %v4659_v12  ;;  %v6026_v61 = vpop.f32.mrf.mxu0 }
 0x34e   : > { %4593 = vst.msk [vmem:[#allocation4 + $0xb8] sm:$0xff] %vm1017_vm8, %v4561_v38  ;;  %v4559_v10 = vadd.f32 %v4527_v0, %v8872_v3  ;;  %4173 = vst.msk [vmem:[#allocation4 + $0xc8] sm:$0xff] %vm1017_vm8, %v4141_v59  ;;  %v4146_v24 = vadd.f32 %v5991_v33, %v4114_v19  ;;  %v4750_v44 = vpack.c.bf16 %v4725_v14, %v4724_v25 }
 0x34f   : > { %v4532_v49 = vld [vmem:[#allocation4 + $0xd0] sm:$0xff]  ;;  %v4069_v28 = vpop.f32.mrf.mxu1  ;;  %v4619_v60 = vld [vmem:[#allocation4 + $0x88] sm:$0xff]  ;;  %v4696_v53 = vadd.f32 %v8820_v45, %v4657_v39  ;;  %v4660_v31 = vmul.f32 %v8805_v35, %v4621_v40  ;;  %v4730_v55 = vmax.f32 %v4698_v1, 0.0 }
 0x350   : > { %4591 = vst.msk [vmem:[#allocation4 + $0xa8] sm:$0xff] %vm1017_vm8, %v4559_v10  ;;  %v4564_v17 = vadd.f32 %v8888_v2, %v4532_v49  ;;  %4178 = vst.msk [vmem:[#allocation4 + $0xf0] sm:$0xff] %vm1017_vm8, %v4146_v24  ;;  %v4144_v3 = vadd.f32 %v4112_v16, %v4069_v28  ;;  %6041 = vmatprep.mubr.msk.bf16.mxu1 %vm1017_vm8, %v4750_v44  ;;  %v4658_v54 = vmul.f32 %v8805_v35, %v4619_v60  ;;  %v4494_v10 = vpop.f32.mrf.mxu0 }
 0x351   : > { %v4530_v29 = vld [vmem:[#allocation4 + $0xc0] sm:$0xff]  ;;  %v5992_v7 = vpop.f32.mrf.mxu1  ;;  %6042 = vmatmul.mubr.msk.bf16.gmra.mxu1 %vm1017_vm8, %v4751_v4  ;;  %v4699_v52 = vadd.f32 %v8820_v45, %v4660_v31  ;;  %v4624_v62 = vld [vmem:[#allocation4 + $0xb0] sm:$0xff]  ;;  %v4728_v36 = vmax.f32 %v4696_v53, 0.0 }
 0x352   : > { %4596 = vst.msk [vmem:[#allocation4 + $0xd0] sm:$0xff] %vm1017_vm8, %v4564_v17  ;;  %v4562_v2 = vadd.f32 %v4530_v29, %v8898_v30  ;;  %4176 = vst.msk [vmem:[#allocation4 + $0xe0] sm:$0xff] %vm1017_vm8, %v4144_v3  ;;  %v4147_v8 = vadd.f32 %v5992_v7, %v4115_v43  ;;  %v4697_v26 = vadd.f32 %v8820_v45, %v4658_v54 }
 0x353   : > { %v4533_v47 = vld [vmem:[#allocation4 + $0xd8] sm:$0xff]  ;;  %v4072_v21 = vpop.f32.mrf.mxu1  ;;  %v4731_v13 = vmax.f32 %v4699_v52, 0.0  ;;  %v4622_v34 = vld [vmem:[#allocation4 + $0xa0] sm:$0xff]  ;;  %v4663_v11 = vmul.f32 %v8805_v35, %v4624_v62 }
 0x354   : > { %4594 = vst.msk [vmem:[#allocation4 + $0xc0] sm:$0xff] %vm1017_vm8, %v4562_v2  ;;  %v4565_v6 = vadd.f32 %v6022_v32, %v4533_v47  ;;  %4179 = vst.msk [vmem:[#allocation4 + $0xf8] sm:$0xff] %vm1017_vm8, %v4147_v8  ;;  %v4145_v18 = vadd.f32 %v4113_v22, %v4072_v21  ;;  %v4729_v9 = vmax.f32 %v4697_v26, 0.0  ;;  %v4661_v30 = vmul.f32 %v8805_v35, %v4622_v34 }
 0x355   : > { %v4531_v56 = vld [vmem:[#allocation4 + $0xc8] sm:$0xff]  ;;  %v4625_v20 = vld [vmem:[#allocation4 + $0xb8] sm:$0xff]  ;;  %v4753_v58 = vpack.c.bf16 %v4731_v13, %v4730_v55  ;;  %v4702_v5 = vadd.f32 %v8820_v45, %v4663_v11 }
 0x356   : > { %4597 = vst.msk [vmem:[#allocation4 + $0xd8] sm:$0xff] %vm1017_vm8, %v4565_v6  ;;  %v4563_v15 = vadd.f32 %v4531_v56, %v4478_v27  ;;  %4177 = vst.msk [vmem:[#allocation4 + $0xe8] sm:$0xff] %vm1017_vm8, %v4145_v18  ;;  %v4752_v23 = vpack.c.bf16 %v4729_v9, %v4728_v36  ;;  %v4664_v51 = vmul.f32 %v8805_v35, %v4625_v20 }
 0x357   : > { %v4536_v63 = vld [vmem:[#allocation4 + $0xf0] sm:$0xff]  ;;  %v4623_v57 = vld [vmem:[#allocation4 + $0xa8] sm:$0xff]  ;;  %v4700_v37 = vadd.f32 %v8820_v45, %v4661_v30  ;;  %v4734_v44 = vmax.f32 %v4702_v5, 0.0  ;;  %v6264_v5 = vld [vmem:[%s6732_s9] sm:$0xff] }
 0x358   : > { %4595 = vst.msk [vmem:[#allocation4 + $0xc8] sm:$0xff] %vm1017_vm8, %v4563_v15  ;;  %v4568_v32 = vadd.f32 %v6025_v46, %v4536_v63  ;;  %6045 = vmatprep.mubr.msk.bf16.mxu1 %vm1017_vm8, %v4752_v23  ;;  %v4662_v48 = vmul.f32 %v8805_v35, %v4623_v57  ;;  %v4703_v41 = vadd.f32 %v8820_v45, %v4664_v51 }
 0x359   : > { %v4534_v25 = vld [vmem:[#allocation4 + $0xe0] sm:$0xff]  ;;  %6046 = vmatmul.mubr.msk.bf16.gmra.mxu1 %vm1017_vm8, %v4753_v58  ;;  %v4628_v14 = vld [vmem:[#allocation4 + $0xd0] sm:$0xff]  ;;  %v4732_v50 = vmax.f32 %v4700_v37, 0.0 }
 0x35a   : > { %4600 = vst.msk [vmem:[#allocation4 + $0xf0] sm:$0xff] %vm1017_vm8, %v4568_v32  ;;  %v4566_v38 = vadd.f32 %v4534_v25, %v4491_v42  ;;  %v4701_v59 = vadd.f32 %v8820_v45, %v4662_v48  ;;  %v4735_v0 = vmax.f32 %v4703_v41, 0.0  ;;  %v4667_v49 = vmul.f32 %v8805_v35, %v4628_v14  ;;  %v6263_v32 = vld [vmem:[%s6732_s9 + $0x10] sm:$0xff] }
 0x35b   : > { %v4537_v39 = vld [vmem:[#allocation4 + $0xf8] sm:$0xff]  ;;  %v4626_v33 = vld [vmem:[#allocation4 + $0xc0] sm:$0xff] }
 0x35c   : > { %4598 = vst.msk [vmem:[#allocation4 + $0xe0] sm:$0xff] %vm1017_vm8, %v4566_v38  ;;  %v4569_v19 = vadd.f32 %v6026_v61, %v4537_v39  ;;  %v4733_v40 = vmax.f32 %v4701_v59, 0.0  ;;  %v4665_v12 = vmul.f32 %v8805_v35, %v4626_v33  ;;  %v4755_v60 = vpack.c.bf16 %v4735_v0, %v4734_v44  ;;  %v6265_v33 = vld [vmem:[%s6732_s9 + $0x18] sm:$0xff] }
 0x35d   : > { %v4535_v24 = vld [vmem:[#allocation4 + $0xe8] sm:$0xff]  ;;  %v4629_v27 = vld [vmem:[#allocation4 + $0xd8] sm:$0xff]  ;;  %v4706_v54 = vadd.f32 %v8820_v45, %v4667_v49 }
 0x35e   : > { %4601 = vst.msk [vmem:[#allocation4 + $0xf8] sm:$0xff] %vm1017_vm8, %v4569_v19  ;;  %v4567_v28 = vadd.f32 %v4535_v24, %v4494_v10  ;;  %v4754_v16 = vpack.c.bf16 %v4733_v40, %v4732_v50  ;;  %v4668_v4 = vmul.f32 %v8805_v35, %v4629_v27  ;;  %v4704_v17 = vadd.f32 %v8820_v45, %v4665_v12  ;;  %v6266_v24 = vld [vmem:[%s6732_s9 + $0x8] sm:$0xff] }
 0x35f   : > { %v4627_v53 = vld [vmem:[#allocation4 + $0xc8] sm:$0xff]  ;;  %v4738_v8 = vmax.f32 %v4706_v54, 0.0  ;;  %v6268_v54 = vld [vmem:[%s6732_s9 + $0x20] sm:$0xff] }
 0x360   : > { %4599 = vst.msk [vmem:[#allocation4 + $0xe8] sm:$0xff] %vm1017_vm8, %v4567_v28  ;;  %6049 = vmatprep.mubr.msk.bf16.mxu1 %vm1017_vm8, %v4754_v16  ;;  %v4666_v31 = vmul.f32 %v8805_v35, %v4627_v53  ;;  %v4707_v3 = vadd.f32 %v8820_v45, %v4668_v4  ;;  %v4736_v1 = vmax.f32 %v4704_v17, 0.0  ;;  %v6267_v4 = vld [vmem:[%s6732_s9 + $0x30] sm:$0xff] }
 0x361   : > { %6050 = vmatmul.mubr.msk.bf16.gmra.mxu1 %vm1017_vm8, %v4755_v60  ;;  %v4632_v7 = vld [vmem:[#allocation4 + $0xf0] sm:$0xff] }
 0x362   : > { %v4705_v29 = vadd.f32 %v8820_v45, %v4666_v31  ;;  %v4739_v43 = vmax.f32 %v4707_v3, 0.0  ;;  %v4671_v62 = vmul.f32 %v8805_v35, %v4632_v7 }
 0x363   : > { %v4630_v46 = vld [vmem:[#allocation4 + $0xe0] sm:$0xff] }
 0x364   : > { %v4737_v52 = vmax.f32 %v4705_v29, 0.0  ;;  %v4669_v2 = vmul.f32 %v8805_v35, %v4630_v46  ;;  %v4757_v22 = vpack.c.bf16 %v4739_v43, %v4738_v8  ;;  %v4710_v18 = vadd.f32 %v8820_v45, %v4671_v62 }
 0x365   : > { %v4633_v26 = vld [vmem:[#allocation4 + $0xf8] sm:$0xff] }
 0x366   : > { %v4756_v47 = vpack.c.bf16 %v4737_v52, %v4736_v1  ;;  %v4672_v21 = vmul.f32 %v8805_v35, %v4633_v26  ;;  %v4708_v34 = vadd.f32 %v8820_v45, %v4669_v2  ;;  %v4742_v55 = vmax.f32 %v4710_v18, 0.0  ;;  %v6269_v52 = vld [vmem:[%s6732_s9 + $0x38] sm:$0xff]  ;;  %v6271_v18 = vld [vmem:[%s6732_s9 + $0x50] sm:$0xff] }
 0x367   : > { %v4631_v36 = vld [vmem:[#allocation4 + $0xe8] sm:$0xff] }
 0x368   : > { %6053 = vmatprep.mubr.msk.bf16.mxu1 %vm1017_vm8, %v4756_v47  ;;  %v4670_v13 = vmul.f32 %v8805_v35, %v4631_v36  ;;  %v4711_v6 = vadd.f32 %v8820_v45, %v4672_v21  ;;  %v4740_v56 = vmax.f32 %v4708_v34, 0.0  ;;  %v8980_v35 = vld [vmem:[%s9472_s28] ss:$0 sm:$0xff]  ;;  %v6270_v21 = vld [vmem:[%s6732_s9 + $0x28] sm:$0xff] }
 0x369   : > { %6054 = vmatmul.mubr.msk.bf16.gmra.mxu1 %vm1017_vm8, %v4757_v22 }
 0x36a   : > { %v4709_v9 = vadd.f32 %v8820_v45, %v4670_v13  ;;  %v4743_v30 = vmax.f32 %v4711_v6, 0.0  ;;  %v8985_v45 = vld [vmem:[%s9473_s11] ss:$0 sm:$0xff] }
 0x36c   : > { %v4741_v42 = vmax.f32 %v4709_v9, 0.0  ;;  %v4759_v11 = vpack.c.bf16 %v4743_v30, %v4742_v55 }
 0x36e   : > { %v4758_v20 = vpack.c.bf16 %v4741_v42, %v4740_v56 }
 0x370   : > { %6057 = vmatprep.mubr.msk.bf16.mxu1 %vm1017_vm8, %v4758_v20  ;;  %v6272_v20 = vld [vmem:[%s6732_s9 + $0x40] sm:$0xff] }
 0x371   : > { %6058 = vmatmul.mubr.msk.bf16.gmra.mxu1 %vm1017_vm8, %v4759_v11 }
 0x3f9   : > { %v6031_v15 = vpop.f32.mrf.mxu1 }
 0x3fa   : > { %v4982_v23 = vmul.f32 %v6031_v15, %v8980_v35 }
 0x3fb   : > { %v4846_v51 = vpop.f32.mrf.mxu1 }
 0x3fc   : > { %v5021_v63 = vadd.f32 %v8985_v45, %v4982_v23  ;;  %v4980_v58 = vmul.f32 %v8980_v35, %v4846_v51 }
 0x3fd   : > { %v6032_v57 = vpop.f32.mrf.mxu1 }
 0x3fe   : > { %v5053_v48 = vadd.f32 %v6263_v32, %v5021_v63  ;;  %v5019_v37 = vadd.f32 %v8985_v45, %v4980_v58  ;;  %v4983_v41 = vmul.f32 %v6032_v57, %v8980_v35  ;;  %v6273_v58 = vld [vmem:[%s6732_s9 + $0x58] sm:$0xff] }
 0x3ff   : > { %v4849_v25 = vpop.f32.mrf.mxu1 }
 0x400   : > { %v5085_v61 = vmax.f32 %v5053_v48, 0.0  ;;  %v5051_v38 = vadd.f32 %v6264_v5, %v5019_v37  ;;  %v5022_v59 = vadd.f32 %v8985_v45, %v4983_v41  ;;  %v4981_v14 = vmul.f32 %v8980_v35, %v4849_v25  ;;  %v6274_v25 = vld [vmem:[%s6732_s9 + $0x48] sm:$0xff] }
 0x401   : > { %v6035_v39 = vpop.f32.mrf.mxu1 }
 0x402   : > { %5117 = vst.msk [vmem:[%s6712_s21 + $0x10] sm:$0xff] %vm696_vm4, %v5085_v61  ;;  %v5083_v0 = vmax.f32 %v5051_v38, 0.0  ;;  %v5054_v19 = vadd.f32 %v6265_v33, %v5022_v59  ;;  %v5020_v50 = vadd.f32 %v8985_v45, %v4981_v14  ;;  %v4986_v40 = vmul.f32 %v6035_v39, %v8980_v35  ;;  %v6275_v39 = vld [vmem:[%s6732_s9 + $0x70] sm:$0xff] }
 0x403   : > { %v4862_v12 = vpop.f32.mrf.mxu1 }
 0x404   : > { %5115 = vst.msk [vmem:[%s6712_s21] sm:$0xff] %vm696_vm4, %v5083_v0  ;;  %v5086_v10 = vmax.f32 %v5054_v19, 0.0  ;;  %v5052_v44 = vadd.f32 %v6266_v24, %v5020_v50  ;;  %v5025_v27 = vadd.f32 %v8985_v45, %v4986_v40  ;;  %v4984_v49 = vmul.f32 %v8980_v35, %v4862_v12  ;;  %v6276_v12 = vld [vmem:[%s6732_s9 + $0x60] sm:$0xff] }
 0x405   : > { %v6036_v28 = vpop.f32.mrf.mxu1 }
 0x406   : > { %5118 = vst.msk [vmem:[%s6712_s21 + $0x18] sm:$0xff] %vm696_vm4, %v5086_v10  ;;  %v5084_v16 = vmax.f32 %v5052_v44, 0.0  ;;  %v5057_v60 = vadd.f32 %v6267_v4, %v5025_v27  ;;  %v5023_v53 = vadd.f32 %v8985_v45, %v4984_v49  ;;  %v4987_v31 = vmul.f32 %v6036_v28, %v8980_v35  ;;  %v6277_v28 = vld [vmem:[%s6732_s9 + $0x78] sm:$0xff] }
 0x407   : > { %v4865_v17 = vpop.f32.mrf.mxu1 }
 0x408   : > { %5116 = vst.msk [vmem:[%s6712_s21 + $0x8] sm:$0xff] %vm696_vm4, %v5084_v16  ;;  %v5089_v3 = vmax.f32 %v5057_v60, 0.0  ;;  %v5055_v29 = vadd.f32 %v6268_v54, %v5023_v53  ;;  %v5026_v7 = vadd.f32 %v8985_v45, %v4987_v31  ;;  %v4985_v43 = vmul.f32 %v8980_v35, %v4865_v17  ;;  %v6278_v17 = vld [vmem:[%s6732_s9 + $0x68] sm:$0xff] }
 0x409   : > { %v6039_v46 = vpop.f32.mrf.mxu1 }
 0x40a   : > { %5121 = vst.msk [vmem:[%s6712_s21 + $0x30] sm:$0xff] %vm696_vm4, %v5089_v3  ;;  %v5087_v1 = vmax.f32 %v5055_v29, 0.0  ;;  %v5058_v2 = vadd.f32 %v6269_v52, %v5026_v7  ;;  %v5024_v8 = vadd.f32 %v8985_v45, %v4985_v43  ;;  %v4990_v26 = vmul.f32 %v6039_v46, %v8980_v35  ;;  %v6279_v46 = vld [vmem:[%s6732_s9 + $0x90] sm:$0xff] }
 0x40b   : > { %v4878_v62 = vpop.f32.mrf.mxu1 }
 0x40c   : > { %5119 = vst.msk [vmem:[%s6712_s21 + $0x20] sm:$0xff] %vm696_vm4, %v5087_v1  ;;  %v5090_v47 = vmax.f32 %v5058_v2, 0.0  ;;  %v5056_v22 = vadd.f32 %v6270_v21, %v5024_v8  ;;  %v5029_v36 = vadd.f32 %v8985_v45, %v4990_v26  ;;  %v4988_v13 = vmul.f32 %v8980_v35, %v4878_v62  ;;  %v6280_v62 = vld [vmem:[%s6732_s9 + $0x80] sm:$0xff] }
 0x40d   : > { %v6040_v34 = vpop.f32.mrf.mxu1 }
 0x40e   : > { %5122 = vst.msk [vmem:[%s6712_s21 + $0x38] sm:$0xff] %vm696_vm4, %v5090_v47  ;;  %v5088_v6 = vmax.f32 %v5056_v22, 0.0  ;;  %v5061_v9 = vadd.f32 %v6271_v18, %v5029_v36  ;;  %v5027_v30 = vadd.f32 %v8985_v45, %v4988_v13  ;;  %v4991_v56 = vmul.f32 %v6040_v34, %v8980_v35  ;;  %v6281_v34 = vld [vmem:[%s6732_s9 + $0x98] sm:$0xff] }
 0x40f   : > { %v4881_v42 = vpop.f32.mrf.mxu1 }
 0x410   : > { %5120 = vst.msk [vmem:[%s6712_s21 + $0x28] sm:$0xff] %vm696_vm4, %v5088_v6  ;;  %v5093_v55 = vmax.f32 %v5061_v9, 0.0  ;;  %v5059_v11 = vadd.f32 %v6272_v20, %v5027_v30  ;;  %v5030_v15 = vadd.f32 %v8985_v45, %v4991_v56  ;;  %v4989_v23 = vmul.f32 %v8980_v35, %v4881_v42  ;;  %v6282_v42 = vld [vmem:[%s6732_s9 + $0x88] sm:$0xff] }
 0x411   : > { %v6043_v51 = vpop.f32.mrf.mxu1 }
 0x412   : > { %5125 = vst.msk [vmem:[%s6712_s21 + $0x50] sm:$0xff] %vm696_vm4, %v5093_v55  ;;  %v5091_v63 = vmax.f32 %v5059_v11, 0.0  ;;  %v5062_v57 = vadd.f32 %v6273_v58, %v5030_v15  ;;  %v5028_v32 = vadd.f32 %v8985_v45, %v4989_v23  ;;  %v4994_v48 = vmul.f32 %v6043_v51, %v8980_v35  ;;  %v6283_v51 = vld [vmem:[%s6732_s9 + $0xb0] sm:$0xff] }
 0x413   : > { %v4894_v37 = vpop.f32.mrf.mxu1 }
 0x414   : > { %5123 = vst.msk [vmem:[%s6712_s21 + $0x40] sm:$0xff] %vm696_vm4, %v5091_v63  ;;  %v5094_v41 = vmax.f32 %v5062_v57, 0.0  ;;  %v5060_v61 = vadd.f32 %v6274_v25, %v5028_v32  ;;  %v5033_v5 = vadd.f32 %v8985_v45, %v4994_v48  ;;  %v4992_v38 = vmul.f32 %v8980_v35, %v4894_v37  ;;  %v6284_v37 = vld [vmem:[%s6732_s9 + $0xa0] sm:$0xff] }
 0x415   : > { %v6044_v59 = vpop.f32.mrf.mxu1 }
 0x416   : > { %5126 = vst.msk [vmem:[%s6712_s21 + $0x58] sm:$0xff] %vm696_vm4, %v5094_v41  ;;  %v5092_v14 = vmax.f32 %v5060_v61, 0.0  ;;  %v5065_v0 = vadd.f32 %v6275_v39, %v5033_v5  ;;  %v5031_v33 = vadd.f32 %v8985_v45, %v4992_v38  ;;  %v4995_v19 = vmul.f32 %v6044_v59, %v8980_v35  ;;  %v6285_v59 = vld [vmem:[%s6732_s9 + $0xb8] sm:$0xff] }
 0x417   : > { %v4897_v50 = vpop.f32.mrf.mxu1 }
 0x418   : > { %5124 = vst.msk [vmem:[%s6712_s21 + $0x48] sm:$0xff] %vm696_vm4, %v5092_v14  ;;  %v5097_v40 = vmax.f32 %v5065_v0, 0.0  ;;  %v5063_v10 = vadd.f32 %v6276_v12, %v5031_v33  ;;  %v5034_v24 = vadd.f32 %v8985_v45, %v4995_v19  ;;  %v4993_v44 = vmul.f32 %v8980_v35, %v4897_v50  ;;  %v6286_v50 = vld [vmem:[%s6732_s9 + $0xa8] sm:$0xff] }
 0x419   : > { %v6047_v27 = vpop.f32.mrf.mxu1 }
 0x41a   : > { %5129 = vst.msk [vmem:[%s6712_s21 + $0x70] sm:$0xff] %vm696_vm4, %v5097_v40  ;;  %v5095_v49 = vmax.f32 %v5063_v10, 0.0  ;;  %v5066_v16 = vadd.f32 %v6277_v28, %v5034_v24  ;;  %v5032_v4 = vadd.f32 %v8985_v45, %v4993_v44  ;;  %v4998_v60 = vmul.f32 %v6047_v27, %v8980_v35  ;;  %v6287_v27 = vld [vmem:[%s6732_s9 + $0xd0] sm:$0xff] }
 0x41b   : > { %v4910_v53 = vpop.f32.mrf.mxu1 }
 0x41c   : > { %5127 = vst.msk [vmem:[%s6712_s21 + $0x60] sm:$0xff] %vm696_vm4, %v5095_v49  ;;  %v5098_v31 = vmax.f32 %v5066_v16, 0.0  ;;  %v5064_v3 = vadd.f32 %v6278_v17, %v5032_v4  ;;  %v5037_v54 = vadd.f32 %v8985_v45, %v4998_v60  ;;  %v4996_v29 = vmul.f32 %v8980_v35, %v4910_v53  ;;  %v6288_v53 = vld [vmem:[%s6732_s9 + $0xc0] sm:$0xff] }
 0x41d   : > { %v6048_v7 = vpop.f32.mrf.mxu1 }
 0x41e   : > { %5130 = vst.msk [vmem:[%s6712_s21 + $0x78] sm:$0xff] %vm696_vm4, %v5098_v31  ;;  %v5096_v43 = vmax.f32 %v5064_v3, 0.0  ;;  %v5069_v1 = vadd.f32 %v6279_v46, %v5037_v54  ;;  %v5035_v52 = vadd.f32 %v8985_v45, %v4996_v29  ;;  %v4999_v2 = vmul.f32 %v6048_v7, %v8980_v35  ;;  %v6289_v7 = vld [vmem:[%s6732_s9 + $0xd8] sm:$0xff] }
 0x41f   : > { %v4913_v8 = vpop.f32.mrf.mxu1 }
 0x420   : > { %5128 = vst.msk [vmem:[%s6712_s21 + $0x68] sm:$0xff] %vm696_vm4, %v5096_v43  ;;  %v5101_v26 = vmax.f32 %v5069_v1, 0.0  ;;  %v5067_v47 = vadd.f32 %v6280_v62, %v5035_v52  ;;  %v5038_v21 = vadd.f32 %v8985_v45, %v4999_v2  ;;  %v4997_v22 = vmul.f32 %v8980_v35, %v4913_v8  ;;  %v6290_v8 = vld [vmem:[%s6732_s9 + $0xc8] sm:$0xff] }
 0x421   : > { %v6051_v36 = vpop.f32.mrf.mxu1 }
 0x422   : > { %5133 = vst.msk [vmem:[%s6712_s21 + $0x90] sm:$0xff] %vm696_vm4, %v5101_v26  ;;  %v5099_v13 = vmax.f32 %v5067_v47, 0.0  ;;  %v5070_v6 = vadd.f32 %v6281_v34, %v5038_v21  ;;  %v5036_v18 = vadd.f32 %v8985_v45, %v4997_v22  ;;  %v5002_v9 = vmul.f32 %v6051_v36, %v8980_v35  ;;  %v6291_v36 = vld [vmem:[%s6732_s9 + $0xf0] sm:$0xff] }
 0x423   : > { %v4926_v30 = vpop.f32.mrf.mxu1 }
 0x424   : > { %5131 = vst.msk [vmem:[%s6712_s21 + $0x80] sm:$0xff] %vm696_vm4, %v5099_v13  ;;  %v5102_v56 = vmax.f32 %v5070_v6, 0.0  ;;  %v5068_v55 = vadd.f32 %v6282_v42, %v5036_v18  ;;  %v5041_v20 = vadd.f32 %v8985_v45, %v5002_v9  ;;  %v5000_v11 = vmul.f32 %v8980_v35, %v4926_v30  ;;  %v6292_v30 = vld [vmem:[%s6732_s9 + $0xe0] sm:$0xff] }
 0x425   : > { %v6052_v15 = vpop.f32.mrf.mxu1 }
 0x426   : > { %5134 = vst.msk [vmem:[%s6712_s21 + $0x98] sm:$0xff] %vm696_vm4, %v5102_v56  ;;  %v5100_v23 = vmax.f32 %v5068_v55, 0.0  ;;  %v5073_v63 = vadd.f32 %v6283_v51, %v5041_v20  ;;  %v5039_v58 = vadd.f32 %v8985_v45, %v5000_v11  ;;  %v5003_v57 = vmul.f32 %v6052_v15, %v8980_v35  ;;  %v6293_v11 = vld [vmem:[%s6732_s9 + $0xf8] sm:$0xff] }
 0x427   : > { %v4929_v32 = vpop.f32.mrf.mxu1 }
 0x428   : > { %5132 = vst.msk [vmem:[%s6712_s21 + $0x88] sm:$0xff] %vm696_vm4, %v5100_v23  ;;  %v5105_v48 = vmax.f32 %v5073_v63, 0.0  ;;  %v5071_v41 = vadd.f32 %v6284_v37, %v5039_v58  ;;  %v5042_v25 = vadd.f32 %v8985_v45, %v5003_v57  ;;  %v5001_v61 = vmul.f32 %v8980_v35, %v4929_v32  ;;  %v6294_v63 = vld [vmem:[%s6732_s9 + $0xe8] sm:$0xff] }
 0x429   : > { %v6055_v5 = vpop.f32.mrf.mxu1 }
 0x42a   : > { %5137 = vst.msk [vmem:[%s6712_s21 + $0xb0] sm:$0xff] %vm696_vm4, %v5105_v48  ;;  %v5103_v38 = vmax.f32 %v5071_v41, 0.0  ;;  %v5074_v14 = vadd.f32 %v6285_v59, %v5042_v25  ;;  %v5040_v39 = vadd.f32 %v8985_v45, %v5001_v61  ;;  %v5006_v0 = vmul.f32 %v6055_v5, %v8980_v35 }
 0x42b   : > { %v4942_v33 = vpop.f32.mrf.mxu1 }
 0x42c   : > { %5135 = vst.msk [vmem:[%s6712_s21 + $0xa0] sm:$0xff] %vm696_vm4, %v5103_v38  ;;  %v5106_v19 = vmax.f32 %v5074_v14, 0.0  ;;  %v5072_v40 = vadd.f32 %v6286_v50, %v5040_v39  ;;  %v5045_v12 = vadd.f32 %v8985_v45, %v5006_v0  ;;  %v5004_v10 = vmul.f32 %v8980_v35, %v4942_v33 }
 0x42d   : > { %v6056_v24 = vpop.f32.mrf.mxu1 }
 0x42e   : > { %5138 = vst.msk [vmem:[%s6712_s21 + $0xb8] sm:$0xff] %vm696_vm4, %v5106_v19  ;;  %v5104_v44 = vmax.f32 %v5072_v40, 0.0  ;;  %v5077_v49 = vadd.f32 %v6287_v27, %v5045_v12  ;;  %v5043_v28 = vadd.f32 %v8985_v45, %v5004_v10  ;;  %v5007_v16 = vmul.f32 %v6056_v24, %v8980_v35 }
 0x42f   : > { %v4945_v4 = vpop.f32.mrf.mxu1 }
 0x430   : > { %5136 = vst.msk [vmem:[%s6712_s21 + $0xa8] sm:$0xff] %vm696_vm4, %v5104_v44  ;;  %v5109_v60 = vmax.f32 %v5077_v49, 0.0  ;;  %v5075_v31 = vadd.f32 %v6288_v53, %v5043_v28  ;;  %v5046_v17 = vadd.f32 %v8985_v45, %v5007_v16  ;;  %v5005_v3 = vmul.f32 %v8980_v35, %v4945_v4 }
 0x431   : > { %v6059_v54 = vpop.f32.mrf.mxu1 }
 0x432   : > { %5141 = vst.msk [vmem:[%s6712_s21 + $0xd0] sm:$0xff] %vm696_vm4, %v5109_v60  ;;  %v5107_v29 = vmax.f32 %v5075_v31, 0.0  ;;  %v5078_v43 = vadd.f32 %v6289_v7, %v5046_v17  ;;  %v5044_v46 = vadd.f32 %v8985_v45, %v5005_v3  ;;  %v5010_v1 = vmul.f32 %v6059_v54, %v8980_v35 }
 0x433   : > { %v4958_v52 = vpop.f32.mrf.mxu1 }
 0x434   : > { %5139 = vst.msk [vmem:[%s6712_s21 + $0xc0] sm:$0xff] %vm696_vm4, %v5107_v29  ;;  %v5110_v2 = vmax.f32 %v5078_v43, 0.0  ;;  %v5076_v26 = vadd.f32 %v6290_v8, %v5044_v46  ;;  %v5049_v62 = vadd.f32 %v8985_v45, %v5010_v1  ;;  %v5008_v47 = vmul.f32 %v8980_v35, %v4958_v52 }
 0x435   : > { %v6060_v21 = vpop.f32.mrf.mxu1 }
 0x436   : > { %5142 = vst.msk [vmem:[%s6712_s21 + $0xd8] sm:$0xff] %vm696_vm4, %v5110_v2  ;;  %v5108_v22 = vmax.f32 %v5076_v26, 0.0  ;;  %v5081_v13 = vadd.f32 %v6291_v36, %v5049_v62  ;;  %v5047_v34 = vadd.f32 %v8985_v45, %v5008_v47  ;;  %v5011_v6 = vmul.f32 %v6060_v21, %v8980_v35 }
 0x437   : > { %v4961_v18 = vpop.f32.mrf.mxu1 }
 0x438   : > { %5140 = vst.msk [vmem:[%s6712_s21 + $0xc8] sm:$0xff] %vm696_vm4, %v5108_v22  ;;  %v5113_v9 = vmax.f32 %v5081_v13, 0.0  ;;  %v5079_v56 = vadd.f32 %v6292_v30, %v5047_v34  ;;  %v5050_v42 = vadd.f32 %v8985_v45, %v5011_v6  ;;  %v5009_v55 = vmul.f32 %v8980_v35, %v4961_v18 }
 0x43a   : > { %5145 = vst.msk [vmem:[%s6712_s21 + $0xf0] sm:$0xff] %vm696_vm4, %v5113_v9  ;;  %v5111_v20 = vmax.f32 %v5079_v56, 0.0  ;;  %v5082_v15 = vadd.f32 %v6293_v11, %v5050_v42  ;;  %v5048_v23 = vadd.f32 %v8985_v45, %v5009_v55 }
 0x43c   : > { %5143 = vst.msk [vmem:[%s6712_s21 + $0xe0] sm:$0xff] %vm696_vm4, %v5111_v20  ;;  %v5114_v51 = vmax.f32 %v5082_v15, 0.0  ;;  %v5080_v58 = vadd.f32 %v6294_v63, %v5048_v23 }
 0x43e   : > { %5146 = vst.msk [vmem:[%s6712_s21 + $0xf8] sm:$0xff] %vm696_vm4, %v5114_v51  ;;  %v5112_v57 = vmax.f32 %v5080_v58, 0.0 }
 0x440   : > { %5144 = vst.msk [vmem:[%s6712_s21 + $0xe8] sm:$0xff] %vm696_vm4, %v5112_v57 }
 0x441 PF: > { %s5488_s24 = sshll.u32 %s9520_s23, 8  ;;  %vm5149_vm11 = vcmask 261120   ;;  %s5490_s8 = sadd.s32 4294967295, %s6509_s20  ;;  %v9474_v35 = vld [vmem:[#allocation13_spill] sm:$0xff]  ;;  %v9475_v45 = vld [vmem:[#allocation14_spill] sm:$0xff]  ;;  %v9476_v32 = vld [vmem:[#allocation15_spill] sm:$0xff] }
 0x442   : > { %s9149_s12 = scalar_lea.vmem [#allocation2], %s5488_s24  ;;  %v9477_v48 = vld [vmem:[#allocation16_spill] sm:$0xff]  ;;  %v9478_v37 = vld [vmem:[#allocation17_spill] sm:$0xff]  ;;  %v9479_v41 = vld [vmem:[#allocation18_spill] sm:$0xff]  ;;  %p5191_p2 = scmp.gt.s32.totalorder %s5490_s8, 0 }
 0x443   : > { %5150 = vst.msk [vmem:[%s9149_s12] sm:$0xff] %vm5149_vm11, %v9474_v35  ;;  %5151 = vst.msk [vmem:[%s9149_s12 + $0x8] sm:$0xff] %vm5149_vm11, %v9475_v45  ;;  %v9480_v25 = vld [vmem:[#allocation19_spill] sm:$0xff]  ;;  %v9481_v61 = vld [vmem:[#allocation20_spill] sm:$0xff]  ;;  %s5199_s23 = sshll.u32 %s6712_s21, 4  ;;  %s9506_s27 = sld [smem:[#allocation64_spill]]  ;;  %s9250_s23 = int_to_ptr.vmem [resolvable:$true] %s5199_s23 }
 0x444   : > { %5152 = vst.msk [vmem:[%s9149_s12 + $0x10] sm:$0xff] %vm5149_vm11, %v9476_v32  ;;  %5153 = vst.msk [vmem:[%s9149_s12 + $0x18] sm:$0xff] %vm5149_vm11, %v9477_v48  ;;  %v9482_v5 = vld [vmem:[#allocation21_spill] sm:$0xff]  ;;  %v9483_v38 = vld [vmem:[#allocation22_spill] sm:$0xff]  ;;  %s9524_s8 = smov (!%p5191_p2, %s5490_s8), 0  ;;  %s9261_s29 = scalar_lea.sflag [#allocation7], %s387_s6 }
 0x445   : > { %5154 = vst.msk [vmem:[%s9149_s12 + $0x20] sm:$0xff] %vm5149_vm11, %v9478_v37  ;;  %5155 = vst.msk [vmem:[%s9149_s12 + $0x28] sm:$0xff] %vm5149_vm11, %v9479_v41  ;;  %v9484_v59 = vld [vmem:[#allocation23_spill] sm:$0xff]  ;;  %v9485_v14 = vld [vmem:[#allocation24_spill] sm:$0xff]  ;;  %s5496_s9 = sshll.u32 %s9524_s8, 12  ;;  %s6323_s30 = scalar_lea.vmem %s9250_s23, 4096 }
 0x446   : > { %5156 = vst.msk [vmem:[%s9149_s12 + $0x30] sm:$0xff] %vm5149_vm11, %v9480_v25  ;;  %5157 = vst.msk [vmem:[%s9149_s12 + $0x38] sm:$0xff] %vm5149_vm11, %v9481_v61  ;;  %v9486_v39 = vld [vmem:[#allocation25_spill] sm:$0xff]  ;;  %v9487_v0 = vld [vmem:[#allocation26_spill] sm:$0xff]  ;;  %p6324_p4 = scmp.ne.s32.totalorder %s9250_s23, %s6323_s30  ;;  %p9507_p7 = scmp.ne.s32.totalorder %s9388_s16, 0 }
 0x447   : > { %5158 = vst.msk [vmem:[%s9149_s12 + $0x40] sm:$0xff] %vm5149_vm11, %v9482_v5  ;;  %5159 = vst.msk [vmem:[%s9149_s12 + $0x48] sm:$0xff] %vm5149_vm11, %v9483_v38  ;;  %v9488_v33 = vld [vmem:[#allocation27_spill] sm:$0xff]  ;;  %v9489_v19 = vld [vmem:[#allocation28_spill] sm:$0xff]  ;;  %s6417_s21 = smov [#allocation8]  }
 0x448   : > { %5160 = vst.msk [vmem:[%s9149_s12 + $0x50] sm:$0xff] %vm5149_vm11, %v9484_v59  ;;  %5161 = vst.msk [vmem:[%s9149_s12 + $0x58] sm:$0xff] %vm5149_vm11, %v9485_v14  ;;  %v9490_v50 = vld [vmem:[#allocation29_spill] sm:$0xff]  ;;  %v9491_v40 = vld [vmem:[#allocation30_spill] sm:$0xff]  ;;  %p6325_p10 = pnand %p6324_p4, %p9507_p7  ;;  %s6327_s20 = sshll.u32 %s6417_s21, 4  ;;  %s6328_s20 = int_to_ptr.vmem [resolvable:$false] %s6327_s20 }
 0x449   : > { %5162 = vst.msk [vmem:[%s9149_s12 + $0x60] sm:$0xff] %vm5149_vm11, %v9486_v39  ;;  %5163 = vst.msk [vmem:[%s9149_s12 + $0x68] sm:$0xff] %vm5149_vm11, %v9487_v0  ;;  %v9492_v12 = vld [vmem:[#allocation31_spill] sm:$0xff]  ;;  %v9493_v10 = vld [vmem:[#allocation32_spill] sm:$0xff]  ;;  %s9257_s28 = scalar_lea.hbm %s9506_s27, %s5496_s9  ;;  %s6329_s11 = scalar_lea.vmem %s6328_s20, 8192 }
 0x44a   : > { %5164 = vst.msk [vmem:[%s9149_s12 + $0x70] sm:$0xff] %vm5149_vm11, %v9488_v33  ;;  %5165 = vst.msk [vmem:[%s9149_s12 + $0x78] sm:$0xff] %vm5149_vm11, %v9489_v19  ;;  %v9494_v24 = vld [vmem:[#allocation33_spill] sm:$0xff]  ;;  %v9495_v44 = vld [vmem:[#allocation34_spill] sm:$0xff]  ;;  %p6326_p8 = pneg %p6325_p10  ;;  %p6330_p11 = scmp.lt.s32.totalorder %s9250_s23, %s6328_s20 }
 0x44b   : > { %5166 = vst.msk [vmem:[%s9149_s12 + $0x80] sm:$0xff] %vm5149_vm11, %v9490_v50  ;;  %5167 = vst.msk [vmem:[%s9149_s12 + $0x88] sm:$0xff] %vm5149_vm11, %v9491_v40  ;;  %v9496_v27 = vld [vmem:[#allocation35_spill] sm:$0xff]  ;;  %v9497_v49 = vld [vmem:[#allocation36_spill] sm:$0xff]  ;;  %p6331_p6 = scmp.lt.s32.totalorder %s6329_s11, %s6323_s30 }
 0x44c   : > { %5168 = vst.msk [vmem:[%s9149_s12 + $0x90] sm:$0xff] %vm5149_vm11, %v9492_v12  ;;  %5169 = vst.msk [vmem:[%s9149_s12 + $0x98] sm:$0xff] %vm5149_vm11, %v9493_v10  ;;  %v9498_v28 = vld [vmem:[#allocation37_spill] sm:$0xff]  ;;  %v9499_v16 = vld [vmem:[#allocation38_spill] sm:$0xff] }
 0x44d   : > { %5170 = vst.msk [vmem:[%s9149_s12 + $0xa0] sm:$0xff] %vm5149_vm11, %v9494_v24  ;;  %5171 = vst.msk [vmem:[%s9149_s12 + $0xa8] sm:$0xff] %vm5149_vm11, %v9495_v44  ;;  %v9500_v4 = vld [vmem:[#allocation39_spill] sm:$0xff]  ;;  %v9501_v60 = vld [vmem:[#allocation40_spill] sm:$0xff]  ;;  %p6332_p9 = por %p6331_p6, %p6330_p11 }
 0x44e   : > { %5172 = vst.msk [vmem:[%s9149_s12 + $0xb0] sm:$0xff] %vm5149_vm11, %v9496_v27  ;;  %5173 = vst.msk [vmem:[%s9149_s12 + $0xb8] sm:$0xff] %vm5149_vm11, %v9497_v49  ;;  %v9502_v53 = vld [vmem:[#allocation41_spill] sm:$0xff]  ;;  %v9503_v31 = vld [vmem:[#allocation42_spill] sm:$0xff] }
 0x44f   : > { %5174 = vst.msk [vmem:[%s9149_s12 + $0xc0] sm:$0xff] %vm5149_vm11, %v9498_v28  ;;  %5175 = vst.msk [vmem:[%s9149_s12 + $0xc8] sm:$0xff] %vm5149_vm11, %v9499_v16  ;;  %v9504_v17 = vld [vmem:[#allocation43_spill] sm:$0xff]  ;;  %v9505_v3 = vld [vmem:[#allocation44_spill] sm:$0xff]  ;;  %p6333_p13 = pnand %p6332_p9, %p6326_p8 }
 0x450   : > { %5176 = vst.msk [vmem:[%s9149_s12 + $0xd0] sm:$0xff] %vm5149_vm11, %v9500_v4  ;;  %5177 = vst.msk [vmem:[%s9149_s12 + $0xd8] sm:$0xff] %vm5149_vm11, %v9501_v60 }
 0x451   : > { %5178 = vst.msk [vmem:[%s9149_s12 + $0xe0] sm:$0xff] %vm5149_vm11, %v9502_v53  ;;  %5179 = vst.msk [vmem:[%s9149_s12 + $0xe8] sm:$0xff] %vm5149_vm11, %v9503_v31 }
 0x452   : > { %5180 = vst.msk [vmem:[%s9149_s12 + $0xf0] sm:$0xff] %vm5149_vm11, %v9504_v17  ;;  %5181 = vst.msk [vmem:[%s9149_s12 + $0xf8] sm:$0xff] %vm5149_vm11, %v9505_v3 }
 0x453   : > { %6336 = shalt.err (!%p6333_p13)
}
 0x454   : > { %s6337_s6 = scalar_lea.hbm %s9257_s28, 4096  ;;  %s6341_s12 = scalar_lea.hbm %s9506_s27, 32768 }
 0x455   : > { %p6338_p3 = scmp.ne.s32.totalorder %s9257_s28, %s6337_s6  ;;  %p6342_p0 = scmp.lt.s32.totalorder %s9257_s28, %s9506_s27 }
 0x456   : > { %p6343_p1 = scmp.lt.s32.totalorder %s6341_s12, %s6337_s6 }
 0x457   : > { %p6339_p5 = pnand %p6338_p3, %p9507_p7 }
 0x458   : > { %p6344_p2 = por %p6343_p1, %p6342_p0 }
 0x459   : > { %p6340_p12 = pneg %p6339_p5 }
 0x45b   : > { %p6345_p4 = pnand %p6344_p2, %p6340_p12 }
 0x45d   : > { %6348 = shalt.err (!%p6345_p4)
}
 0x45e   : > { %s6418_s22 = smov 128   ;;  %s6419_s30 = smov 8  }
 0x45f   : > { %6076 = dma.vmem_to_hbm [thread:$0]  (%p9507_p7), %s9250_s23, 4096, %s9257_s28, %s9261_s29, %s6418_s22, %s6418_s22, %s6419_s30  }
 0x460 PF: > { %p6087_p10 = scmp.ge.s32.totalorder %s6411_s19, 2  ;;  %s5214_s21 = sand.u32 1, %s6387_s13  }
 0x461   : > { %p9508_p8 = scmp.ne.s32.totalorder %s9389_s25, 0  ;;  %s5215_s20 = scalar_lea.sflag [#allocation7], %s5214_s21 }
 0x463   : > { %p6083_p11 = pnand %p6087_p10, %p9508_p8 }
 0x465   : > { %p6084_p6 = pneg %p6083_p11 }
 0x467   : > { %6382 = dma.done.wait (%p6084_p6), %s5215_s20, 4096  }
 0x468   : > { %6384 = vsyncadd (%p6084_p6), %s5215_s20, 4294963200  ;;  %s9509_s19 = sld [smem:[#allocation11_spill]]  ;;  %s9511_s13 = smov %s6391_s14 }
 0x469   : > { %s9510_s11 = sld [smem:[#allocation12_spill]]  ;;  %s9512_s14 = smov %s6395_s15 }
 0x46a   : > { %s9513_s15 = smov %s6558_s26  ;;  %s9514_s16 = smov %s6403_s17 }
 0x46b   : > { %s9515_s17 = smov %s6407_s18 }
 0x46e   : > { %p23_p7 = scmp.ge.s32.totalorder %s9509_s19, 11  }
 0x46f   : > { %s9516_s18 = smov %s9510_s11 }
 0x470   :  { %25 = sbr.rel (!%p23_p7) target bundleno = 12 (0xc), region = 127 }
 0x475   :  { %5220 = vsyncpa [#allocation6], 1 }
 0x476   :  { %5222 = vsyncpa [#allocation6 + $0x1], 1 }
 0x477   :  { %5223 = vsyncpa [#allocation7], 1 }
 0x478   :  { %5225 = vsyncpa [#allocation7 + $0x1], 1 }

</bundles_post_ra>
